<compile_context>
chip_gen: v7x
topology: tpu7x:2x2x1
jax: 0.10.0
libtpu: 0.0.40
codegen_flags: <defaults>
</compile_context>

<pallas_src>
import functools  # noqa: F401  (kept for easy static-arg plumbing if shapes grow)

import jax
import jax.numpy as jnp
import numpy as np
from jax.experimental import pallas as pl
from jax.experimental.pallas import tpu as pltpu


# ---------------------------------------------------------------------------
# Fused kernel: LSTM (last hidden state) + projection * gate * reduce + softmax
# ---------------------------------------------------------------------------
def fused_attention_kernel(v_ref, q_ref, w_ih_ref, w_hh_ref, b_ref,
                           wv_ref, bv_ref, wl_ref, out_ref):
    """One batch tile of the whole Attention.forward.

    v_ref:    [Bt, K, D]  f32     wv_ref: [D, D]   bf16    bv_ref: [1, D]  f32
    q_ref:    [Bt, S, D]  f32     wl_ref: [1, D]   f32
    w_ih_ref: [D, 4D]     bf16    w_hh_ref: [D, 4D] bf16   b_ref: [1, 4D] f32
    out_ref:  [Bt, K]     f32     (softmax over K, lane-major)
    """
    bt, k, d = v_ref.shape
    s_len = q_ref.shape[1]

    # ---- LSTM over the batch tile (only the last hidden state is needed) ----
    # Hoisted input projection: one MXU-dense (Bt*S, D) x (D, 4D) bf16 matmul with f32
    # accumulation, done outside the recurrence.  q stays batch-major; timestep slabs are
    # taken with static slices below, so no HBM transpose and no in-kernel relayout.
    x = q_ref[...].reshape(bt * s_len, d).astype(jnp.bfloat16)
    gx = jnp.dot(x, w_ih_ref[...], preferred_element_type=jnp.float32) + b_ref[...]
    gx = gx.reshape(bt, s_len, 4 * d)                       # (Bt, S, 4D), f32

    h = jnp.zeros((bt, d), jnp.float32)
    c = jnp.zeros((bt, d), jnp.float32)
    # S is static and small: static unroll keeps h/c live in registers and gives the
    # scheduler cross-timestep visibility; only h @ W_hh sits on the serial critical path.
    for t in range(s_len):
        gates = gx[:, t, :] + jnp.dot(h.astype(jnp.bfloat16), w_hh_ref[...],
                                      preferred_element_type=jnp.float32)   # (Bt, 4D)
        # D is a multiple of 128 in the demo -> lane-aligned gate slices (i, f, g, o order,
        # matching PyTorch's LSTM weight layout).
        i_g = jax.nn.sigmoid(gates[:, 0 * d:1 * d])
        f_g = jax.nn.sigmoid(gates[:, 1 * d:2 * d])
        g_g = jnp.tanh(gates[:, 2 * d:3 * d])
        o_g = jax.nn.sigmoid(gates[:, 3 * d:4 * d])
        c = f_g * c + i_g * g_g
        h = o_g * jnp.tanh(c)

    # ---- attention head ----
    # dropout(p=0.2) is identity in eval mode.
    # TODO(synk): training-mode stochastic dropout (pltpu.prng_* masking) not implemented.
    hw = h * wl_ref[...]                                     # (Bt, D): fold Linear(D,1) weight
    v2 = v_ref[...].reshape(bt * k, d).astype(jnp.bfloat16)
    v_proj = jnp.maximum(
        jnp.dot(v2, wv_ref[...], preferred_element_type=jnp.float32) + bv_ref[...],
        0.0).reshape(bt, k, d)                               # FCNet: weight-normed Linear + ReLU

    # logits = (v_proj * h) @ wl, as a VPU multiply + lane reduce against hw = h * wl
    # (no width-1 MXU matmul).  bl is a constant shift along the softmax axis -> dropped.
    logits = jnp.sum(v_proj * hw[:, None, :], axis=-1)       # (Bt, K)

    m = jnp.max(logits, axis=-1, keepdims=True)
    e = jnp.exp(logits - m)
    denom = jnp.sum(e, axis=-1, keepdims=True)
    out_ref[...] = e * pl.reciprocal(denom, approx=False)


# ---------------------------------------------------------------------------
# Glue: parameters, weight-norm, tiling, wrapper
# ---------------------------------------------------------------------------
def weight_norm_dim_none(w, g):
    # torch weight_norm with dim=None: w_n = g * V / ||V||_F (g is a scalar)
    return g * w / jnp.linalg.norm(w)


def _choose_batch_tile(B, K):
    """Batch tile: ~1024 flattened (Bt*K) rows for the projection matmul, multiple-of-8
    sublanes, capped at 128 rows for LSTM register/VMEM pressure, and >= 2 grid steps when
    the batch allows it (v7x megacore)."""
    if B <= 8:
        return B
    bt = max(8, min(128, ((1024 // max(K, 1)) // 8) * 8, ((B + 7) // 8) * 8))
    if bt * 2 > B and B >= 16:
        bt = max(8, (((B + 1) // 2) // 8) * 8)
    return bt


def init_params(key, d):
    ks = jax.random.split(key, 8)
    s = 0.1
    return dict(
        wv=jax.random.normal(ks[0], (d, d), jnp.float32) * s,       # Linear(v_dim, num_hid).weight
        bv=jax.random.normal(ks[1], (d,), jnp.float32) * s,
        wl=jax.random.normal(ks[2], (1, d), jnp.float32) * s,       # Linear(q_dim, 1).weight
        bl=jax.random.normal(ks[3], (1,), jnp.float32) * s,
        w_ih=jax.random.normal(ks[4], (4 * d, d), jnp.float32) * s,  # LSTM weight_ih_l0
        w_hh=jax.random.normal(ks[5], (4 * d, d), jnp.float32) * s,  # LSTM weight_hh_l0
        b_ih=jax.random.normal(ks[6], (4 * d,), jnp.float32) * s,
        b_hh=jax.random.normal(ks[7], (4 * d,), jnp.float32) * s,
    )


@jax.jit
def attention_forward(v, q, params):
    B, K, D = v.shape
    S = q.shape[1]

    # ---- weight prep (tiny XLA ops) ----
    gv = jnp.linalg.norm(params["wv"])   # g initialized to ||V|| (PyTorch weight_norm init)
    gl = jnp.linalg.norm(params["wl"])
    # MXU operands in bf16 (accumulation stays f32 inside the kernel).
    wv_t = weight_norm_dim_none(params["wv"], gv).T.astype(jnp.bfloat16)     # [D, D]
    bv = params["bv"].reshape(1, D)                                          # f32
    wl_n = weight_norm_dim_none(params["wl"], gl).reshape(1, D)              # [1, D] f32
    w_ih_t = params["w_ih"].T.astype(jnp.bfloat16)                           # [D, 4D]
    w_hh_t = params["w_hh"].T.astype(jnp.bfloat16)                           # [D, 4D]
    b_all = (params["b_ih"] + params["b_hh"]).reshape(1, 4 * D)              # f32

    bt = _choose_batch_tile(B, K)

    att = pl.pallas_call(
        fused_attention_kernel,
        out_shape=jax.ShapeDtypeStruct((B, K), jnp.float32),
        grid=(pl.cdiv(B, bt),),
        in_specs=[
            pl.BlockSpec((bt, K, D), lambda b: (b, 0, 0)),   # v (batch tiled)
            pl.BlockSpec((bt, S, D), lambda b: (b, 0, 0)),   # q (batch-major, batch tiled)
            pl.BlockSpec((D, 4 * D), lambda b: (0, 0)),      # w_ih (bf16, grid-invariant)
            pl.BlockSpec((D, 4 * D), lambda b: (0, 0)),      # w_hh (bf16, grid-invariant)
            pl.BlockSpec((1, 4 * D), lambda b: (0, 0)),      # fused LSTM bias (f32)
            pl.BlockSpec((D, D), lambda b: (0, 0)),          # wv (bf16, grid-invariant)
            pl.BlockSpec((1, D), lambda b: (0, 0)),          # bv (f32)
            pl.BlockSpec((1, D), lambda b: (0, 0)),          # wl (f32)
        ],
        out_specs=pl.BlockSpec((bt, K), lambda b: (b, 0)),   # lane-major [B, K]
        compiler_params=pltpu.CompilerParams(dimension_semantics=("parallel",)),
    )(v, q, w_ih_t, w_hh_t, b_all, wv_t, bv, wl_n)

    return att.reshape(B, K, 1)


# ---------------------------------------------------------------------------
# Pure-JAX reference (mirrors the PyTorch forward); mxu_dtype lets us build a
# bf16-matmul-matched reference for a tight structural check.
# ---------------------------------------------------------------------------
def reference_forward(v, q, params, mxu_dtype=jnp.float32):
    B, K, D = v.shape
    S = q.shape[1]
    gv = jnp.linalg.norm(params["wv"])
    gl = jnp.linalg.norm(params["wl"])
    wv_t = weight_norm_dim_none(params["wv"], gv).T
    wl_t = weight_norm_dim_none(params["wl"], gl).T
    w_ih_t, w_hh_t = params["w_ih"].T, params["w_hh"].T
    b = params["b_ih"] + params["b_hh"]

    def mm(a, w):
        return jnp.dot(a.astype(mxu_dtype), w.astype(mxu_dtype),
                       preferred_element_type=jnp.float32)

    h = jnp.zeros((B, D), jnp.float32)
    c = jnp.zeros((B, D), jnp.float32)
    for t in range(S):
        gates = mm(q[:, t], w_ih_t) + mm(h, w_hh_t) + b
        i = jax.nn.sigmoid(gates[:, :D])
        f = jax.nn.sigmoid(gates[:, D:2 * D])
        g = jnp.tanh(gates[:, 2 * D:3 * D])
        o = jax.nn.sigmoid(gates[:, 3 * D:])
        c = f * c + i * g
        h = o * jnp.tanh(c)

    v_proj = jnp.maximum(mm(v, wv_t) + params["bv"], 0.0)    # [B, K, D]
    joint = v_proj * h[:, None, :]
    logits = jnp.dot(joint, wl_t) + params["bl"]             # [B, K, 1]  (final linear in f32)
    return jax.nn.softmax(logits, axis=1)


# ---------------------------------------------------------------------------
if __name__ == "__main__":
    # batch, num objects, seq len, v_dim == q_dim == num_hid (lane/sublane aligned demo)
    B, K, S, D = 8, 16, 8, 128
    key = jax.random.PRNGKey(0)
    kv, kq, kp = jax.random.split(key, 3)
    v = jax.random.normal(kv, (B, K, D), jnp.float32)
    q = jax.random.normal(kq, (B, S, D), jnp.float32)
    params = init_params(kp, D)

    out = jax.block_until_ready(attention_forward(v, q, params))
    assert out.shape == (B, K, 1)

    # Tight check vs. a reference whose matmul operands are also bf16 (validates structure),
    # loose check vs. the pure-f32 PyTorch-equivalent reference (bounds bf16 drift).
    ref_bf16 = reference_forward(v, q, params, mxu_dtype=jnp.bfloat16)
    ref_f32 = reference_forward(v, q, params, mxu_dtype=jnp.float32)
    np.testing.assert_allclose(np.asarray(out), np.asarray(ref_bf16), rtol=2e-2, atol=2e-3)
    np.testing.assert_allclose(np.asarray(out), np.asarray(ref_f32), rtol=1e-1, atol=1e-2)
    np.testing.assert_allclose(np.asarray(out).sum(axis=1), 1.0, rtol=1e-5, atol=1e-5)

    print("KERNEL_OK")
</pallas_src>

<mosaic_0001>
module attributes {stable_mosaic.version = 11 : i64} {
  func.func @fused_attention_kernel(%arg0: i32, %arg1: memref<8x16x128xf32, #tpu.memory_space<vmem>>, %arg2: memref<8x8x128xf32, #tpu.memory_space<vmem>>, %arg3: memref<128x512xbf16, #tpu.memory_space<vmem>>, %arg4: memref<128x512xbf16, #tpu.memory_space<vmem>>, %arg5: memref<1x512xf32, #tpu.memory_space<vmem>>, %arg6: memref<128x128xbf16, #tpu.memory_space<vmem>>, %arg7: memref<1x128xf32, #tpu.memory_space<vmem>>, %arg8: memref<1x128xf32, #tpu.memory_space<vmem>>, %arg9: memref<8x16xf32, #tpu.memory_space<vmem>>) attributes {dimension_semantics = [#tpu.dimension_semantics<parallel>], iteration_bounds = array<i64: 1>, scalar_prefetch = 0 : i64, scratch_operands = 0 : i64, tpu.core_type = #tpu.core_type<tc>, window_params = [{transform_indices = @transform_0, window_bounds = array<i64: 8, 16, 128>}, {transform_indices = @transform_1, window_bounds = array<i64: 8, 8, 128>}, {pipeline_mode = #tpu.pipeline_mode<synchronous>, transform_indices = @transform_2, window_bounds = array<i64: 128, 512>}, {pipeline_mode = #tpu.pipeline_mode<synchronous>, transform_indices = @transform_3, window_bounds = array<i64: 128, 512>}, {pipeline_mode = #tpu.pipeline_mode<synchronous>, transform_indices = @transform_4, window_bounds = array<i64: 1, 512>}, {pipeline_mode = #tpu.pipeline_mode<synchronous>, transform_indices = @transform_5, window_bounds = array<i64: 128, 128>}, {pipeline_mode = #tpu.pipeline_mode<synchronous>, transform_indices = @transform_6, window_bounds = array<i64: 1, 128>}, {pipeline_mode = #tpu.pipeline_mode<synchronous>, transform_indices = @transform_7, window_bounds = array<i64: 1, 128>}, {transform_indices = @transform_8, window_bounds = array<i64: 8, 16>}]} {
    %c0 = arith.constant 0 : index
    %c0_0 = arith.constant 0 : index
    %c0_1 = arith.constant 0 : index
    %0 = vector.load %arg2[%c0, %c0_0, %c0_1] : memref<8x8x128xf32, #tpu.memory_space<vmem>>, vector<8x8x128xf32>
    %1 = vector.shape_cast %0 : vector<8x8x128xf32> to vector<64x128xf32>
    %2 = arith.truncf %1 : vector<64x128xf32> to vector<64x128xbf16>
    %c0_2 = arith.constant 0 : index
    %c0_3 = arith.constant 0 : index
    %3 = vector.load %arg3[%c0_2, %c0_3] : memref<128x512xbf16, #tpu.memory_space<vmem>>, vector<128x512xbf16>
    %cst = arith.constant dense<0.000000e+00> : vector<64x512xf32>
    %4 = tpu.matmul %2, %3, %cst {dimension_numbers = #tpu.dot_dimension_numbers<[1], [0], [0], [1], [0, 0, 1, 1], [], []>} : vector<64x128xbf16>, vector<128x512xbf16>, vector<64x512xf32> -> vector<64x512xf32>
    %c0_4 = arith.constant 0 : index
    %c0_5 = arith.constant 0 : index
    %5 = vector.load %arg5[%c0_4, %c0_5] : memref<1x512xf32, #tpu.memory_space<vmem>>, vector<1x512xf32>
    %6 = vector.broadcast %5 : vector<1x512xf32> to vector<64x512xf32>
    %7 = arith.addf %4, %6 : vector<64x512xf32>
    %8 = vector.shape_cast %7 : vector<64x512xf32> to vector<8x8x512xf32>
    %cst_6 = arith.constant 0.000000e+00 : f32
    %9 = vector.broadcast %cst_6 : f32 to vector<8x128xf32>
    %cst_7 = arith.constant 0.000000e+00 : f32
    %10 = vector.broadcast %cst_7 : f32 to vector<8x128xf32>
    %11 = vector.extract_strided_slice %8 {offsets = [0, 0, 0], sizes = [8, 1, 512], strides = [1, 1, 1]} : vector<8x8x512xf32> to vector<8x1x512xf32>
    %12 = vector.shape_cast %11 : vector<8x1x512xf32> to vector<8x512xf32>
    %13 = arith.truncf %9 : vector<8x128xf32> to vector<8x128xbf16>
    %c0_8 = arith.constant 0 : index
    %c0_9 = arith.constant 0 : index
    %14 = vector.load %arg4[%c0_8, %c0_9] : memref<128x512xbf16, #tpu.memory_space<vmem>>, vector<128x512xbf16>
    %cst_10 = arith.constant dense<0.000000e+00> : vector<8x512xf32>
    %15 = tpu.matmul %13, %14, %cst_10 {dimension_numbers = #tpu.dot_dimension_numbers<[1], [0], [0], [1], [0, 0, 1, 1], [], []>} : vector<8x128xbf16>, vector<128x512xbf16>, vector<8x512xf32> -> vector<8x512xf32>
    %16 = arith.addf %12, %15 : vector<8x512xf32>
    %17 = vector.extract_strided_slice %16 {offsets = [0, 0], sizes = [8, 128], strides = [1, 1]} : vector<8x512xf32> to vector<8x128xf32>
    %18 = arith.negf %17 : vector<8x128xf32>
    %19 = math.exp %18 : vector<8x128xf32>
    %cst_11 = arith.constant 1.000000e+00 : f32
    %20 = vector.broadcast %cst_11 : f32 to vector<8x128xf32>
    %21 = arith.addf %20, %19 : vector<8x128xf32>
    %22 = arith.divf %20, %21 : vector<8x128xf32>
    %23 = vector.extract_strided_slice %16 {offsets = [0, 128], sizes = [8, 128], strides = [1, 1]} : vector<8x512xf32> to vector<8x128xf32>
    %24 = arith.negf %23 : vector<8x128xf32>
    %25 = math.exp %24 : vector<8x128xf32>
    %cst_12 = arith.constant 1.000000e+00 : f32
    %26 = vector.broadcast %cst_12 : f32 to vector<8x128xf32>
    %27 = arith.addf %26, %25 : vector<8x128xf32>
    %28 = arith.divf %26, %27 : vector<8x128xf32>
    %29 = vector.extract_strided_slice %16 {offsets = [0, 256], sizes = [8, 128], strides = [1, 1]} : vector<8x512xf32> to vector<8x128xf32>
    %30 = math.tanh %29 : vector<8x128xf32>
    %31 = vector.extract_strided_slice %16 {offsets = [0, 384], sizes = [8, 128], strides = [1, 1]} : vector<8x512xf32> to vector<8x128xf32>
    %32 = arith.negf %31 : vector<8x128xf32>
    %33 = math.exp %32 : vector<8x128xf32>
    %cst_13 = arith.constant 1.000000e+00 : f32
    %34 = vector.broadcast %cst_13 : f32 to vector<8x128xf32>
    %35 = arith.addf %34, %33 : vector<8x128xf32>
    %36 = arith.divf %34, %35 : vector<8x128xf32>
    %37 = arith.mulf %28, %10 : vector<8x128xf32>
    %38 = arith.mulf %22, %30 : vector<8x128xf32>
    %39 = arith.addf %37, %38 : vector<8x128xf32>
    %40 = math.tanh %39 : vector<8x128xf32>
    %41 = arith.mulf %36, %40 : vector<8x128xf32>
    %42 = vector.extract_strided_slice %8 {offsets = [0, 1, 0], sizes = [8, 1, 512], strides = [1, 1, 1]} : vector<8x8x512xf32> to vector<8x1x512xf32>
    %43 = vector.shape_cast %42 : vector<8x1x512xf32> to vector<8x512xf32>
    %44 = arith.truncf %41 : vector<8x128xf32> to vector<8x128xbf16>
    %c0_14 = arith.constant 0 : index
    %c0_15 = arith.constant 0 : index
    %45 = vector.load %arg4[%c0_14, %c0_15] : memref<128x512xbf16, #tpu.memory_space<vmem>>, vector<128x512xbf16>
    %cst_16 = arith.constant dense<0.000000e+00> : vector<8x512xf32>
    %46 = tpu.matmul %44, %45, %cst_16 {dimension_numbers = #tpu.dot_dimension_numbers<[1], [0], [0], [1], [0, 0, 1, 1], [], []>} : vector<8x128xbf16>, vector<128x512xbf16>, vector<8x512xf32> -> vector<8x512xf32>
    %47 = arith.addf %43, %46 : vector<8x512xf32>
    %48 = vector.extract_strided_slice %47 {offsets = [0, 0], sizes = [8, 128], strides = [1, 1]} : vector<8x512xf32> to vector<8x128xf32>
    %49 = arith.negf %48 : vector<8x128xf32>
    %50 = math.exp %49 : vector<8x128xf32>
    %cst_17 = arith.constant 1.000000e+00 : f32
    %51 = vector.broadcast %cst_17 : f32 to vector<8x128xf32>
    %52 = arith.addf %51, %50 : vector<8x128xf32>
    %53 = arith.divf %51, %52 : vector<8x128xf32>
    %54 = vector.extract_strided_slice %47 {offsets = [0, 128], sizes = [8, 128], strides = [1, 1]} : vector<8x512xf32> to vector<8x128xf32>
    %55 = arith.negf %54 : vector<8x128xf32>
    %56 = math.exp %55 : vector<8x128xf32>
    %cst_18 = arith.constant 1.000000e+00 : f32
    %57 = vector.broadcast %cst_18 : f32 to vector<8x128xf32>
    %58 = arith.addf %57, %56 : vector<8x128xf32>
    %59 = arith.divf %57, %58 : vector<8x128xf32>
    %60 = vector.extract_strided_slice %47 {offsets = [0, 256], sizes = [8, 128], strides = [1, 1]} : vector<8x512xf32> to vector<8x128xf32>
    %61 = math.tanh %60 : vector<8x128xf32>
    %62 = vector.extract_strided_slice %47 {offsets = [0, 384], sizes = [8, 128], strides = [1, 1]} : vector<8x512xf32> to vector<8x128xf32>
    %63 = arith.negf %62 : vector<8x128xf32>
    %64 = math.exp %63 : vector<8x128xf32>
    %cst_19 = arith.constant 1.000000e+00 : f32
    %65 = vector.broadcast %cst_19 : f32 to vector<8x128xf32>
    %66 = arith.addf %65, %64 : vector<8x128xf32>
    %67 = arith.divf %65, %66 : vector<8x128xf32>
    %68 = arith.mulf %59, %39 : vector<8x128xf32>
    %69 = arith.mulf %53, %61 : vector<8x128xf32>
    %70 = arith.addf %68, %69 : vector<8x128xf32>
    %71 = math.tanh %70 : vector<8x128xf32>
    %72 = arith.mulf %67, %71 : vector<8x128xf32>
    %73 = vector.extract_strided_slice %8 {offsets = [0, 2, 0], sizes = [8, 1, 512], strides = [1, 1, 1]} : vector<8x8x512xf32> to vector<8x1x512xf32>
    %74 = vector.shape_cast %73 : vector<8x1x512xf32> to vector<8x512xf32>
    %75 = arith.truncf %72 : vector<8x128xf32> to vector<8x128xbf16>
    %c0_20 = arith.constant 0 : index
    %c0_21 = arith.constant 0 : index
    %76 = vector.load %arg4[%c0_20, %c0_21] : memref<128x512xbf16, #tpu.memory_space<vmem>>, vector<128x512xbf16>
    %cst_22 = arith.constant dense<0.000000e+00> : vector<8x512xf32>
    %77 = tpu.matmul %75, %76, %cst_22 {dimension_numbers = #tpu.dot_dimension_numbers<[1], [0], [0], [1], [0, 0, 1, 1], [], []>} : vector<8x128xbf16>, vector<128x512xbf16>, vector<8x512xf32> -> vector<8x512xf32>
    %78 = arith.addf %74, %77 : vector<8x512xf32>
    %79 = vector.extract_strided_slice %78 {offsets = [0, 0], sizes = [8, 128], strides = [1, 1]} : vector<8x512xf32> to vector<8x128xf32>
    %80 = arith.negf %79 : vector<8x128xf32>
    %81 = math.exp %80 : vector<8x128xf32>
    %cst_23 = arith.constant 1.000000e+00 : f32
    %82 = vector.broadcast %cst_23 : f32 to vector<8x128xf32>
    %83 = arith.addf %82, %81 : vector<8x128xf32>
    %84 = arith.divf %82, %83 : vector<8x128xf32>
    %85 = vector.extract_strided_slice %78 {offsets = [0, 128], sizes = [8, 128], strides = [1, 1]} : vector<8x512xf32> to vector<8x128xf32>
    %86 = arith.negf %85 : vector<8x128xf32>
    %87 = math.exp %86 : vector<8x128xf32>
    %cst_24 = arith.constant 1.000000e+00 : f32
    %88 = vector.broadcast %cst_24 : f32 to vector<8x128xf32>
    %89 = arith.addf %88, %87 : vector<8x128xf32>
    %90 = arith.divf %88, %89 : vector<8x128xf32>
    %91 = vector.extract_strided_slice %78 {offsets = [0, 256], sizes = [8, 128], strides = [1, 1]} : vector<8x512xf32> to vector<8x128xf32>
    %92 = math.tanh %91 : vector<8x128xf32>
    %93 = vector.extract_strided_slice %78 {offsets = [0, 384], sizes = [8, 128], strides = [1, 1]} : vector<8x512xf32> to vector<8x128xf32>
    %94 = arith.negf %93 : vector<8x128xf32>
    %95 = math.exp %94 : vector<8x128xf32>
    %cst_25 = arith.constant 1.000000e+00 : f32
    %96 = vector.broadcast %cst_25 : f32 to vector<8x128xf32>
    %97 = arith.addf %96, %95 : vector<8x128xf32>
    %98 = arith.divf %96, %97 : vector<8x128xf32>
    %99 = arith.mulf %90, %70 : vector<8x128xf32>
    %100 = arith.mulf %84, %92 : vector<8x128xf32>
    %101 = arith.addf %99, %100 : vector<8x128xf32>
    %102 = math.tanh %101 : vector<8x128xf32>
    %103 = arith.mulf %98, %102 : vector<8x128xf32>
    %104 = vector.extract_strided_slice %8 {offsets = [0, 3, 0], sizes = [8, 1, 512], strides = [1, 1, 1]} : vector<8x8x512xf32> to vector<8x1x512xf32>
    %105 = vector.shape_cast %104 : vector<8x1x512xf32> to vector<8x512xf32>
    %106 = arith.truncf %103 : vector<8x128xf32> to vector<8x128xbf16>
    %c0_26 = arith.constant 0 : index
    %c0_27 = arith.constant 0 : index
    %107 = vector.load %arg4[%c0_26, %c0_27] : memref<128x512xbf16, #tpu.memory_space<vmem>>, vector<128x512xbf16>
    %cst_28 = arith.constant dense<0.000000e+00> : vector<8x512xf32>
    %108 = tpu.matmul %106, %107, %cst_28 {dimension_numbers = #tpu.dot_dimension_numbers<[1], [0], [0], [1], [0, 0, 1, 1], [], []>} : vector<8x128xbf16>, vector<128x512xbf16>, vector<8x512xf32> -> vector<8x512xf32>
    %109 = arith.addf %105, %108 : vector<8x512xf32>
    %110 = vector.extract_strided_slice %109 {offsets = [0, 0], sizes = [8, 128], strides = [1, 1]} : vector<8x512xf32> to vector<8x128xf32>
    %111 = arith.negf %110 : vector<8x128xf32>
    %112 = math.exp %111 : vector<8x128xf32>
    %cst_29 = arith.constant 1.000000e+00 : f32
    %113 = vector.broadcast %cst_29 : f32 to vector<8x128xf32>
    %114 = arith.addf %113, %112 : vector<8x128xf32>
    %115 = arith.divf %113, %114 : vector<8x128xf32>
    %116 = vector.extract_strided_slice %109 {offsets = [0, 128], sizes = [8, 128], strides = [1, 1]} : vector<8x512xf32> to vector<8x128xf32>
    %117 = arith.negf %116 : vector<8x128xf32>
    %118 = math.exp %117 : vector<8x128xf32>
    %cst_30 = arith.constant 1.000000e+00 : f32
    %119 = vector.broadcast %cst_30 : f32 to vector<8x128xf32>
    %120 = arith.addf %119, %118 : vector<8x128xf32>
    %121 = arith.divf %119, %120 : vector<8x128xf32>
    %122 = vector.extract_strided_slice %109 {offsets = [0, 256], sizes = [8, 128], strides = [1, 1]} : vector<8x512xf32> to vector<8x128xf32>
    %123 = math.tanh %122 : vector<8x128xf32>
    %124 = vector.extract_strided_slice %109 {offsets = [0, 384], sizes = [8, 128], strides = [1, 1]} : vector<8x512xf32> to vector<8x128xf32>
    %125 = arith.negf %124 : vector<8x128xf32>
    %126 = math.exp %125 : vector<8x128xf32>
    %cst_31 = arith.constant 1.000000e+00 : f32
    %127 = vector.broadcast %cst_31 : f32 to vector<8x128xf32>
    %128 = arith.addf %127, %126 : vector<8x128xf32>
    %129 = arith.divf %127, %128 : vector<8x128xf32>
    %130 = arith.mulf %121, %101 : vector<8x128xf32>
    %131 = arith.mulf %115, %123 : vector<8x128xf32>
    %132 = arith.addf %130, %131 : vector<8x128xf32>
    %133 = math.tanh %132 : vector<8x128xf32>
    %134 = arith.mulf %129, %133 : vector<8x128xf32>
    %135 = vector.extract_strided_slice %8 {offsets = [0, 4, 0], sizes = [8, 1, 512], strides = [1, 1, 1]} : vector<8x8x512xf32> to vector<8x1x512xf32>
    %136 = vector.shape_cast %135 : vector<8x1x512xf32> to vector<8x512xf32>
    %137 = arith.truncf %134 : vector<8x128xf32> to vector<8x128xbf16>
    %c0_32 = arith.constant 0 : index
    %c0_33 = arith.constant 0 : index
    %138 = vector.load %arg4[%c0_32, %c0_33] : memref<128x512xbf16, #tpu.memory_space<vmem>>, vector<128x512xbf16>
    %cst_34 = arith.constant dense<0.000000e+00> : vector<8x512xf32>
    %139 = tpu.matmul %137, %138, %cst_34 {dimension_numbers = #tpu.dot_dimension_numbers<[1], [0], [0], [1], [0, 0, 1, 1], [], []>} : vector<8x128xbf16>, vector<128x512xbf16>, vector<8x512xf32> -> vector<8x512xf32>
    %140 = arith.addf %136, %139 : vector<8x512xf32>
    %141 = vector.extract_strided_slice %140 {offsets = [0, 0], sizes = [8, 128], strides = [1, 1]} : vector<8x512xf32> to vector<8x128xf32>
    %142 = arith.negf %141 : vector<8x128xf32>
    %143 = math.exp %142 : vector<8x128xf32>
    %cst_35 = arith.constant 1.000000e+00 : f32
    %144 = vector.broadcast %cst_35 : f32 to vector<8x128xf32>
    %145 = arith.addf %144, %143 : vector<8x128xf32>
    %146 = arith.divf %144, %145 : vector<8x128xf32>
    %147 = vector.extract_strided_slice %140 {offsets = [0, 128], sizes = [8, 128], strides = [1, 1]} : vector<8x512xf32> to vector<8x128xf32>
    %148 = arith.negf %147 : vector<8x128xf32>
    %149 = math.exp %148 : vector<8x128xf32>
    %cst_36 = arith.constant 1.000000e+00 : f32
    %150 = vector.broadcast %cst_36 : f32 to vector<8x128xf32>
    %151 = arith.addf %150, %149 : vector<8x128xf32>
    %152 = arith.divf %150, %151 : vector<8x128xf32>
    %153 = vector.extract_strided_slice %140 {offsets = [0, 256], sizes = [8, 128], strides = [1, 1]} : vector<8x512xf32> to vector<8x128xf32>
    %154 = math.tanh %153 : vector<8x128xf32>
    %155 = vector.extract_strided_slice %140 {offsets = [0, 384], sizes = [8, 128], strides = [1, 1]} : vector<8x512xf32> to vector<8x128xf32>
    %156 = arith.negf %155 : vector<8x128xf32>
    %157 = math.exp %156 : vector<8x128xf32>
    %cst_37 = arith.constant 1.000000e+00 : f32
    %158 = vector.broadcast %cst_37 : f32 to vector<8x128xf32>
    %159 = arith.addf %158, %157 : vector<8x128xf32>
    %160 = arith.divf %158, %159 : vector<8x128xf32>
    %161 = arith.mulf %152, %132 : vector<8x128xf32>
    %162 = arith.mulf %146, %154 : vector<8x128xf32>
    %163 = arith.addf %161, %162 : vector<8x128xf32>
    %164 = math.tanh %163 : vector<8x128xf32>
    %165 = arith.mulf %160, %164 : vector<8x128xf32>
    %166 = vector.extract_strided_slice %8 {offsets = [0, 5, 0], sizes = [8, 1, 512], strides = [1, 1, 1]} : vector<8x8x512xf32> to vector<8x1x512xf32>
    %167 = vector.shape_cast %166 : vector<8x1x512xf32> to vector<8x512xf32>
    %168 = arith.truncf %165 : vector<8x128xf32> to vector<8x128xbf16>
    %c0_38 = arith.constant 0 : index
    %c0_39 = arith.constant 0 : index
    %169 = vector.load %arg4[%c0_38, %c0_39] : memref<128x512xbf16, #tpu.memory_space<vmem>>, vector<128x512xbf16>
    %cst_40 = arith.constant dense<0.000000e+00> : vector<8x512xf32>
    %170 = tpu.matmul %168, %169, %cst_40 {dimension_numbers = #tpu.dot_dimension_numbers<[1], [0], [0], [1], [0, 0, 1, 1], [], []>} : vector<8x128xbf16>, vector<128x512xbf16>, vector<8x512xf32> -> vector<8x512xf32>
    %171 = arith.addf %167, %170 : vector<8x512xf32>
    %172 = vector.extract_strided_slice %171 {offsets = [0, 0], sizes = [8, 128], strides = [1, 1]} : vector<8x512xf32> to vector<8x128xf32>
    %173 = arith.negf %172 : vector<8x128xf32>
    %174 = math.exp %173 : vector<8x128xf32>
    %cst_41 = arith.constant 1.000000e+00 : f32
    %175 = vector.broadcast %cst_41 : f32 to vector<8x128xf32>
    %176 = arith.addf %175, %174 : vector<8x128xf32>
    %177 = arith.divf %175, %176 : vector<8x128xf32>
    %178 = vector.extract_strided_slice %171 {offsets = [0, 128], sizes = [8, 128], strides = [1, 1]} : vector<8x512xf32> to vector<8x128xf32>
    %179 = arith.negf %178 : vector<8x128xf32>
    %180 = math.exp %179 : vector<8x128xf32>
    %cst_42 = arith.constant 1.000000e+00 : f32
    %181 = vector.broadcast %cst_42 : f32 to vector<8x128xf32>
    %182 = arith.addf %181, %180 : vector<8x128xf32>
    %183 = arith.divf %181, %182 : vector<8x128xf32>
    %184 = vector.extract_strided_slice %171 {offsets = [0, 256], sizes = [8, 128], strides = [1, 1]} : vector<8x512xf32> to vector<8x128xf32>
    %185 = math.tanh %184 : vector<8x128xf32>
    %186 = vector.extract_strided_slice %171 {offsets = [0, 384], sizes = [8, 128], strides = [1, 1]} : vector<8x512xf32> to vector<8x128xf32>
    %187 = arith.negf %186 : vector<8x128xf32>
    %188 = math.exp %187 : vector<8x128xf32>
    %cst_43 = arith.constant 1.000000e+00 : f32
    %189 = vector.broadcast %cst_43 : f32 to vector<8x128xf32>
    %190 = arith.addf %189, %188 : vector<8x128xf32>
    %191 = arith.divf %189, %190 : vector<8x128xf32>
    %192 = arith.mulf %183, %163 : vector<8x128xf32>
    %193 = arith.mulf %177, %185 : vector<8x128xf32>
    %194 = arith.addf %192, %193 : vector<8x128xf32>
    %195 = math.tanh %194 : vector<8x128xf32>
    %196 = arith.mulf %191, %195 : vector<8x128xf32>
    %197 = vector.extract_strided_slice %8 {offsets = [0, 6, 0], sizes = [8, 1, 512], strides = [1, 1, 1]} : vector<8x8x512xf32> to vector<8x1x512xf32>
    %198 = vector.shape_cast %197 : vector<8x1x512xf32> to vector<8x512xf32>
    %199 = arith.truncf %196 : vector<8x128xf32> to vector<8x128xbf16>
    %c0_44 = arith.constant 0 : index
    %c0_45 = arith.constant 0 : index
    %200 = vector.load %arg4[%c0_44, %c0_45] : memref<128x512xbf16, #tpu.memory_space<vmem>>, vector<128x512xbf16>
    %cst_46 = arith.constant dense<0.000000e+00> : vector<8x512xf32>
    %201 = tpu.matmul %199, %200, %cst_46 {dimension_numbers = #tpu.dot_dimension_numbers<[1], [0], [0], [1], [0, 0, 1, 1], [], []>} : vector<8x128xbf16>, vector<128x512xbf16>, vector<8x512xf32> -> vector<8x512xf32>
    %202 = arith.addf %198, %201 : vector<8x512xf32>
    %203 = vector.extract_strided_slice %202 {offsets = [0, 0], sizes = [8, 128], strides = [1, 1]} : vector<8x512xf32> to vector<8x128xf32>
    %204 = arith.negf %203 : vector<8x128xf32>
    %205 = math.exp %204 : vector<8x128xf32>
    %cst_47 = arith.constant 1.000000e+00 : f32
    %206 = vector.broadcast %cst_47 : f32 to vector<8x128xf32>
    %207 = arith.addf %206, %205 : vector<8x128xf32>
    %208 = arith.divf %206, %207 : vector<8x128xf32>
    %209 = vector.extract_strided_slice %202 {offsets = [0, 128], sizes = [8, 128], strides = [1, 1]} : vector<8x512xf32> to vector<8x128xf32>
    %210 = arith.negf %209 : vector<8x128xf32>
    %211 = math.exp %210 : vector<8x128xf32>
    %cst_48 = arith.constant 1.000000e+00 : f32
    %212 = vector.broadcast %cst_48 : f32 to vector<8x128xf32>
    %213 = arith.addf %212, %211 : vector<8x128xf32>
    %214 = arith.divf %212, %213 : vector<8x128xf32>
    %215 = vector.extract_strided_slice %202 {offsets = [0, 256], sizes = [8, 128], strides = [1, 1]} : vector<8x512xf32> to vector<8x128xf32>
    %216 = math.tanh %215 : vector<8x128xf32>
    %217 = vector.extract_strided_slice %202 {offsets = [0, 384], sizes = [8, 128], strides = [1, 1]} : vector<8x512xf32> to vector<8x128xf32>
    %218 = arith.negf %217 : vector<8x128xf32>
    %219 = math.exp %218 : vector<8x128xf32>
    %cst_49 = arith.constant 1.000000e+00 : f32
    %220 = vector.broadcast %cst_49 : f32 to vector<8x128xf32>
    %221 = arith.addf %220, %219 : vector<8x128xf32>
    %222 = arith.divf %220, %221 : vector<8x128xf32>
    %223 = arith.mulf %214, %194 : vector<8x128xf32>
    %224 = arith.mulf %208, %216 : vector<8x128xf32>
    %225 = arith.addf %223, %224 : vector<8x128xf32>
    %226 = math.tanh %225 : vector<8x128xf32>
    %227 = arith.mulf %222, %226 : vector<8x128xf32>
    %228 = vector.extract_strided_slice %8 {offsets = [0, 7, 0], sizes = [8, 1, 512], strides = [1, 1, 1]} : vector<8x8x512xf32> to vector<8x1x512xf32>
    %229 = vector.shape_cast %228 : vector<8x1x512xf32> to vector<8x512xf32>
    %230 = arith.truncf %227 : vector<8x128xf32> to vector<8x128xbf16>
    %c0_50 = arith.constant 0 : index
    %c0_51 = arith.constant 0 : index
    %231 = vector.load %arg4[%c0_50, %c0_51] : memref<128x512xbf16, #tpu.memory_space<vmem>>, vector<128x512xbf16>
    %cst_52 = arith.constant dense<0.000000e+00> : vector<8x512xf32>
    %232 = tpu.matmul %230, %231, %cst_52 {dimension_numbers = #tpu.dot_dimension_numbers<[1], [0], [0], [1], [0, 0, 1, 1], [], []>} : vector<8x128xbf16>, vector<128x512xbf16>, vector<8x512xf32> -> vector<8x512xf32>
    %233 = arith.addf %229, %232 : vector<8x512xf32>
    %234 = vector.extract_strided_slice %233 {offsets = [0, 0], sizes = [8, 128], strides = [1, 1]} : vector<8x512xf32> to vector<8x128xf32>
    %235 = arith.negf %234 : vector<8x128xf32>
    %236 = math.exp %235 : vector<8x128xf32>
    %cst_53 = arith.constant 1.000000e+00 : f32
    %237 = vector.broadcast %cst_53 : f32 to vector<8x128xf32>
    %238 = arith.addf %237, %236 : vector<8x128xf32>
    %239 = arith.divf %237, %238 : vector<8x128xf32>
    %240 = vector.extract_strided_slice %233 {offsets = [0, 128], sizes = [8, 128], strides = [1, 1]} : vector<8x512xf32> to vector<8x128xf32>
    %241 = arith.negf %240 : vector<8x128xf32>
    %242 = math.exp %241 : vector<8x128xf32>
    %cst_54 = arith.constant 1.000000e+00 : f32
    %243 = vector.broadcast %cst_54 : f32 to vector<8x128xf32>
    %244 = arith.addf %243, %242 : vector<8x128xf32>
    %245 = arith.divf %243, %244 : vector<8x128xf32>
    %246 = vector.extract_strided_slice %233 {offsets = [0, 256], sizes = [8, 128], strides = [1, 1]} : vector<8x512xf32> to vector<8x128xf32>
    %247 = math.tanh %246 : vector<8x128xf32>
    %248 = vector.extract_strided_slice %233 {offsets = [0, 384], sizes = [8, 128], strides = [1, 1]} : vector<8x512xf32> to vector<8x128xf32>
    %249 = arith.negf %248 : vector<8x128xf32>
    %250 = math.exp %249 : vector<8x128xf32>
    %cst_55 = arith.constant 1.000000e+00 : f32
    %251 = vector.broadcast %cst_55 : f32 to vector<8x128xf32>
    %252 = arith.addf %251, %250 : vector<8x128xf32>
    %253 = arith.divf %251, %252 : vector<8x128xf32>
    %254 = arith.mulf %245, %225 : vector<8x128xf32>
    %255 = arith.mulf %239, %247 : vector<8x128xf32>
    %256 = arith.addf %254, %255 : vector<8x128xf32>
    %257 = math.tanh %256 : vector<8x128xf32>
    %258 = arith.mulf %253, %257 : vector<8x128xf32>
    %c0_56 = arith.constant 0 : index
    %c0_57 = arith.constant 0 : index
    %259 = vector.load %arg8[%c0_56, %c0_57] : memref<1x128xf32, #tpu.memory_space<vmem>>, vector<1x128xf32>
    %260 = vector.broadcast %259 : vector<1x128xf32> to vector<8x128xf32>
    %261 = arith.mulf %258, %260 : vector<8x128xf32>
    %c0_58 = arith.constant 0 : index
    %c0_59 = arith.constant 0 : index
    %c0_60 = arith.constant 0 : index
    %262 = vector.load %arg1[%c0_58, %c0_59, %c0_60] : memref<8x16x128xf32, #tpu.memory_space<vmem>>, vector<8x16x128xf32>
    %263 = vector.shape_cast %262 : vector<8x16x128xf32> to vector<128x128xf32>
    %264 = arith.truncf %263 : vector<128x128xf32> to vector<128x128xbf16>
    %c0_61 = arith.constant 0 : index
    %c0_62 = arith.constant 0 : index
    %265 = vector.load %arg6[%c0_61, %c0_62] : memref<128x128xbf16, #tpu.memory_space<vmem>>, vector<128x128xbf16>
    %cst_63 = arith.constant dense<0.000000e+00> : vector<128x128xf32>
    %266 = tpu.matmul %264, %265, %cst_63 {dimension_numbers = #tpu.dot_dimension_numbers<[1], [0], [0], [1], [0, 0, 1, 1], [], []>} : vector<128x128xbf16>, vector<128x128xbf16>, vector<128x128xf32> -> vector<128x128xf32>
    %c0_64 = arith.constant 0 : index
    %c0_65 = arith.constant 0 : index
    %267 = vector.load %arg7[%c0_64, %c0_65] : memref<1x128xf32, #tpu.memory_space<vmem>>, vector<1x128xf32>
    %268 = vector.broadcast %267 : vector<1x128xf32> to vector<128x128xf32>
    %269 = arith.addf %266, %268 : vector<128x128xf32>
    %cst_66 = arith.constant 0.000000e+00 : f32
    %270 = vector.broadcast %cst_66 : f32 to vector<128x128xf32>
    %271 = arith.maximumf %269, %270 : vector<128x128xf32>
    %272 = vector.shape_cast %271 : vector<128x128xf32> to vector<8x16x128xf32>
    %273 = vector.shape_cast %261 : vector<8x128xf32> to vector<8x1x128xf32>
    %274 = vector.broadcast %273 : vector<8x1x128xf32> to vector<8x16x128xf32>
    %275 = arith.mulf %272, %274 : vector<8x16x128xf32>
    %cst_67 = arith.constant dense<0.000000e+00> : vector<8x16xf32>
    %276 = vector.multi_reduction <add>, %275, %cst_67 [2] : vector<8x16x128xf32> to vector<8x16xf32>
    %cst_68 = arith.constant dense<0xFF800000> : vector<8xf32>
    %277 = vector.multi_reduction <maximumf>, %276, %cst_68 [1] : vector<8x16xf32> to vector<8xf32>
    %278 = vector.shape_cast %277 : vector<8xf32> to vector<8x1xf32>
    %279 = vector.broadcast %278 : vector<8x1xf32> to vector<8x16xf32>
    %280 = arith.subf %276, %279 : vector<8x16xf32>
    %281 = math.exp %280 : vector<8x16xf32>
    %cst_69 = arith.constant dense<0.000000e+00> : vector<8xf32>
    %282 = vector.multi_reduction <add>, %281, %cst_69 [1] : vector<8x16xf32> to vector<8xf32>
    %283 = vector.shape_cast %282 : vector<8xf32> to vector<8x1xf32>
    %284 = tpu.reciprocal %283 : vector<8x1xf32> -> vector<8x1xf32>
    %285 = vector.broadcast %284 : vector<8x1xf32> to vector<8x16xf32>
    %286 = arith.mulf %281, %285 : vector<8x16xf32>
    %c0_70 = arith.constant 0 : index
    %c0_71 = arith.constant 0 : index
    %287 = vector.load %arg9[%c0_70, %c0_71] : memref<8x16xf32, #tpu.memory_space<vmem>>, vector<8x16xf32>
    tpu.vector_store %arg9[%c0_70, %c0_71], %286 {strides = array<i32>} : memref<8x16xf32, #tpu.memory_space<vmem>>, vector<8x16xf32>,
    return
  }
  func.func @transform_0(%arg0: i32) -> (i32, i32, i32) {
    %c0_i32 = arith.constant 0 : i32
    %c0_i32_0 = arith.constant 0 : i32
    %c0_i32_1 = arith.constant 0 : i32
    return %arg0, %c0_i32, %c0_i32_0 : i32, i32, i32
  }
  func.func @transform_1(%arg0: i32) -> (i32, i32, i32) {
    %c0_i32 = arith.constant 0 : i32
    %c0_i32_0 = arith.constant 0 : i32
    %c0_i32_1 = arith.constant 0 : i32
    return %arg0, %c0_i32, %c0_i32_0 : i32, i32, i32
  }
  func.func @transform_2(%arg0: i32) -> (i32, i32) {
    %c0_i32 = arith.constant 0 : i32
    %c0_i32_0 = arith.constant 0 : i32
    %c0_i32_1 = arith.constant 0 : i32
    return %c0_i32, %c0_i32_0 : i32, i32
  }
  func.func @transform_3(%arg0: i32) -> (i32, i32) {
    %c0_i32 = arith.constant 0 : i32
    %c0_i32_0 = arith.constant 0 : i32
    %c0_i32_1 = arith.constant 0 : i32
    return %c0_i32, %c0_i32_0 : i32, i32
  }
  func.func @transform_4(%arg0: i32) -> (i32, i32) {
    %c0_i32 = arith.constant 0 : i32
    %c0_i32_0 = arith.constant 0 : i32
    %c0_i32_1 = arith.constant 0 : i32
    return %c0_i32, %c0_i32_0 : i32, i32
  }
  func.func @transform_5(%arg0: i32) -> (i32, i32) {
    %c0_i32 = arith.constant 0 : i32
    %c0_i32_0 = arith.constant 0 : i32
    %c0_i32_1 = arith.constant 0 : i32
    return %c0_i32, %c0_i32_0 : i32, i32
  }
  func.func @transform_6(%arg0: i32) -> (i32, i32) {
    %c0_i32 = arith.constant 0 : i32
    %c0_i32_0 = arith.constant 0 : i32
    %c0_i32_1 = arith.constant 0 : i32
    return %c0_i32, %c0_i32_0 : i32, i32
  }
  func.func @transform_7(%arg0: i32) -> (i32, i32) {
    %c0_i32 = arith.constant 0 : i32
    %c0_i32_0 = arith.constant 0 : i32
    %c0_i32_1 = arith.constant 0 : i32
    return %c0_i32, %c0_i32_0 : i32, i32
  }
  func.func @transform_8(%arg0: i32) -> (i32, i32) {
    %c0_i32 = arith.constant 0 : i32
    %c0_i32_0 = arith.constant 0 : i32
    return %arg0, %c0_i32 : i32, i32
  }
}

</mosaic_0001>

<bundles_post_ra>
// kernel: attention_forward.1
= control target key start
LH: loop header
LB: loop body
LE: loop exit
PB: predicated region body
PF: predicated region fallthrough
CT: control target
= control target key end

     0   :  { %v9059_v2 = vmov 0   ;;  %s9049_s0 = inlined_call_operand.vmem [shape: f32[8,16,128], index: 0, kind: input, shape index: {}]   ;;  %s9050_s1 = inlined_call_operand.vmem [shape: f32[8,8,128], index: 1, kind: input, shape index: {}]   ;;  %s9051_s2 = inlined_call_operand.vmem [shape: bf16[128,512], index: 2, kind: input, shape index: {}]   ;;  %s9052_s3 = inlined_call_operand.vmem [shape: bf16[128,512], index: 3, kind: input, shape index: {}]   ;;  %s9053_s4 = inlined_call_operand.vmem [shape: f32[1,512], index: 4, kind: input, shape index: {}]   ;;  %s9054_s5 = inlined_call_operand.vmem [shape: bf16[128,128], index: 5, kind: input, shape index: {}]   ;;  %s9055_s6 = inlined_call_operand.vmem [shape: f32[1,128], index: 6, kind: input, shape index: {}]   ;;  %s9056_s7 = inlined_call_operand.vmem [shape: f32[1,128], index: 7, kind: input, shape index: {}]   ;;  %s9057_s8 = inlined_call_operand.hbm [shape: f32[8,16], index: 8, kind: output, shape index: {}]  }
   0x1   :  { %v5188_v0 = vld [vmem:[%s9051_s2 + $0x4] ss:$16 sps:$4 sm:$0xff]   ;;  %v5190_v1 = vld [vmem:[%s9051_s2] ss:$16 sps:$4 sm:$0xff]   ;;  %289 = vmatprep.mubr.bf16.mxu1 %v9059_v2  ;;  %627 = vmatprep.mubr.bf16.mxu0 %v9059_v2  ;;  %v32_v33 = vld [vmem:[%s9050_s1 + $0x8] sm:$0xff] }
   0x2   :  { %257 = vmatprep.subr.bf16.mxu1 %v5188_v0  ;;  %v6527_v3 = vld [vmem:[%s9052_s3 + $0x4] ss:$16 sps:$4 sm:$0xff]   ;;  %v6532_v4 = vld [vmem:[%s9052_s3] ss:$16 sps:$4 sm:$0xff]   ;;  %5187 = vset.pattern.permute.xlu0 %v9059_v2  ;;  %v5238_v34 = vld [vmem:[%s9051_s2 + $0xc] ss:$16 sps:$4 sm:$0xff]  }
   0x3   :  { %258 = vmatpush1.bf16.msra.mxu1 %v5190_v1  ;;  %v5194_v5 = vld [vmem:[%s9051_s2 + $0x24] ss:$16 sps:$4 sm:$0xff]   ;;  %v5196_v6 = vld [vmem:[%s9051_s2 + $0x20] ss:$16 sps:$4 sm:$0xff]   ;;  %5186 = vset.pattern.permute.xlu1 %v9059_v2  ;;  %v5236_v37 = vld [vmem:[%s9051_s2 + $0x8] ss:$16 sps:$4 sm:$0xff]  }
   0x4   :  { %595 = vmatprep.subr.bf16.mxu0 %v6527_v3  ;;  %v6546_v7 = vld [vmem:[%s9052_s3 + $0x24] ss:$16 sps:$4 sm:$0xff]   ;;  %259 = vmatprep.subr.bf16.mxu1 %v5194_v5  ;;  %v6552_v8 = vld [vmem:[%s9052_s3 + $0x20] ss:$16 sps:$4 sm:$0xff]   ;;  %v5241_v38 = vld [vmem:[%s9051_s2 + $0x2c] ss:$16 sps:$4 sm:$0xff]  }
   0x5   :  { %596 = vmatpush1.bf16.msra.mxu0 %v6532_v4  ;;  %v5200_v9 = vld [vmem:[%s9051_s2 + $0x44] ss:$16 sps:$4 sm:$0xff]   ;;  %v5202_v10 = vld [vmem:[%s9051_s2 + $0x40] ss:$16 sps:$4 sm:$0xff]   ;;  %v5239_v39 = vld [vmem:[%s9051_s2 + $0x28] ss:$16 sps:$4 sm:$0xff]  }
   0x6   :  { %597 = vmatprep.subr.bf16.mxu0 %v6546_v7  ;;  %v6564_v11 = vld [vmem:[%s9052_s3 + $0x44] ss:$16 sps:$4 sm:$0xff]   ;;  %v6573_v13 = vld [vmem:[%s9052_s3 + $0x40] ss:$16 sps:$4 sm:$0xff]   ;;  %v34_v41 = vld [vmem:[%s9050_s1 + $0x18] sm:$0xff] }
   0x7   :  { %260 = vmatpush1.bf16.msra.mxu1 %v5196_v6  ;;  %v5206_v12 = vld [vmem:[%s9051_s2 + $0x64] ss:$16 sps:$4 sm:$0xff]   ;;  %v5208_v15 = vld [vmem:[%s9051_s2 + $0x60] ss:$16 sps:$4 sm:$0xff]   ;;  %v5244_v42 = vld [vmem:[%s9051_s2 + $0x4c] ss:$16 sps:$4 sm:$0xff]  }
   0x8   :  { %261 = vmatprep.subr.bf16.mxu1 %v5200_v9  ;;  %v6579_v14 = vld [vmem:[%s9052_s3 + $0x64] ss:$16 sps:$4 sm:$0xff]   ;;  %v6591_v17 = vld [vmem:[%s9052_s3 + $0x60] ss:$16 sps:$4 sm:$0xff]   ;;  %v5242_v44 = vld [vmem:[%s9051_s2 + $0x48] ss:$16 sps:$4 sm:$0xff]  }
   0x9   :  { %598 = vmatpush1.bf16.msra.mxu0 %v6552_v8  ;;  %v5212_v16 = vld [vmem:[%s9051_s2 + $0x84] ss:$16 sps:$4 sm:$0xff]   ;;  %v5214_v19 = vld [vmem:[%s9051_s2 + $0x80] ss:$16 sps:$4 sm:$0xff]   ;;  %v5247_v45 = vld [vmem:[%s9051_s2 + $0x6c] ss:$16 sps:$4 sm:$0xff]  }
   0xa   :  { %599 = vmatprep.subr.bf16.mxu0 %v6564_v11  ;;  %v6597_v18 = vld [vmem:[%s9052_s3 + $0x84] ss:$16 sps:$4 sm:$0xff]   ;;  %v6609_v21 = vld [vmem:[%s9052_s3 + $0x80] ss:$16 sps:$4 sm:$0xff]   ;;  %v5245_v46 = vld [vmem:[%s9051_s2 + $0x68] ss:$16 sps:$4 sm:$0xff]  }
   0xb   :  { %262 = vmatpush1.bf16.msra.mxu1 %v5202_v10  ;;  %v5218_v20 = vld [vmem:[%s9051_s2 + $0xa4] ss:$16 sps:$4 sm:$0xff]   ;;  %v5220_v23 = vld [vmem:[%s9051_s2 + $0xa0] ss:$16 sps:$4 sm:$0xff]   ;;  %v36_v48 = vld [vmem:[%s9050_s1 + $0x28] sm:$0xff] }
   0xc   :  { %263 = vmatprep.subr.bf16.mxu1 %v5206_v12  ;;  %v6615_v22 = vld [vmem:[%s9052_s3 + $0xa4] ss:$16 sps:$4 sm:$0xff]   ;;  %v6627_v25 = vld [vmem:[%s9052_s3 + $0xa0] ss:$16 sps:$4 sm:$0xff]   ;;  %v5250_v49 = vld [vmem:[%s9051_s2 + $0x8c] ss:$16 sps:$4 sm:$0xff]  }
   0xd   :  { %600 = vmatpush1.bf16.msra.mxu0 %v6573_v13  ;;  %v5224_v24 = vld [vmem:[%s9051_s2 + $0xc4] ss:$16 sps:$4 sm:$0xff]   ;;  %v5226_v27 = vld [vmem:[%s9051_s2 + $0xc0] ss:$16 sps:$4 sm:$0xff]   ;;  %v5248_v50 = vld [vmem:[%s9051_s2 + $0x88] ss:$16 sps:$4 sm:$0xff]  }
   0xe   :  { %601 = vmatprep.subr.bf16.mxu0 %v6579_v14  ;;  %v6633_v26 = vld [vmem:[%s9052_s3 + $0xc4] ss:$16 sps:$4 sm:$0xff]   ;;  %v6645_v29 = vld [vmem:[%s9052_s3 + $0xc0] ss:$16 sps:$4 sm:$0xff]   ;;  %v5253_v52 = vld [vmem:[%s9051_s2 + $0xac] ss:$16 sps:$4 sm:$0xff]  }
   0xf   :  { %264 = vmatpush1.bf16.msra.mxu1 %v5208_v15  ;;  %v5230_v28 = vld [vmem:[%s9051_s2 + $0xe4] ss:$16 sps:$4 sm:$0xff]   ;;  %v5232_v30 = vld [vmem:[%s9051_s2 + $0xe0] ss:$16 sps:$4 sm:$0xff]   ;;  %v5251_v53 = vld [vmem:[%s9051_s2 + $0xa8] ss:$16 sps:$4 sm:$0xff]  }
  0x10   :  { %265 = vmatprep.subr.bf16.mxu1 %v5212_v16  ;;  %v6654_v31 = vld [vmem:[%s9052_s3 + $0xe4] ss:$16 sps:$4 sm:$0xff]   ;;  %v6669_v35 = vld [vmem:[%s9052_s3 + $0xe0] ss:$16 sps:$4 sm:$0xff]   ;;  %v38_v55 = vld [vmem:[%s9050_s1 + $0x38] sm:$0xff] }
  0x11   :  { %602 = vmatpush1.bf16.msra.mxu0 %v6591_v17  ;;  %v31_v32 = vld [vmem:[%s9050_s1] sm:$0xff]  ;;  %v33_v40 = vld [vmem:[%s9050_s1 + $0x10] sm:$0xff] }
  0x12   :  { %603 = vmatprep.subr.bf16.mxu0 %v6597_v18  ;;  %v6672_v36 = vpack.c.bf16 %v32_v33, %v31_v32  ;;  %v6699_v43 = vpack.c.bf16 %v34_v41, %v33_v40  ;;  %v35_v47 = vld [vmem:[%s9050_s1 + $0x20] sm:$0xff]  ;;  %v37_v54 = vld [vmem:[%s9050_s1 + $0x30] sm:$0xff] }
  0x13   :  { %266 = vmatpush1.bf16.msra.mxu1 %v5214_v19  ;;  %v41_v51 = vpack.c.bf16 %v36_v48, %v35_v47 }
  0x14   :  { %267 = vmatprep.subr.bf16.mxu1 %v5218_v20 }
  0x15   :  { %604 = vmatpush1.bf16.msra.mxu0 %v6609_v21 }
  0x16   :  { %605 = vmatprep.subr.bf16.mxu0 %v6615_v22 }
  0x17   :  { %268 = vmatpush1.bf16.msra.mxu1 %v5220_v23 }
  0x18   :  { %269 = vmatprep.subr.bf16.mxu1 %v5224_v24 }
  0x19   :  { %606 = vmatpush1.bf16.msra.mxu0 %v6627_v25 }
  0x1a   :  { %607 = vmatprep.subr.bf16.mxu0 %v6633_v26 }
  0x1b   :  { %270 = vmatpush1.bf16.msra.mxu1 %v5226_v27 }
  0x1c   :  { %271 = vmatprep.subr.bf16.mxu1 %v5230_v28 }
  0x1d   :  { %608 = vmatpush1.bf16.msra.mxu0 %v6645_v29 }
  0x1e   :  { %609 = vmatprep.subr.bf16.mxu0 %v6654_v31 }
  0x1f   :  { %272 = vmatpush1.bf16.msra.mxu1 %v5232_v30 }
  0x20   :  { %330 = vmatprep.subr.bf16.mxu1 %v5238_v34 }
  0x21   :  { %610 = vmatpush1.bf16.msra.mxu0 %v6669_v35 }
  0x22   :  { %290 = vmatmul.mubr.bf16.vlgmr.msra.gmra.mrb[0].mxu1 %v6672_v36  ;;  %1012 = vmatprep.subr.bf16.mxu0 %v6527_v3 }
  0x23   :  { %331 = vmatpush1.bf16.msra.mxu1 %v5236_v37  ;;  %299 = vmatprep.mubr.bf16.mxu1 %v9059_v2 }
  0x24   :  { %628 = vmatmul.mubr.bf16.vlgmr.msra.gmra.mrb[0].mxu0 %v9059_v2  ;;  %332 = vmatprep.subr.bf16.mxu1 %v5241_v38 }
  0x25   :  { %1013 = vmatpush1.bf16.msra.mxu0 %v6532_v4  ;;  %1044 = vmatprep.mubr.bf16.mxu0 %v9059_v2 }
  0x26   :  { %1014 = vmatprep.subr.bf16.mxu0 %v6546_v7 }
  0x27   :  { %333 = vmatpush1.bf16.msra.mxu1 %v5239_v39 }
  0x28   :  { %334 = vmatprep.subr.bf16.mxu1 %v5244_v42 }
  0x29   :  { %1015 = vmatpush1.bf16.msra.mxu0 %v6552_v8 }
  0x2a   :  { %300 = vmatmul.mubr.bf16.gmra.mrb[4].mxu1 %v6699_v43  ;;  %1016 = vmatprep.subr.bf16.mxu0 %v6564_v11 }
  0x2b   :  { %335 = vmatpush1.bf16.msra.mxu1 %v5242_v44  ;;  %309 = vmatprep.mubr.bf16.mxu1 %v9059_v2 }
  0x2c   :  { %336 = vmatprep.subr.bf16.mxu1 %v5247_v45 }
  0x2d   :  { %1017 = vmatpush1.bf16.msra.mxu0 %v6573_v13 }
  0x2e   :  { %1018 = vmatprep.subr.bf16.mxu0 %v6579_v14 }
  0x2f   :  { %337 = vmatpush1.bf16.msra.mxu1 %v5245_v46 }
  0x30   :  { %338 = vmatprep.subr.bf16.mxu1 %v5250_v49 }
  0x31   :  { %1019 = vmatpush1.bf16.msra.mxu0 %v6591_v17 }
  0x32   :  { %310 = vmatmul.mubr.bf16.gmra.mrb[8].mxu1 %v41_v51  ;;  %1020 = vmatprep.subr.bf16.mxu0 %v6597_v18 }
  0x33   :  { %339 = vmatpush1.bf16.msra.mxu1 %v5248_v50  ;;  %319 = vmatprep.mubr.bf16.mxu1 %v9059_v2 }
  0x34   :  { %13 = vsyncpa [#allocation3], 0  ;;  %340 = vmatprep.subr.bf16.mxu1 %v5253_v52  ;;  %v5256_v56 = vld [vmem:[%s9051_s2 + $0xcc] ss:$16 sps:$4 sm:$0xff]   ;;  %v42_v57 = vpack.c.bf16 %v38_v55, %v37_v54  ;;  %v5254_v58 = vld [vmem:[%s9051_s2 + $0xc8] ss:$16 sps:$4 sm:$0xff]   ;;  %v9058_v20 = vlaneseq }
  0x35   :  { %1021 = vmatpush1.bf16.msra.mxu0 %v6609_v21  ;;  %v5259_v59 = vld [vmem:[%s9051_s2 + $0xec] ss:$16 sps:$4 sm:$0xff]   ;;  %v5257_v60 = vld [vmem:[%s9051_s2 + $0xe8] ss:$16 sps:$4 sm:$0xff]   ;;  %vm990_vm0 = vcmask 1041409   ;;  %vm993_vm1 = vcmask 1042434  }
  0x36   :  { %1022 = vmatprep.subr.bf16.mxu0 %v6615_v22  ;;  %v6764_v61 = vld [vmem:[%s9052_s3 + $0xc] ss:$16 sps:$4 sm:$0xff]   ;;  %v6771_v62 = vld [vmem:[%s9052_s3 + $0x8] ss:$16 sps:$4 sm:$0xff]   ;;  %v6891_v23 = vshrl.u32 %v9058_v20, 7  ;;  %vm996_vm2 = vcmask 1043459  }
  0x37   :  { %341 = vmatpush1.bf16.msra.mxu1 %v5251_v53  ;;  %v6777_v63 = vld [vmem:[%s9052_s3 + $0x2c] ss:$16 sps:$4 sm:$0xff]   ;;  %v6786_v0 = vld [vmem:[%s9052_s3 + $0x28] ss:$16 sps:$4 sm:$0xff]   ;;  %vm999_vm3 = vcmask 1044484   ;;  %vm1002_vm4 = vcmask 1045509  }
  0x38   :  { %342 = vmatprep.subr.bf16.mxu1 %v5256_v56  ;;  %v6793_v1 = vld [vmem:[%s9052_s3 + $0x4c] ss:$16 sps:$4 sm:$0xff]   ;;  %v6812_v5 = vld [vmem:[%s9052_s3 + $0x68] ss:$16 sps:$4 sm:$0xff]   ;;  %9139 = vst [vmem:[#allocation5_spill] sm:$0xff] %v6891_v23  ;;  %v6894_v28 = vsub.s32 0, %v6891_v23 }
  0x39   :  { %1023 = vmatpush1.bf16.msra.mxu0 %v6627_v25  ;;  %v6805_v4 = vld [vmem:[%s9052_s3 + $0x6c] ss:$16 sps:$4 sm:$0xff]   ;;  %v6825_v7 = vld [vmem:[%s9052_s3 + $0x88] ss:$16 sps:$4 sm:$0xff]   ;;  %v6902_v30 = vsub.s32 1, %v6891_v23  ;;  %vm1005_vm5 = vcmask 1046534  }
  0x3a   :  { %320 = vmatmul.mubr.bf16.gmra.mrb[12].mxu1 %v42_v57  ;;  %1024 = vmatprep.subr.bf16.mxu0 %v6633_v26  ;;  %v6819_v6 = vld [vmem:[%s9052_s3 + $0x8c] ss:$16 sps:$4 sm:$0xff]   ;;  %v6837_v9 = vld [vmem:[%s9052_s3 + $0xa8] ss:$16 sps:$4 sm:$0xff]   ;;  %9140 = vst [vmem:[#allocation6_spill] sm:$0xff] %v6894_v28  ;;  %vm1008_vm6 = vcmask 1047559  }
  0x3b   :  { %343 = vmatpush1.bf16.msra.mxu1 %v5254_v58  ;;  %362 = vmatprep.mubr.bf16.mxu1 %v9059_v2  ;;  %v6831_v8 = vld [vmem:[%s9052_s3 + $0xac] ss:$16 sps:$4 sm:$0xff]   ;;  %v6850_v11 = vld [vmem:[%s9052_s3 + $0xc8] ss:$16 sps:$4 sm:$0xff]   ;;  %9141 = vst [vmem:[#allocation7_spill] sm:$0xff] %v6902_v30  ;;  %vm4340_vm7 = vcmask 130112  }
  0x3c   :  { %344 = vmatprep.subr.bf16.mxu1 %v5259_v59  ;;  %v6844_v10 = vld [vmem:[%s9052_s3 + $0xcc] ss:$16 sps:$4 sm:$0xff]   ;;  %v6862_v13 = vld [vmem:[%s9052_s3 + $0xe8] ss:$16 sps:$4 sm:$0xff]   ;;  %vm4413_vm8 = vcmask 130048  }
  0x3d   :  { %1025 = vmatpush1.bf16.msra.mxu0 %v6645_v29  ;;  %v6856_v12 = vld [vmem:[%s9052_s3 + $0xec] ss:$16 sps:$4 sm:$0xff]   ;;  %v6899_v29 = vld [vmem:[%s9053_s4] sm:$0xf] }
  0x3e   :  { %1026 = vmatprep.subr.bf16.mxu0 %v6654_v31  ;;  %v80_v31 = vrot.slane %v6899_v29, %v6894_v28  ;;  %v6908_v34 = vrot.slane %v6899_v29, %v6902_v30 }
  0x3f   :  { %345 = vmatpush1.bf16.msra.mxu1 %v5257_v60 }
  0x40   :  { %636 = vmatprep.subr.bf16.mxu1 %v6764_v61 }
  0x41   :  { %1027 = vmatpush1.bf16.msra.mxu0 %v6669_v35 }
  0x42   :  { %363 = vmatmul.mubr.bf16.vlgmr.msra.gmra.mrb[16].mxu1 %v6672_v36  ;;  %1446 = vmatprep.subr.bf16.mxu0 %v6527_v3  ;;  %v6799_v3 = vld [vmem:[%s9052_s3 + $0x48] ss:$16 sps:$4 sm:$0xff]  }
  0x43   :  { %637 = vmatpush1.bf16.msra.mxu1 %v6771_v62  ;;  %372 = vmatprep.mubr.bf16.mxu1 %v9059_v2 }
  0x44   :  { %638 = vmatprep.subr.bf16.mxu1 %v6777_v63 }
  0x47   :  { %639 = vmatpush1.bf16.msra.mxu1 %v6786_v0 }
  0x48   :  { %640 = vmatprep.subr.bf16.mxu1 %v6793_v1 }
  0x4a   :  { %373 = vmatmul.mubr.bf16.gmra.mrb[20].mxu1 %v6699_v43 }
  0x4b   :  { %641 = vmatpush1.bf16.msra.mxu1 %v6799_v3  ;;  %382 = vmatprep.mubr.bf16.mxu1 %v9059_v2 }
  0x4c   :  { %642 = vmatprep.subr.bf16.mxu1 %v6805_v4 }
  0x4f   :  { %643 = vmatpush1.bf16.msra.mxu1 %v6812_v5 }
  0x50   :  { %644 = vmatprep.subr.bf16.mxu1 %v6819_v6 }
  0x52   :  { %383 = vmatmul.mubr.bf16.gmra.mrb[24].mxu1 %v41_v51 }
  0x53   :  { %645 = vmatpush1.bf16.msra.mxu1 %v6825_v7  ;;  %392 = vmatprep.mubr.bf16.mxu1 %v9059_v2 }
  0x54   :  { %646 = vmatprep.subr.bf16.mxu1 %v6831_v8 }
  0x57   :  { %647 = vmatpush1.bf16.msra.mxu1 %v6837_v9 }
  0x58   :  { %648 = vmatprep.subr.bf16.mxu1 %v6844_v10 }
  0x5a   :  { %393 = vmatmul.mubr.bf16.gmra.mrb[28].mxu1 %v42_v57 }
  0x5b   :  { %649 = vmatpush1.bf16.msra.mxu1 %v6850_v11  ;;  %668 = vmatprep.mubr.bf16.mxu1 %v9059_v2 }
  0x5c   :  { %650 = vmatprep.subr.bf16.mxu1 %v6856_v12 }
  0x5f   :  { %651 = vmatpush1.bf16.msra.mxu1 %v6862_v13 }
  0x60   :  { %1053 = vmatprep.subr.bf16.mxu1 %v6764_v61 }
  0x62   :  { %669 = vmatmul.mubr.bf16.vlgmr.msra.gmra.mrb[32].mxu1 %v9059_v2 }
  0x63   :  { %1054 = vmatpush1.bf16.msra.mxu1 %v6771_v62  ;;  %1085 = vmatprep.mubr.bf16.mxu1 %v9059_v2 }
  0x64   :  { %1055 = vmatprep.subr.bf16.mxu1 %v6777_v63 }
  0x67   :  { %1056 = vmatpush1.bf16.msra.mxu1 %v6786_v0 }
  0x68   :  { %1057 = vmatprep.subr.bf16.mxu1 %v6793_v1 }
  0x6b   :  { %1058 = vmatpush1.bf16.msra.mxu1 %v6799_v3 }
  0x6c   :  { %1059 = vmatprep.subr.bf16.mxu1 %v6805_v4 }
  0x6f   :  { %1060 = vmatpush1.bf16.msra.mxu1 %v6812_v5 }
  0x70   :  { %1061 = vmatprep.subr.bf16.mxu1 %v6819_v6 }
  0x73   :  { %1062 = vmatpush1.bf16.msra.mxu1 %v6825_v7 }
  0x74   :  { %1063 = vmatprep.subr.bf16.mxu1 %v6831_v8 }
  0x77   :  { %1064 = vmatpush1.bf16.msra.mxu1 %v6837_v9 }
  0x78   :  { %1065 = vmatprep.subr.bf16.mxu1 %v6844_v10 }
  0x7b   :  { %1066 = vmatpush1.bf16.msra.mxu1 %v6850_v11 }
  0x7c   :  { %1067 = vmatprep.subr.bf16.mxu1 %v6856_v12 }
  0x7f   :  { %1068 = vmatpush1.bf16.msra.mxu1 %v6862_v13 }
  0x80   :  { %1487 = vmatprep.subr.bf16.mxu1 %v6764_v61 }
  0xf5   :  { %v291_v14 = vpop.f32.mrb[0].mxu1 }
  0xf6   :  { %v293_v15 = vpop.f32.mrb[1].mxu1  ;;  %v6910_v37 = vadd.f32 %v291_v14, %v80_v31 }
  0xf7   :  { %v295_v16 = vpop.f32.mrb[2].mxu1  ;;  %v6886_v17 = vpop.f32.mrb[0].mxu0  ;;  %v6916_v40 = vadd.f32 %v293_v15, %v6908_v34 }
  0xf8   :  { %v297_v18 = vpop.f32.mrb[3].mxu1  ;;  %v6888_v19 = vpop.f32.mrb[1].mxu0  ;;  %9142 = vst [vmem:[#allocation8_spill] sm:$0xff] %v6910_v37  ;;  %v6912_v38 = vadd.f32 %v295_v16, %v80_v31  ;;  %v681_v39 = vrot.slane %v6886_v17, 1  ;;  %v685_v43 = vrot.slane %v6886_v17, 2  ;;  %v689_v44 = vrot.slane %v6886_v17, 3 }
  0xf9   :  { %v633_v21 = vpop.f32.mrb[2].mxu0  ;;  %9144 = vst [vmem:[#allocation10_spill] sm:$0xff] %v6916_v40  ;;  %v6919_v41 = vadd.f32 %v297_v18, %v6908_v34  ;;  %v682_v42 = vrot.slane %v6888_v19, 1  ;;  %v741_v45 = vadd.f32 %v6886_v17, %v6910_v37  ;;  %v693_v48 = vrot.slane %v6886_v17, 4 }
  0xfa   :  { %v634_v22 = vpop.f32.mrb[3].mxu0  ;;  %9143 = vst [vmem:[#allocation9_spill] sm:$0xff] %v6912_v38  ;;  %v745_v49 = vadd.f32 %v681_v39, %v6912_v38  ;;  %v686_v50 = vrot.slane %v6888_v19, 2  ;;  %v697_v53 = vrot.slane %v6886_v17, 5  ;;  %v701_v54 = vrot.slane %v6886_v17, 6 }
  0xfb   :  { %9145 = vst [vmem:[#allocation11_spill] sm:$0xff] %v6919_v41  ;;  %v742_v55 = vadd.f32 %v6888_v19, %v6916_v40  ;;  %v705_v58 = vrot.slane %v6886_v17, 7  ;;  %v690_v59 = vrot.slane %v6888_v19, 3  ;;  %v746_v60 = vadd.f32 %v682_v42, %v6919_v41 }
  0xfc   :  { %v4934_v16 = vmul.f32 -1.442695, %v741_v45  ;;  %v694_v18 = vrot.slane %v6888_v19, 4  ;;  %v702_v39 = vrot.slane %v6888_v19, 6  ;;  %v706_v20 = vrot.slane %v6888_v19, 7 }
  0xfd   :  { %v301_v24 = vpop.f32.mrb[4].mxu1 }
  0xfe   :  { %v303_v25 = vpop.f32.mrb[5].mxu1  ;;  %v6926_v46 = vadd.f32 %v301_v24, %v80_v31  ;;  %v4935_v24 = vmul.f32 -1.442695, %v745_v49  ;;  %5292 = vpow2.f32 %v4934_v16 }
  0xff   :  { %v305_v26 = vpop.f32.mrb[6].mxu1  ;;  %v6932_v51 = vadd.f32 %v303_v25, %v6908_v34  ;;  %v698_v25 = vrot.slane %v6888_v19, 5 }
 0x100   :  { %v307_v27 = vpop.f32.mrb[7].mxu1  ;;  %9146 = vst [vmem:[#allocation12_spill] sm:$0xff] %v6926_v46  ;;  %v6938_v56 = vadd.f32 %v305_v26, %v80_v31  ;;  %v749_v21 = vadd.f32 %v685_v43, %v6926_v46  ;;  %v4943_v43 = vmul.f32 -1.442695, %v746_v60  ;;  %5294 = vpow2.f32 %v4935_v24 }
 0x101   :  { %9147 = vst [vmem:[#allocation13_spill] sm:$0xff] %v6932_v51  ;;  %v6944_v14 = vadd.f32 %v307_v27, %v6908_v34  ;;  %v750_v17 = vadd.f32 %v686_v50, %v6932_v51  ;;  %v4942_v27 = vmul.f32 -1.442695, %v742_v55 }
 0x102   :  { %9148 = vst [vmem:[#allocation14_spill] sm:$0xff] %v6938_v56  ;;  %v753_v42 = vadd.f32 %v689_v44, %v6938_v56  ;;  %v4936_v50 = vmul.f32 -1.442695, %v749_v21 }
 0x103   :  { %9149 = vst [vmem:[#allocation15_spill] sm:$0xff] %v6944_v14  ;;  %v4944_v44 = vmul.f32 -1.442695, %v750_v17  ;;  %5296 = vpow2.f32 %v4942_v27 }
 0x104   :  { %5298 = vpow2.f32 %v4943_v43 }
 0x105   :  { %v311_v32 = vpop.f32.mrb[8].mxu1  ;;  %5300 = vpow2.f32 %v4936_v50 }
 0x106   :  { %v313_v33 = vpop.f32.mrb[9].mxu1  ;;  %v6948_v22 = vadd.f32 %v311_v32, %v80_v31  ;;  %v754_v32 = vadd.f32 %v690_v59, %v6944_v14  ;;  %5302 = vpow2.f32 %v4944_v44 }
 0x107   :  { %v315_v35 = vpop.f32.mrb[10].mxu1  ;;  %v6953_v26 = vadd.f32 %v313_v33, %v6908_v34 }
 0x108   :  { %v317_v36 = vpop.f32.mrb[11].mxu1  ;;  %9150 = vst [vmem:[#allocation16_spill] sm:$0xff] %v6948_v22  ;;  %v6957_v45 = vadd.f32 %v315_v35, %v80_v31  ;;  %v757_v33 = vadd.f32 %v693_v48, %v6948_v22 }
 0x109   :  { %9151 = vst [vmem:[#allocation17_spill] sm:$0xff] %v6953_v26  ;;  %v6962_v49 = vadd.f32 %v317_v36, %v6908_v34  ;;  %v758_v35 = vadd.f32 %v694_v18, %v6953_v26  ;;  %v4937_v36 = vmul.f32 -1.442695, %v753_v42 }
 0x10a   :  { %9152 = vst [vmem:[#allocation18_spill] sm:$0xff] %v6957_v45  ;;  %v761_v59 = vadd.f32 %v697_v53, %v6957_v45 }
 0x10b   :  { %9153 = vst [vmem:[#allocation19_spill] sm:$0xff] %v6962_v49  ;;  %v762_v16 = vadd.f32 %v698_v25, %v6962_v49  ;;  %v4946_v17 = vmul.f32 -1.442695, %v758_v35  ;;  %5304 = vpow2.f32 %v4937_v36 }
 0x10c   :  { %v4939_v53 = vmul.f32 -1.442695, %v761_v59 }
 0x10d   :  { %v321_v47 = vpop.f32.mrb[12].mxu1  ;;  %v4947_v27 = vmul.f32 -1.442695, %v762_v16 }
 0x10e   :  { %v323_v52 = vpop.f32.mrb[13].mxu1  ;;  %v6965_v2 = vadd.f32 %v321_v47, %v80_v31  ;;  %v4945_v47 = vmul.f32 -1.442695, %v754_v32 }
 0x10f   :  { %v325_v57 = vpop.f32.mrb[14].mxu1  ;;  %v6971_v19 = vadd.f32 %v323_v52, %v6908_v34  ;;  %v4938_v52 = vmul.f32 -1.442695, %v757_v33 }
 0x110   :  { %v327_v15 = vpop.f32.mrb[15].mxu1  ;;  %9154 = vst [vmem:[#allocation20_spill] sm:$0xff] %v6965_v2  ;;  %v6976_v60 = vadd.f32 %v325_v57, %v80_v31  ;;  %v765_v24 = vadd.f32 %v701_v54, %v6965_v2  ;;  %5306 = vpow2.f32 %v4945_v47  ;;  %v5293_v54 = vpop.eup %5292 }
 0x111   :  { %9155 = vst [vmem:[#allocation21_spill] sm:$0xff] %v6971_v19  ;;  %v6982_v21 = vadd.f32 %v327_v15, %v6908_v34  ;;  %v766_v31 = vadd.f32 %v702_v39, %v6971_v19  ;;  %5308 = vpow2.f32 %v4938_v52  ;;  %v5295_v50 = vpop.eup %5294  ;;  %v797_v35 = vadd.f32 1.0, %v5293_v54 }
 0x112   :  { %9156 = vst [vmem:[#allocation22_spill] sm:$0xff] %v6976_v60  ;;  %v769_v57 = vadd.f32 %v705_v58, %v6976_v60  ;;  %v4940_v34 = vmul.f32 -1.442695, %v765_v24  ;;  %5310 = vpow2.f32 %v4946_v17  ;;  %v5297_v44 = vpop.eup %5296  ;;  %v798_v59 = vadd.f32 1.0, %v5295_v50 }
 0x113   :  { %9157 = vst [vmem:[#allocation23_spill] sm:$0xff] %v6982_v21  ;;  %v770_v25 = vadd.f32 %v706_v20, %v6982_v21  ;;  %v4948_v42 = vmul.f32 -1.442695, %v766_v31  ;;  %5312 = vpow2.f32 %v4939_v53  ;;  %v5299_v20 = vpop.eup %5298  ;;  %v845_v16 = vadd.f32 1.0, %v5297_v44 }
 0x114   :  { %v4941_v32 = vmul.f32 -1.442695, %v769_v57  ;;  %5314 = vpow2.f32 %v4947_v27  ;;  %v5301_v36 = vpop.eup %5300  ;;  %v846_v24 = vadd.f32 1.0, %v5299_v20  ;;  %v7002_v44 = vsub.s32 3, %v6891_v23 }
 0x115   :  { %v6967_v30 = vpop.f32.mrb[16].mxu1  ;;  %v4949_v58 = vmul.f32 -1.442695, %v770_v25  ;;  %5316 = vpow2.f32 %v4940_v34  ;;  %v5303_v47 = vpop.eup %5302  ;;  %v799_v53 = vadd.f32 1.0, %v5301_v36 }
 0x116   :  { %v6973_v55 = vpop.f32.mrb[17].mxu1  ;;  %5318 = vpow2.f32 %v4948_v42  ;;  %v5305_v52 = vpop.eup %5304  ;;  %v847_v25 = vadd.f32 1.0, %v5303_v47  ;;  %9159 = vst [vmem:[#allocation25_spill] sm:$0xff] %v7002_v44 }
 0x117   :  { %v6978_v48 = vpop.f32.mrb[18].mxu1  ;;  %5320 = vpow2.f32 %v4941_v32  ;;  %v800_v42 = vadd.f32 1.0, %v5305_v52 }
 0x118   :  { %v6984_v18 = vpop.f32.mrb[19].mxu1  ;;  %5322 = vpow2.f32 %v4949_v58  ;;  %v6999_v58 = vsub.s32 2, %v6891_v23 }
 0x119   :  { %5324 = vrcp.f32 %v797_v35 }
 0x11a   :  { %v5307_v31 = vpop.eup %5306  ;;  %5326 = vrcp.f32 %v798_v59  ;;  %9158 = vst [vmem:[#allocation24_spill] sm:$0xff] %v6999_v58 }
 0x11b   :  { %v5309_v27 = vpop.eup %5308  ;;  %5328 = vrcp.f32 %v845_v16  ;;  %v848_v32 = vadd.f32 1.0, %v5307_v31  ;;  %v7008_v31 = vrot.slane %v6899_v29, %v7002_v44 }
 0x11c   :  { %v5311_v28 = vpop.eup %5310  ;;  %5330 = vrcp.f32 %v846_v24  ;;  %v801_v35 = vadd.f32 1.0, %v5309_v27  ;;  %v88_v24 = vrot.slane %v6899_v29, %v6999_v58 }
 0x11d   :  { %v6990_v15 = vpop.f32.mrb[20].mxu1  ;;  %v5313_v50 = vpop.eup %5312  ;;  %5332 = vrcp.f32 %v799_v53  ;;  %v849_v59 = vadd.f32 1.0, %v5311_v28  ;;  %v7021_v29 = vadd.f32 %v6973_v55, %v7008_v31 }
 0x11e   :  { %v6992_v43 = vpop.f32.mrb[21].mxu1  ;;  %v5315_v20 = vpop.eup %5314  ;;  %5334 = vrcp.f32 %v847_v25  ;;  %v802_v16 = vadd.f32 1.0, %v5313_v50  ;;  %v7017_v58 = vadd.f32 %v6967_v30, %v88_v24 }
 0x11f   :  { %v6994_v39 = vpop.f32.mrb[22].mxu1  ;;  %v5317_v36 = vpop.eup %5316  ;;  %5336 = vrcp.f32 %v800_v42  ;;  %v850_v21 = vadd.f32 1.0, %v5315_v20  ;;  %9161 = vst [vmem:[#allocation27_spill] sm:$0xff] %v7021_v29  ;;  %v7039_v55 = vadd.f32 %v6992_v43, %v7008_v31 }
 0x120   :  { %v6996_v33 = vpop.f32.mrb[23].mxu1  ;;  %v5319_v47 = vpop.eup %5318  ;;  %5338 = vrcp.f32 %v848_v32  ;;  %v803_v53 = vadd.f32 1.0, %v5317_v36  ;;  %9160 = vst [vmem:[#allocation26_spill] sm:$0xff] %v7017_v58 }
 0x121   :  { %v5321_v52 = vpop.eup %5320  ;;  %5340 = vrcp.f32 %v801_v35  ;;  %v851_v25 = vadd.f32 1.0, %v5319_v47  ;;  %v7030_v47 = vadd.f32 %v6984_v18, %v7008_v31  ;;  %9165 = vst [vmem:[#allocation31_spill] sm:$0xff] %v7039_v55 }
 0x122   :  { %v5323_v19 = vpop.eup %5322  ;;  %5342 = vrcp.f32 %v849_v59  ;;  %v804_v50 = vadd.f32 1.0, %v5321_v52  ;;  %v7026_v59 = vadd.f32 %v6978_v48, %v88_v24  ;;  %v7046_v48 = vadd.f32 %v6996_v33, %v7008_v31 }
 0x123   :  { %v7010_v42 = vpop.eup %5324  ;;  %5344 = vrcp.f32 %v802_v16  ;;  %v852_v35 = vadd.f32 1.0, %v5323_v19  ;;  %9163 = vst [vmem:[#allocation29_spill] sm:$0xff] %v7030_v47  ;;  %v7033_v16 = vadd.f32 %v6990_v15, %v88_v24  ;;  %v7042_v19 = vadd.f32 %v6994_v39, %v88_v24 }
 0x124   :  { %v7014_v20 = vpop.eup %5326  ;;  %5346 = vrcp.f32 %v850_v21  ;;  %9162 = vst [vmem:[#allocation28_spill] sm:$0xff] %v7026_v59 }
 0x125   :  { %v384_v17 = vpop.f32.mrb[24].mxu1  ;;  %v7023_v36 = vpop.eup %5328  ;;  %5348 = vrcp.f32 %v803_v53  ;;  %9164 = vst [vmem:[#allocation30_spill] sm:$0xff] %v7033_v16  ;;  %9166 = vst [vmem:[#allocation32_spill] sm:$0xff] %v7042_v19 }
 0x126   :  { %v386_v57 = vpop.f32.mrb[25].mxu1  ;;  %v7035_v30 = vpop.eup %5330  ;;  %5350 = vrcp.f32 %v851_v25  ;;  %v7050_v18 = vadd.f32 %v384_v17, %v88_v24 }
 0x127   :  { %v388_v34 = vpop.f32.mrb[26].mxu1  ;;  %v7048_v21 = vpop.eup %5332  ;;  %5352 = vrcp.f32 %v804_v50  ;;  %v7053_v15 = vadd.f32 %v386_v57, %v7008_v31 }
 0x128   :  { %v390_v54 = vpop.f32.mrb[27].mxu1  ;;  %9167 = vst [vmem:[#allocation33_spill] sm:$0xff] %v7050_v18  ;;  %v7055_v52 = vadd.f32 %v388_v34, %v88_v24  ;;  %v7057_v43 = vpop.eup %5334  ;;  %5354 = vrcp.f32 %v852_v35 }
 0x129   :  { %v7060_v39 = vadd.f32 %v390_v54, %v7008_v31  ;;  %v7067_v50 = vpop.eup %5336 }
 0x12a   :  { %9168 = vst [vmem:[#allocation34_spill] sm:$0xff] %v7055_v52  ;;  %v7069_v26 = vpop.eup %5338 }
 0x12d   :  { %v394_v23 = vpop.f32.mrb[28].mxu1 }
 0x12e   :  { %v396_v27 = vpop.f32.mrb[29].mxu1  ;;  %v7062_v53 = vadd.f32 %v394_v23, %v88_v24 }
 0x12f   :  { %v398_v28 = vpop.f32.mrb[30].mxu1  ;;  %v7065_v33 = vadd.f32 %v396_v27, %v7008_v31  ;;  %v7074_v27 = vpop.eup %5340 }
 0x130   :  { %v7012_v32 = vpop.f32.mrb[31].mxu1  ;;  %9169 = vst [vmem:[#allocation35_spill] sm:$0xff] %v7062_v53  ;;  %v7071_v14 = vadd.f32 %v398_v28, %v88_v24  ;;  %v7079_v22 = vpop.eup %5342 }
 0x132   :  { %9170 = vst [vmem:[#allocation36_spill] sm:$0xff] %v7071_v14 }
 0x135   :  { %v670_v25 = vpop.f32.mrb[32].mxu1 }
 0x136   :  { %v683_v17 = vrot.slane %v670_v25, 1  ;;  %v687_v44 = vrot.slane %v670_v25, 2  ;;  %v691_v57 = vrot.slane %v670_v25, 3  ;;  %v695_v49 = vrot.slane %v670_v25, 4  ;;  %v672_v34 = vpop.f32.mrb[33].mxu1 }
 0x137   :  { %v699_v54 = vrot.slane %v670_v25, 5  ;;  %v703_v51 = vrot.slane %v670_v25, 6  ;;  %v743_v23 = vadd.f32 %v670_v25, %v7017_v58  ;;  %v674_v41 = vpop.f32.mrb[34].mxu1  ;;  %v707_v40 = vrot.slane %v670_v25, 7 }
 0x138   :  { %v747_v35 = vadd.f32 %v683_v17, %v7026_v59  ;;  %v751_v60 = vadd.f32 %v687_v44, %v7033_v16  ;;  %v755_v2 = vadd.f32 %v691_v57, %v7042_v19  ;;  %v675_v45 = vpop.f32.mrb[35].mxu1  ;;  %v759_v24 = vadd.f32 %v695_v49, %v7050_v18  ;;  %v7084_v41 = vpop.eup %5344 }
 0x139   :  { %v763_v28 = vadd.f32 %v699_v54, %v7055_v52  ;;  %v767_v56 = vadd.f32 %v703_v51, %v7062_v53  ;;  %5356 = vtanh.f32 %v743_v23  ;;  %v684_v25 = vrot.slane %v672_v34, 1  ;;  %v5347_v59 = vpop.eup %5346 }
 0x13a   :  { %5358 = vtanh.f32 %v747_v35  ;;  %v688_v58 = vrot.slane %v672_v34, 2  ;;  %v692_v17 = vrot.slane %v672_v34, 3  ;;  %v696_v44 = vrot.slane %v672_v34, 4  ;;  %v7086_v19 = vpop.eup %5348 }
 0x13b   :  { %5360 = vtanh.f32 %v751_v60  ;;  %v700_v57 = vrot.slane %v672_v34, 5  ;;  %v704_v45 = vrot.slane %v672_v34, 6  ;;  %v771_v49 = vadd.f32 %v707_v40, %v7071_v14  ;;  %v5351_v23 = vpop.eup %5350 }
 0x13c   :  { %5362 = vtanh.f32 %v755_v2  ;;  %v744_v54 = vadd.f32 %v672_v34, %v7021_v29  ;;  %v748_v51 = vadd.f32 %v684_v25, %v7030_v47  ;;  %v752_v35 = vadd.f32 %v688_v58, %v7039_v55  ;;  %v5353_v52 = vpop.eup %5352 }
 0x13d   :  { %5364 = vtanh.f32 %v759_v24  ;;  %v756_v53 = vadd.f32 %v692_v17, %v7046_v48  ;;  %v760_v60 = vadd.f32 %v696_v44, %v7053_v15  ;;  %v708_v18 = vrot.slane %v672_v34, 7  ;;  %v5355_v2 = vpop.eup %5354 }
 0x13e   :  { %5366 = vtanh.f32 %v763_v28  ;;  %v764_v16 = vadd.f32 %v700_v57, %v7060_v39  ;;  %v768_v40 = vadd.f32 %v704_v45, %v7065_v33  ;;  %v4950_v29 = vmul.f32 -1.442695, %v744_v54 }
 0x13f   :  { %5368 = vtanh.f32 %v767_v56  ;;  %v4951_v14 = vmul.f32 -1.442695, %v748_v51  ;;  %v4952_v25 = vmul.f32 -1.442695, %v752_v35  ;;  %v7098_v24 = vadd.f32 %v7012_v32, %v7008_v31 }
 0x140   :  { %5370 = vtanh.f32 %v771_v49  ;;  %v4953_v58 = vmul.f32 -1.442695, %v756_v53  ;;  %v4954_v17 = vmul.f32 -1.442695, %v760_v60  ;;  %v4955_v34 = vmul.f32 -1.442695, %v764_v16 }
 0x141   :  { %5372 = vpow2.f32 %v4950_v29  ;;  %v772_v28 = vadd.f32 %v708_v18, %v7098_v24  ;;  %v4956_v57 = vmul.f32 -1.442695, %v768_v40  ;;  %v925_v56 = vmul.f32 0.0, %v7023_v36 }
 0x142   :  { %5374 = vpow2.f32 %v4951_v14  ;;  %v926_v31 = vmul.f32 0.0, %v7035_v30  ;;  %v927_v32 = vmul.f32 0.0, %v7057_v43  ;;  %v928_v36 = vmul.f32 0.0, %v7069_v26 }
 0x143   :  { %v5357_v44 = vpop.eup %5356  ;;  %5376 = vpow2.f32 %v4952_v25  ;;  %v4957_v53 = vmul.f32 -1.442695, %v772_v28  ;;  %v930_v26 = vmul.f32 0.0, %v5347_v59 }
 0x144   :  { %v5359_v45 = vpop.eup %5358  ;;  %v933_v54 = vmul.f32 %v5357_v44, %v7010_v42  ;;  %5378 = vpow2.f32 %v4953_v58  ;;  %v931_v58 = vmul.f32 0.0, %v5351_v23 }
 0x145   :  { %v5361_v51 = vpop.eup %5360  ;;  %v934_v29 = vmul.f32 %v5359_v45, %v7014_v20  ;;  %5380 = vpow2.f32 %v4954_v17 }
 0x146   :  { %v5363_v18 = vpop.eup %5362  ;;  %v935_v14 = vmul.f32 %v5361_v51, %v7048_v21  ;;  %v7107_v16 = vadd.f32 %v933_v54, %v925_v56  ;;  %5382 = vpow2.f32 %v4955_v34  ;;  %v929_v21 = vmul.f32 0.0, %v7079_v22 }
 0x147   :  { %v5365_v49 = vpop.eup %5364  ;;  %v936_v42 = vmul.f32 %v5363_v18, %v7067_v50  ;;  %v7111_v35 = vadd.f32 %v934_v29, %v926_v31  ;;  %5384 = vpow2.f32 %v4956_v57  ;;  %v932_v34 = vmul.f32 0.0, %v5355_v2 }
 0x148   :  { %v5367_v30 = vpop.eup %5366  ;;  %v937_v43 = vmul.f32 %v5365_v49, %v7074_v27  ;;  %v7114_v20 = vadd.f32 %v935_v14, %v927_v32  ;;  %5386 = vtanh.f32 %v7107_v16 }
 0x149   :  { %v5369_v60 = vpop.eup %5368  ;;  %v7118_v40 = vadd.f32 %v936_v42, %v928_v36  ;;  %5388 = vtanh.f32 %v7111_v35  ;;  %v938_v50 = vmul.f32 %v5367_v30, %v7084_v41 }
 0x14a   :  { %v5371_v25 = vpop.eup %5370  ;;  %5390 = vpow2.f32 %v4957_v53  ;;  %v939_v17 = vmul.f32 %v5369_v60, %v7086_v19  ;;  %v7123_v27 = vadd.f32 %v937_v43, %v929_v21 }
 0x14b   :  { %v5373_v28 = vpop.eup %5372  ;;  %v940_v44 = vmul.f32 %v5371_v25, %v5353_v52  ;;  %v7125_v57 = vadd.f32 %v938_v50, %v930_v26  ;;  %5392 = vtanh.f32 %v7114_v20 }
 0x14c   :  { %v5375_v22 = vpop.eup %5374  ;;  %v901_v45 = vadd.f32 1.0, %v5373_v28  ;;  %v7128_v56 = vadd.f32 %v939_v17, %v931_v58  ;;  %5394 = vtanh.f32 %v7118_v40 }
 0x14d   :  { %v5377_v59 = vpop.eup %5376  ;;  %v902_v41 = vadd.f32 1.0, %v5375_v22  ;;  %v7131_v23 = vadd.f32 %v940_v44, %v932_v34  ;;  %5396 = vtanh.f32 %v7123_v27 }
 0x14e   :  { %v5379_v19 = vpop.eup %5378  ;;  %v903_v54 = vadd.f32 1.0, %v5377_v59  ;;  %5398 = vrcp.f32 %v901_v45 }
 0x14f   :  { %v5381_v52 = vpop.eup %5380  ;;  %v904_v2 = vadd.f32 1.0, %v5379_v19  ;;  %5400 = vrcp.f32 %v902_v41 }
 0x150   :  { %v5383_v51 = vpop.eup %5382  ;;  %v905_v31 = vadd.f32 1.0, %v5381_v52  ;;  %5402 = vrcp.f32 %v903_v54 }
 0x151   :  { %v5385_v32 = vpop.eup %5384  ;;  %v906_v29 = vadd.f32 1.0, %v5383_v51  ;;  %5404 = vrcp.f32 %v904_v2 }
 0x152   :  { %v5387_v18 = vpop.eup %5386  ;;  %v907_v14 = vadd.f32 1.0, %v5385_v32  ;;  %5406 = vrcp.f32 %v905_v31 }
 0x153   :  { %v5389_v53 = vpop.eup %5388  ;;  %5408 = vrcp.f32 %v906_v29 }
 0x154   :  { %v5391_v49 = vpop.eup %5390  ;;  %5410 = vrcp.f32 %v907_v14 }
 0x155   :  { %v5393_v36 = vpop.eup %5392  ;;  %v908_v42 = vadd.f32 1.0, %v5391_v49  ;;  %5412 = vtanh.f32 %v7125_v57 }
 0x156   :  { %v5395_v30 = vpop.eup %5394  ;;  %5414 = vtanh.f32 %v7128_v56 }
 0x157   :  { %v5397_v43 = vpop.eup %5396  ;;  %5416 = vrcp.f32 %v908_v42 }
 0x158   :  { %v5399_v21 = vpop.eup %5398  ;;  %5418 = vtanh.f32 %v7131_v23 }
 0x159   :  { %v5401_v60 = vpop.eup %5400  ;;  %v957_v26 = vmul.f32 %v5399_v21, %v5387_v18 }
 0x15a   :  { %v5403_v50 = vpop.eup %5402  ;;  %v958_v25 = vmul.f32 %v5401_v60, %v5389_v53 }
 0x15b   :  { %v5405_v58 = vpop.eup %5404  ;;  %v959_v17 = vmul.f32 %v5403_v50, %v5393_v36  ;;  %v965_v44 = vpack.c.bf16 %v957_v26, %v957_v26 }
 0x15c   :  { %v5407_v28 = vpop.eup %5406  ;;  %v960_v34 = vmul.f32 %v5405_v58, %v5395_v30  ;;  %v966_v22 = vpack.c.bf16 %v958_v25, %v958_v25 }
 0x15d   :  { %v5409_v45 = vpop.eup %5408  ;;  %v961_v59 = vmul.f32 %v5407_v28, %v5397_v43  ;;  %v967_v41 = vpack.c.bf16 %v959_v17, %v959_v17  ;;  %v981_v18 = vunpack.c.l.b16 %v965_v44 }
 0x15e   :  { %v5411_v19 = vpop.eup %5410  ;;  %v968_v54 = vpack.c.bf16 %v960_v34, %v960_v34  ;;  %v982_v52 = vunpack.c.l.b16 %v966_v22 }
 0x15f   :  { %v5413_v2 = vpop.eup %5412  ;;  %v969_v51 = vpack.c.bf16 %v961_v59, %v961_v59  ;;  %v983_v31 = vunpack.c.l.b16 %v967_v41 }
 0x160   :  { %v5415_v32 = vpop.eup %5414  ;;  %v962_v29 = vmul.f32 %v5413_v2, %v5409_v45  ;;  %v984_v14 = vunpack.c.l.b16 %v968_v54  ;;  %v989_v53 = vrot.slane %v982_v52, 7 }
 0x161   :  { %v5417_v49 = vpop.eup %5416  ;;  %v963_v36 = vmul.f32 %v5415_v32, %v5411_v19  ;;  %v985_v42 = vunpack.c.l.b16 %v969_v51  ;;  %v992_v30 = vrot.slane %v983_v31, 6  ;;  %v7147_v32 = vld [vmem:[%s9052_s3] ss:$16 sps:$4 sm:$0xff]  }
 0x162   :  { %v5419_v43 = vpop.eup %5418  ;;  %v970_v21 = vpack.c.bf16 %v962_v29, %v962_v29  ;;  %v991_v60 = vsel %vm990_vm0, %v989_v53, %v981_v18  ;;  %v995_v26 = vrot.slane %v984_v14, 5  ;;  %v7154_v29 = vld [vmem:[%s9052_s3 + $0x24] ss:$16 sps:$4 sm:$0xff]   ;;  %v9171_v18 = vmov 0   ;;  %v7163_v14 = vld [vmem:[%s9052_s3 + $0x20] ss:$16 sps:$4 sm:$0xff]  }
 0x163   :  { %v964_v50 = vmul.f32 %v5419_v43, %v5417_v49  ;;  %v971_v25 = vpack.c.bf16 %v963_v36, %v963_v36  ;;  %v994_v58 = vsel %vm993_vm1, %v992_v30, %v991_v60  ;;  %v998_v17 = vrot.slane %v985_v42, 4 }
 0x164   :  { %v986_v28 = vunpack.c.l.b16 %v970_v21  ;;  %v997_v34 = vsel %vm996_vm2, %v995_v26, %v994_v58 }
 0x165   :  { %v972_v44 = vpack.c.bf16 %v964_v50, %v964_v50  ;;  %v987_v22 = vunpack.c.l.b16 %v971_v25  ;;  %v1000_v45 = vsel %vm999_vm3, %v998_v17, %v997_v34 }
 0x166   :  { %v1001_v59 = vrot.slane %v986_v28, 3  ;;  %v9172_v28 = vld [vmem:[#allocation14_spill] sm:$0xff] }
 0x167   :  { %v988_v41 = vunpack.c.l.b16 %v972_v44  ;;  %v1004_v19 = vrot.slane %v987_v22, 2  ;;  %v9173_v44 = vld [vmem:[#allocation16_spill] sm:$0xff] }
 0x168   :  { %v1003_v54 = vsel %vm1002_vm4, %v1001_v59, %v1000_v45 }
 0x169   :  { %v1006_v52 = vsel %vm1005_vm5, %v1004_v19, %v1003_v54  ;;  %v1007_v2 = vrot.slane %v988_v41, 1  ;;  %v9174_v41 = vld [vmem:[#allocation18_spill] sm:$0xff]  ;;  %v9175_v54 = vld [vmem:[#allocation20_spill] sm:$0xff] }
 0x16b   :  { %v1009_v51 = vsel %vm1008_vm6, %v1007_v2, %v1006_v52 }
 0x16c   :  { %v1010_v31 = vpack.c.b16 %v1009_v51, %v1009_v51  ;;  %v9176_v51 = vld [vmem:[#allocation22_spill] sm:$0xff] }
 0x16e   :  { %1045 = vmatmul.mubr.bf16.vlgmr.msra.gmra.mrb[4].mxu0 %v1010_v31  ;;  %1086 = vmatmul.mubr.bf16.vlgmr.msra.gmra.mrb[36].mxu1 %v1010_v31 }
 0x16f   :  { %1447 = vmatpush1.bf16.msra.mxu0 %v7147_v32  ;;  %1488 = vmatpush1.bf16.msra.mxu1 %v6771_v62  ;;  %v7170_v62 = vld [vmem:[%s9052_s3 + $0x44] ss:$16 sps:$4 sm:$0xff]  }
 0x170   :  { %1448 = vmatprep.subr.bf16.mxu0 %v7154_v29  ;;  %1489 = vmatprep.subr.bf16.mxu1 %v6777_v63  ;;  %v7177_v63 = vld [vmem:[%s9052_s3 + $0x40] ss:$16 sps:$4 sm:$0xff]  }
 0x171   :  { %1478 = vmatprep.mubr.bf16.mxu0 %v9171_v18  ;;  %1519 = vmatprep.mubr.bf16.mxu1 %v9171_v18 }
 0x173   :  { %1449 = vmatpush1.bf16.msra.mxu0 %v7163_v14  ;;  %1490 = vmatpush1.bf16.msra.mxu1 %v6786_v0  ;;  %v7184_v0 = vld [vmem:[%s9052_s3 + $0x64] ss:$16 sps:$4 sm:$0xff]  }
 0x174   :  { %1450 = vmatprep.subr.bf16.mxu0 %v7170_v62  ;;  %1491 = vmatprep.subr.bf16.mxu1 %v6793_v1  ;;  %v7191_v1 = vld [vmem:[%s9052_s3 + $0x60] ss:$16 sps:$4 sm:$0xff]  }
 0x177   :  { %1451 = vmatpush1.bf16.msra.mxu0 %v7177_v63  ;;  %1492 = vmatpush1.bf16.msra.mxu1 %v6799_v3  ;;  %v7198_v3 = vld [vmem:[%s9052_s3 + $0x84] ss:$16 sps:$4 sm:$0xff]  }
 0x178   :  { %1452 = vmatprep.subr.bf16.mxu0 %v7184_v0  ;;  %1493 = vmatprep.subr.bf16.mxu1 %v6805_v4  ;;  %v7205_v4 = vld [vmem:[%s9052_s3 + $0x80] ss:$16 sps:$4 sm:$0xff]  }
 0x17b   :  { %1453 = vmatpush1.bf16.msra.mxu0 %v7191_v1  ;;  %1494 = vmatpush1.bf16.msra.mxu1 %v6812_v5  ;;  %v7212_v5 = vld [vmem:[%s9052_s3 + $0xa4] ss:$16 sps:$4 sm:$0xff]  }
 0x17c   :  { %1454 = vmatprep.subr.bf16.mxu0 %v7198_v3  ;;  %1495 = vmatprep.subr.bf16.mxu1 %v6819_v6  ;;  %v7219_v6 = vld [vmem:[%s9052_s3 + $0xa0] ss:$16 sps:$4 sm:$0xff]  }
 0x17f   :  { %1455 = vmatpush1.bf16.msra.mxu0 %v7205_v4  ;;  %1496 = vmatpush1.bf16.msra.mxu1 %v6825_v7  ;;  %v7226_v7 = vld [vmem:[%s9052_s3 + $0xc4] ss:$16 sps:$4 sm:$0xff]  }
 0x180   :  { %1456 = vmatprep.subr.bf16.mxu0 %v7212_v5  ;;  %1497 = vmatprep.subr.bf16.mxu1 %v6831_v8  ;;  %v7233_v8 = vld [vmem:[%s9052_s3 + $0xc0] ss:$16 sps:$4 sm:$0xff]  }
 0x183   :  { %1457 = vmatpush1.bf16.msra.mxu0 %v7219_v6  ;;  %1498 = vmatpush1.bf16.msra.mxu1 %v6837_v9  ;;  %v7240_v9 = vld [vmem:[%s9052_s3 + $0xe4] ss:$16 sps:$4 sm:$0xff]  }
 0x184   :  { %1458 = vmatprep.subr.bf16.mxu0 %v7226_v7  ;;  %1499 = vmatprep.subr.bf16.mxu1 %v6844_v10  ;;  %v7247_v10 = vld [vmem:[%s9052_s3 + $0xe0] ss:$16 sps:$4 sm:$0xff]  }
 0x187   :  { %1459 = vmatpush1.bf16.msra.mxu0 %v7233_v8  ;;  %1500 = vmatpush1.bf16.msra.mxu1 %v6850_v11  ;;  %v7254_v11 = vld [vmem:[%s9052_s3 + $0x4] ss:$16 sps:$4 sm:$0xff]  }
 0x188   :  { %1460 = vmatprep.subr.bf16.mxu0 %v7240_v9  ;;  %1501 = vmatprep.subr.bf16.mxu1 %v6856_v12 }
 0x18b   :  { %1461 = vmatpush1.bf16.msra.mxu0 %v7247_v10  ;;  %1502 = vmatpush1.bf16.msra.mxu1 %v6862_v13 }
 0x18c   :  { %1880 = vmatprep.subr.bf16.mxu0 %v7254_v11  ;;  %1921 = vmatprep.subr.bf16.mxu1 %v6764_v61 }
 0x241   :  { %v1046_v53 = vpop.f32.mrb[4].mxu0  ;;  %v7258_v12 = vpop.f32.mrb[36].mxu1 }
 0x242   :  { %v1098_v49 = vrot.slane %v1046_v53, 7  ;;  %v1102_v36 = vrot.slane %v1046_v53, 1  ;;  %v1106_v42 = vrot.slane %v1046_v53, 2  ;;  %v1110_v30 = vrot.slane %v1046_v53, 3  ;;  %v7260_v43 = vpop.f32.mrb[5].mxu0  ;;  %v7262_v21 = vpop.f32.mrb[37].mxu1 }
 0x243   :  { %v1114_v13 = vrot.slane %v1046_v53, 4  ;;  %v1118_v60 = vrot.slane %v1046_v53, 5  ;;  %v1122_v26 = vrot.slane %v1046_v53, 6  ;;  %v1162_v50 = vadd.f32 %v1046_v53, %v6912_v38  ;;  %v1050_v25 = vpop.f32.mrb[6].mxu0  ;;  %v1091_v58 = vpop.f32.mrb[38].mxu1 }
 0x244   :  { %v1158_v61 = vadd.f32 %v1098_v49, %v6910_v37  ;;  %v1166_v17 = vadd.f32 %v1102_v36, %v6926_v46  ;;  %v1170_v34 = vadd.f32 %v1106_v42, %v9172_v28  ;;  %v1174_v22 = vadd.f32 %v1110_v30, %v9173_v44  ;;  %v1051_v45 = vpop.f32.mrb[7].mxu0  ;;  %v1092_v59 = vpop.f32.mrb[39].mxu1 }
 0x245   :  { %v1178_v19 = vadd.f32 %v1114_v13, %v9174_v41  ;;  %v1182_v52 = vadd.f32 %v1118_v60, %v9175_v54  ;;  %v4959_v2 = vmul.f32 -1.442695, %v1162_v50  ;;  %v1186_v31 = vadd.f32 %v1122_v26, %v9176_v51  ;;  %v9177_v50 = vld [vmem:[#allocation26_spill] sm:$0xff]  ;;  %v9186_v54 = vld [vmem:[#allocation13_spill] sm:$0xff]  ;;  %v9187_v41 = vld [vmem:[#allocation36_spill] sm:$0xff] }
 0x246   :  { %v4958_v53 = vmul.f32 -1.442695, %v1158_v61  ;;  %v4960_v25 = vmul.f32 -1.442695, %v1166_v17  ;;  %v4961_v58 = vmul.f32 -1.442695, %v1170_v34 }
 0x247   :  { %5420 = vpow2.f32 %v4959_v2  ;;  %v4962_v49 = vmul.f32 -1.442695, %v1174_v22  ;;  %v4963_v36 = vmul.f32 -1.442695, %v1178_v19  ;;  %v1100_v42 = vrot.slane %v7258_v12, 7  ;;  %v9178_v17 = vld [vmem:[#allocation28_spill] sm:$0xff] }
 0x248   :  { %5422 = vpow2.f32 %v4958_v53  ;;  %v4964_v30 = vmul.f32 -1.442695, %v1182_v52  ;;  %v1104_v45 = vrot.slane %v7258_v12, 1  ;;  %v4965_v13 = vmul.f32 -1.442695, %v1186_v31  ;;  %v9179_v22 = vld [vmem:[#allocation30_spill] sm:$0xff] }
 0x249   :  { %5424 = vpow2.f32 %v4960_v25  ;;  %v1108_v60 = vrot.slane %v7258_v12, 2  ;;  %v1112_v26 = vrot.slane %v7258_v12, 3  ;;  %v1160_v61 = vadd.f32 %v1100_v42, %v9177_v50  ;;  %v9180_v19 = vld [vmem:[#allocation32_spill] sm:$0xff]  ;;  %v9181_v2 = vld [vmem:[#allocation33_spill] sm:$0xff] }
 0x24a   :  { %5426 = vpow2.f32 %v4961_v58  ;;  %v1164_v34 = vadd.f32 %v7258_v12, %v9178_v17  ;;  %v1168_v59 = vadd.f32 %v1104_v45, %v9179_v22  ;;  %v1116_v31 = vrot.slane %v7258_v12, 4  ;;  %v9183_v22 = vld [vmem:[#allocation35_spill] sm:$0xff] }
 0x24b   :  { %5428 = vpow2.f32 %v4962_v49  ;;  %v1172_v52 = vadd.f32 %v1108_v60, %v9180_v19  ;;  %v1176_v53 = vadd.f32 %v1112_v26, %v9181_v2  ;;  %v1120_v58 = vrot.slane %v7258_v12, 5 }
 0x24c   :  { %5430 = vpow2.f32 %v4963_v36  ;;  %v1099_v45 = vrot.slane %v7260_v43, 7  ;;  %v1124_v26 = vrot.slane %v7258_v12, 6  ;;  %v1115_v12 = vrot.slane %v7260_v43, 4 }
 0x24d   :  { %5432 = vpow2.f32 %v4964_v30  ;;  %v1123_v51 = vrot.slane %v7260_v43, 6 }
 0x24e   :  { %5434 = vpow2.f32 %v4965_v13  ;;  %v1188_v44 = vadd.f32 %v1124_v26, %v9187_v41 }
 0x24f   :  { %5436 = vtanh.f32 %v1160_v61  ;;  %v9182_v61 = vld [vmem:[#allocation34_spill] sm:$0xff] }
 0x250   :  { %5438 = vtanh.f32 %v1164_v34  ;;  %v1180_v2 = vadd.f32 %v1116_v31, %v9182_v61  ;;  %v9184_v31 = vld [vmem:[#allocation10_spill] sm:$0xff] }
 0x251   :  { %v5421_v25 = vpop.eup %5420  ;;  %5440 = vtanh.f32 %v1168_v59  ;;  %v1184_v59 = vadd.f32 %v1120_v58, %v9183_v22  ;;  %v1159_v61 = vadd.f32 %v1099_v45, %v9184_v31  ;;  %v1119_v58 = vrot.slane %v7260_v43, 5  ;;  %v9185_v22 = vld [vmem:[#allocation11_spill] sm:$0xff] }
 0x252   :  { %v5423_v49 = vpop.eup %5422  ;;  %v1215_v36 = vadd.f32 1.0, %v5421_v25  ;;  %5442 = vtanh.f32 %v1172_v52  ;;  %v1103_v25 = vrot.slane %v7260_v43, 1  ;;  %v9188_v45 = vld [vmem:[#allocation15_spill] sm:$0xff] }
 0x253   :  { %v5425_v42 = vpop.eup %5424  ;;  %v1214_v30 = vadd.f32 1.0, %v5423_v49  ;;  %5444 = vtanh.f32 %v1176_v53  ;;  %v1107_v53 = vrot.slane %v7260_v43, 2  ;;  %v1111_v49 = vrot.slane %v7260_v43, 3 }
 0x254   :  { %v5427_v13 = vpop.eup %5426  ;;  %v1216_v60 = vadd.f32 1.0, %v5425_v42  ;;  %5446 = vrcp.f32 %v1215_v36  ;;  %v4966_v38 = vmul.f32 -1.442695, %v1159_v61 }
 0x255   :  { %v5429_v34 = vpop.eup %5428  ;;  %v1217_v19 = vadd.f32 1.0, %v5427_v13  ;;  %5448 = vrcp.f32 %v1214_v30  ;;  %v1171_v31 = vadd.f32 %v1107_v53, %v9188_v45  ;;  %v1105_v53 = vrot.slane %v7262_v21, 1 }
 0x256   :  { %v5431_v52 = vpop.eup %5430  ;;  %v1218_v17 = vadd.f32 1.0, %v5429_v34  ;;  %5450 = vrcp.f32 %v1216_v60  ;;  %v1163_v34 = vadd.f32 %v7260_v43, %v9185_v22  ;;  %v1101_v22 = vrot.slane %v7262_v21, 7  ;;  %v9191_v43 = vld [vmem:[#allocation21_spill] sm:$0xff] }
 0x257   :  { %v5433_v42 = vpop.eup %5432  ;;  %v1219_v36 = vadd.f32 1.0, %v5431_v52  ;;  %5452 = vrcp.f32 %v1217_v19  ;;  %v1167_v52 = vadd.f32 %v1103_v25, %v9186_v54  ;;  %v1183_v46 = vadd.f32 %v1119_v58, %v9191_v43  ;;  %v9193_v58 = vld [vmem:[#allocation27_spill] sm:$0xff] }
 0x258   :  { %v5435_v13 = vpop.eup %5434  ;;  %v1220_v30 = vadd.f32 1.0, %v5433_v42  ;;  %5454 = vrcp.f32 %v1218_v17  ;;  %v9189_v42 = vld [vmem:[#allocation17_spill] sm:$0xff]  ;;  %v4967_v25 = vmul.f32 -1.442695, %v1163_v34  ;;  %v1161_v34 = vadd.f32 %v1101_v22, %v9193_v58 }
 0x259   :  { %v5437_v60 = vpop.eup %5436  ;;  %v1221_v50 = vadd.f32 1.0, %v5435_v13  ;;  %5456 = vrcp.f32 %v1219_v36  ;;  %v1175_v17 = vadd.f32 %v1111_v49, %v9189_v42  ;;  %v9190_v36 = vld [vmem:[#allocation19_spill] sm:$0xff]  ;;  %v4968_v41 = vmul.f32 -1.442695, %v1167_v52 }
 0x25a   :  { %v5439_v19 = vpop.eup %5438  ;;  %5458 = vrcp.f32 %v1220_v30  ;;  %v1179_v13 = vadd.f32 %v1115_v12, %v9190_v36  ;;  %v9192_v30 = vld [vmem:[#allocation23_spill] sm:$0xff]  ;;  %v1109_v42 = vrot.slane %v7262_v21, 2  ;;  %v1113_v12 = vrot.slane %v7262_v21, 3 }
 0x25b   :  { %v5441_v28 = vpop.eup %5440  ;;  %5460 = vrcp.f32 %v1221_v50  ;;  %v1187_v26 = vadd.f32 %v1123_v51, %v9192_v30  ;;  %v4969_v50 = vmul.f32 -1.442695, %v1171_v31  ;;  %v4970_v61 = vmul.f32 -1.442695, %v1175_v17 }
 0x25c   :  { %v5443_v37 = vpop.eup %5442  ;;  %5462 = vtanh.f32 %v1180_v2  ;;  %v4971_v51 = vmul.f32 -1.442695, %v1179_v13  ;;  %v4972_v17 = vmul.f32 -1.442695, %v1183_v46  ;;  %v1177_v13 = vadd.f32 %v1113_v12, %v7053_v15 }
 0x25d   :  { %v5445_v54 = vpop.eup %5444  ;;  %5464 = vtanh.f32 %v1184_v59  ;;  %v4973_v22 = vmul.f32 -1.442695, %v1187_v26 }
 0x25e   :  { %v5447_v49 = vpop.eup %5446  ;;  %5466 = vtanh.f32 %v1188_v44  ;;  %v1165_v44 = vadd.f32 %v7262_v21, %v7030_v47  ;;  %v4974_v47 = vmul.f32 -1.442695, %v1161_v34  ;;  %v4978_v26 = vmul.f32 -1.442695, %v1177_v13 }
 0x25f   :  { %v5449_v45 = vpop.eup %5448  ;;  %v7307_v2 = vmul.f32 %v5447_v49, %v5439_v19  ;;  %5468 = vpow2.f32 %v4966_v38  ;;  %v1169_v19 = vadd.f32 %v1105_v53, %v7039_v55 }
 0x260   :  { %v5451_v59 = vpop.eup %5450  ;;  %v7311_v43 = vmul.f32 %v5449_v45, %v5437_v60  ;;  %5470 = vpow2.f32 %v4967_v25  ;;  %v1173_v60 = vadd.f32 %v1109_v42, %v7046_v48 }
 0x261   :  { %v5453_v31 = vpop.eup %5452  ;;  %v7315_v52 = vmul.f32 %v5451_v59, %v5441_v28  ;;  %5472 = vpow2.f32 %v4968_v41  ;;  %v4975_v41 = vmul.f32 -1.442695, %v1165_v44  ;;  %v4976_v53 = vmul.f32 -1.442695, %v1169_v19 }
 0x262   :  { %v5455_v38 = vpop.eup %5454  ;;  %v7318_v49 = vmul.f32 %v5453_v31, %v5443_v37  ;;  %5474 = vpow2.f32 %v4969_v50  ;;  %v4977_v37 = vmul.f32 -1.442695, %v1173_v60  ;;  %v1125_v19 = vrot.slane %v7262_v21, 6 }
 0x263   :  { %v5457_v45 = vpop.eup %5456  ;;  %v7321_v25 = vmul.f32 %v5455_v38, %v5445_v54  ;;  %5476 = vpow2.f32 %v4970_v61  ;;  %v1117_v61 = vrot.slane %v7262_v21, 4 }
 0x264   :  { %v5459_v28 = vpop.eup %5458  ;;  %5478 = vpow2.f32 %v4971_v51  ;;  %v1121_v51 = vrot.slane %v7262_v21, 5 }
 0x265   :  { %v5461_v46 = vpop.eup %5460  ;;  %5480 = vpow2.f32 %v4972_v17 }
 0x266   :  { %v5463_v59 = vpop.eup %5462  ;;  %5482 = vpow2.f32 %v4973_v22 }
 0x267   :  { %v5465_v50 = vpop.eup %5464  ;;  %5484 = vpow2.f32 %v4974_v47  ;;  %v7324_v42 = vmul.f32 %v5463_v59, %v5457_v45  ;;  %v1181_v45 = vadd.f32 %v1117_v61, %v7060_v39  ;;  %v1189_v59 = vadd.f32 %v1125_v19, %v7098_v24 }
 0x268   :  { %v5467_v54 = vpop.eup %5466  ;;  %5486 = vpow2.f32 %v4975_v41  ;;  %v7327_v12 = vmul.f32 %v5465_v50, %v5459_v28  ;;  %v1185_v41 = vadd.f32 %v1121_v51, %v7065_v33 }
 0x269   :  { %v5469_v34 = vpop.eup %5468  ;;  %5488 = vpow2.f32 %v4976_v53  ;;  %v7330_v44 = vmul.f32 %v5467_v54, %v5461_v46  ;;  %v4979_v54 = vmul.f32 -1.442695, %v1181_v45  ;;  %v1351_v45 = vrot.slane %v7111_v35, 7 }
 0x26a   :  { %v5471_v31 = vpop.eup %5470  ;;  %v1262_v17 = vadd.f32 1.0, %v5469_v34  ;;  %5490 = vpow2.f32 %v4977_v37  ;;  %v4980_v61 = vmul.f32 -1.442695, %v1185_v41 }
 0x26b   :  { %v5473_v47 = vpop.eup %5472  ;;  %v1263_v38 = vadd.f32 1.0, %v5471_v31  ;;  %5492 = vpow2.f32 %v4978_v26 }
 0x26c   :  { %v5475_v22 = vpop.eup %5474  ;;  %v1264_v60 = vadd.f32 1.0, %v5473_v47  ;;  %5494 = vrcp.f32 %v1262_v17  ;;  %v4981_v47 = vmul.f32 -1.442695, %v1189_v59 }
 0x26d   :  { %v5477_v13 = vpop.eup %5476  ;;  %v1265_v28 = vadd.f32 1.0, %v5475_v22  ;;  %5496 = vrcp.f32 %v1263_v38 }
 0x26e   :  { %v5479_v46 = vpop.eup %5478  ;;  %v1266_v53 = vadd.f32 1.0, %v5477_v13  ;;  %5498 = vrcp.f32 %v1264_v60  ;;  %v1350_v13 = vrot.slane %v7107_v16, 7  ;;  %v1354_v16 = vrot.slane %v7123_v27, 7 }
 0x26f   :  { %v5481_v21 = vpop.eup %5480  ;;  %v1267_v37 = vadd.f32 1.0, %v5479_v46  ;;  %5500 = vrcp.f32 %v1265_v28 }
 0x270   :  { %v5483_v50 = vpop.eup %5482  ;;  %v1268_v26 = vadd.f32 1.0, %v5481_v21  ;;  %5502 = vrcp.f32 %v1266_v53  ;;  %v1352_v21 = vrot.slane %v7114_v20, 7 }
 0x271   :  { %v5485_v34 = vpop.eup %5484  ;;  %v1269_v31 = vadd.f32 1.0, %v5483_v50  ;;  %5504 = vrcp.f32 %v1267_v37 }
 0x272   :  { %v5487_v17 = vpop.eup %5486  ;;  %5506 = vrcp.f32 %v1268_v26  ;;  %v1318_v38 = vadd.f32 1.0, %v5485_v34  ;;  %v1353_v26 = vrot.slane %v7118_v40, 7  ;;  %v1356_v40 = vrot.slane %v7128_v56, 7 }
 0x273   :  { %v5489_v51 = vpop.eup %5488  ;;  %5508 = vrcp.f32 %v1269_v31  ;;  %v1319_v19 = vadd.f32 1.0, %v5487_v17  ;;  %v1355_v17 = vrot.slane %v7125_v57, 7 }
 0x274   :  { %v5491_v22 = vpop.eup %5490  ;;  %5510 = vpow2.f32 %v4979_v54  ;;  %v1320_v28 = vadd.f32 1.0, %v5489_v51 }
 0x275   :  { %v5493_v60 = vpop.eup %5492  ;;  %5512 = vpow2.f32 %v4980_v61  ;;  %v1321_v53 = vadd.f32 1.0, %v5491_v22 }
 0x276   :  { %v5495_v46 = vpop.eup %5494  ;;  %5514 = vpow2.f32 %v4981_v47  ;;  %v1322_v37 = vadd.f32 1.0, %v5493_v60 }
 0x277   :  { %v5497_v41 = vpop.eup %5496  ;;  %v1366_v59 = vmul.f32 %v5495_v46, %v1350_v13  ;;  %5516 = vrcp.f32 %v1318_v38 }
 0x278   :  { %v5499_v50 = vpop.eup %5498  ;;  %v1367_v54 = vmul.f32 %v5497_v41, %v1351_v45  ;;  %5518 = vrcp.f32 %v1319_v19 }
 0x279   :  { %v5501_v34 = vpop.eup %5500  ;;  %v1368_v31 = vmul.f32 %v5499_v50, %v1352_v21  ;;  %v7342_v61 = vadd.f32 %v7311_v43, %v1366_v59  ;;  %5520 = vrcp.f32 %v1320_v28  ;;  %v1357_v43 = vrot.slane %v7131_v23, 7 }
 0x27a   :  { %v5503_v35 = vpop.eup %5502  ;;  %v1369_v20 = vmul.f32 %v5501_v34, %v1353_v26  ;;  %v7346_v47 = vadd.f32 %v7307_v2, %v1367_v54  ;;  %5522 = vrcp.f32 %v1321_v53 }
 0x27b   :  { %v5505_v51 = vpop.eup %5504  ;;  %5524 = vrcp.f32 %v1322_v37  ;;  %v1370_v38 = vmul.f32 %v5503_v35, %v1354_v16  ;;  %v7350_v27 = vadd.f32 %v7315_v52, %v1368_v31 }
 0x27c   :  { %v5507_v22 = vpop.eup %5506  ;;  %v1371_v19 = vmul.f32 %v5505_v51, %v1355_v17  ;;  %v7354_v60 = vadd.f32 %v7318_v49, %v1369_v20  ;;  %5526 = vtanh.f32 %v7342_v61 }
 0x27d   :  { %v5509_v57 = vpop.eup %5508  ;;  %v1372_v2 = vmul.f32 %v5507_v22, %v1356_v40  ;;  %v7358_v13 = vadd.f32 %v7321_v25, %v1370_v38  ;;  %5528 = vtanh.f32 %v7346_v47 }
 0x27e   :  { %v5511_v56 = vpop.eup %5510  ;;  %v1373_v28 = vmul.f32 %v5509_v57, %v1357_v43  ;;  %v7362_v52 = vadd.f32 %v7324_v42, %v1371_v19  ;;  %5530 = vtanh.f32 %v7350_v27 }
 0x27f   :  { %v5513_v23 = vpop.eup %5512  ;;  %v1323_v46 = vadd.f32 1.0, %v5511_v56  ;;  %v7366_v49 = vadd.f32 %v7327_v12, %v1372_v2  ;;  %5532 = vtanh.f32 %v7354_v60 }
 0x280   :  { %v5515_v45 = vpop.eup %5514  ;;  %v1324_v53 = vadd.f32 1.0, %v5513_v23  ;;  %v7370_v25 = vadd.f32 %v7330_v44, %v1373_v28  ;;  %5534 = vtanh.f32 %v7358_v13 }
 0x281   :  { %v5517_v41 = vpop.eup %5516  ;;  %5536 = vrcp.f32 %v1323_v46  ;;  %v1325_v42 = vadd.f32 1.0, %v5515_v45 }
 0x282   :  { %v5519_v21 = vpop.eup %5518  ;;  %5538 = vrcp.f32 %v1324_v53 }
 0x283   :  { %v5521_v59 = vpop.eup %5520  ;;  %5540 = vrcp.f32 %v1325_v42 }
 0x284   :  { %v5523_v37 = vpop.eup %5522  ;;  %5542 = vtanh.f32 %v7362_v52 }
 0x285   :  { %v5525_v12 = vpop.eup %5524  ;;  %5544 = vtanh.f32 %v7366_v49 }
 0x286   :  { %v5527_v50 = vpop.eup %5526  ;;  %5546 = vtanh.f32 %v7370_v25 }
 0x287   :  { %v5529_v44 = vpop.eup %5528  ;;  %v1398_v26 = vmul.f32 %v5527_v50, %v5517_v41 }
 0x288   :  { %v5531_v54 = vpop.eup %5530  ;;  %v1399_v34 = vmul.f32 %v5529_v44, %v5519_v21 }
 0x289   :  { %v5533_v16 = vpop.eup %5532  ;;  %v1400_v31 = vmul.f32 %v5531_v54, %v5521_v59  ;;  %v1406_v35 = vpack.c.bf16 %v1398_v26, %v1398_v26 }
 0x28a   :  { %v5535_v17 = vpop.eup %5534  ;;  %v1401_v20 = vmul.f32 %v5533_v16, %v5523_v37  ;;  %v1407_v51 = vpack.c.bf16 %v1399_v34, %v1399_v34 }
 0x28b   :  { %v5537_v40 = vpop.eup %5536  ;;  %v1402_v38 = vmul.f32 %v5535_v17, %v5525_v12  ;;  %v1408_v22 = vpack.c.bf16 %v1400_v31, %v1400_v31  ;;  %v1422_v43 = vunpack.c.l.b16 %v1406_v35 }
 0x28c   :  { %v5539_v19 = vpop.eup %5538  ;;  %v1409_v57 = vpack.c.bf16 %v1401_v20, %v1401_v20  ;;  %v1423_v28 = vunpack.c.l.b16 %v1407_v51 }
 0x28d   :  { %v5541_v2 = vpop.eup %5540  ;;  %v1410_v56 = vpack.c.bf16 %v1402_v38, %v1402_v38  ;;  %v1424_v23 = vunpack.c.l.b16 %v1408_v22  ;;  %v1430_v46 = vrot.slane %v1422_v43, 1 }
 0x28e   :  { %v5543_v45 = vpop.eup %5542  ;;  %v1425_v53 = vunpack.c.l.b16 %v1409_v57 }
 0x28f   :  { %v5545_v41 = vpop.eup %5544  ;;  %v1403_v42 = vmul.f32 %v5543_v45, %v5537_v40  ;;  %v1426_v21 = vunpack.c.l.b16 %v1410_v56  ;;  %v1431_v59 = vsel %vm990_vm0, %v1423_v28, %v1430_v46  ;;  %v1432_v37 = vrot.slane %v1424_v23, 7  ;;  %v7387_v23 = vld [vmem:[%s9052_s3 + $0x8] ss:$16 sps:$4 sm:$0xff]   ;;  %v7394_v46 = vld [vmem:[%s9052_s3 + $0x2c] ss:$16 sps:$4 sm:$0xff]  }
 0x290   :  { %v5547_v50 = vpop.eup %5546  ;;  %v1404_v44 = vmul.f32 %v5545_v41, %v5539_v19  ;;  %v1434_v12 = vrot.slane %v1425_v53, 6 }
 0x291   :  { %v1405_v26 = vmul.f32 %v5547_v50, %v5541_v2  ;;  %v1411_v54 = vpack.c.bf16 %v1403_v42, %v1403_v42  ;;  %v1433_v34 = vsel %vm993_vm1, %v1432_v37, %v1431_v59  ;;  %v1436_v16 = vrot.slane %v1426_v21, 5 }
 0x292   :  { %v1412_v31 = vpack.c.bf16 %v1404_v44, %v1404_v44  ;;  %v1435_v35 = vsel %vm996_vm2, %v1434_v12, %v1433_v34  ;;  %v9196_v12 = vld [vmem:[#allocation12_spill] sm:$0xff] }
 0x293   :  { %v1413_v17 = vpack.c.bf16 %v1405_v26, %v1405_v26  ;;  %v1427_v20 = vunpack.c.l.b16 %v1411_v54  ;;  %v1437_v51 = vsel %vm999_vm3, %v1436_v16, %v1435_v35  ;;  %v9197_v16 = vld [vmem:[#allocation8_spill] sm:$0xff]  ;;  %v9198_v35 = vld [vmem:[#allocation9_spill] sm:$0xff] }
 0x294   :  { %v1428_v40 = vunpack.c.l.b16 %v1412_v31 }
 0x295   :  { %v1429_v38 = vunpack.c.l.b16 %v1413_v17  ;;  %v1438_v22 = vrot.slane %v1427_v20, 4  ;;  %v9199_v20 = vld [vmem:[#allocation14_spill] sm:$0xff] }
 0x296   :  { %v1440_v43 = vrot.slane %v1428_v40, 3  ;;  %v9200_v40 = vld [vmem:[#allocation16_spill] sm:$0xff] }
 0x297   :  { %v1439_v57 = vsel %vm1002_vm4, %v1438_v22, %v1437_v51  ;;  %v1442_v19 = vrot.slane %v1429_v38, 2 }
 0x298   :  { %v1441_v2 = vsel %vm1005_vm5, %v1440_v43, %v1439_v57  ;;  %v9201_v57 = vld [vmem:[#allocation18_spill] sm:$0xff] }
 0x299   :  { %v1443_v56 = vsel %vm1008_vm6, %v1442_v19, %v1441_v2  ;;  %v9202_v2 = vld [vmem:[#allocation20_spill] sm:$0xff] }
 0x29a   :  { %v1444_v28 = vpack.c.b16 %v1443_v56, %v1443_v56 }
 0x29c   :  { %1479 = vmatmul.mubr.bf16.vlgmr.msra.gmra.mrb[8].mxu0 %v1444_v28  ;;  %1520 = vmatmul.mubr.bf16.vlgmr.msra.gmra.mrb[40].mxu1 %v1444_v28 }
 0x29d   :  { %1881 = vmatpush1.bf16.msra.mxu0 %v7147_v32  ;;  %1922 = vmatpush1.bf16.msra.mxu1 %v7387_v23  ;;  %v7403_v32 = vld [vmem:[%s9052_s3 + $0x28] ss:$16 sps:$4 sm:$0xff]  }
 0x29e   :  { %1882 = vmatprep.subr.bf16.mxu0 %v7154_v29  ;;  %1923 = vmatprep.subr.bf16.mxu1 %v7394_v46  ;;  %v7410_v29 = vld [vmem:[%s9052_s3 + $0x4c] ss:$16 sps:$4 sm:$0xff]  }
 0x29f   :  { %1912 = vmatprep.mubr.bf16.mxu0 %v9171_v18  ;;  %1953 = vmatprep.mubr.bf16.mxu1 %v9171_v18 }
 0x2a1   :  { %1883 = vmatpush1.bf16.msra.mxu0 %v7163_v14  ;;  %1924 = vmatpush1.bf16.msra.mxu1 %v7403_v32  ;;  %v7417_v14 = vld [vmem:[%s9052_s3 + $0x48] ss:$16 sps:$4 sm:$0xff]  }
 0x2a2   :  { %1884 = vmatprep.subr.bf16.mxu0 %v7170_v62  ;;  %1925 = vmatprep.subr.bf16.mxu1 %v7410_v29  ;;  %v7424_v62 = vld [vmem:[%s9052_s3 + $0x6c] ss:$16 sps:$4 sm:$0xff]  }
 0x2a5   :  { %1885 = vmatpush1.bf16.msra.mxu0 %v7177_v63  ;;  %1926 = vmatpush1.bf16.msra.mxu1 %v7417_v14  ;;  %v7431_v63 = vld [vmem:[%s9052_s3 + $0x68] ss:$16 sps:$4 sm:$0xff]  }
 0x2a6   :  { %1886 = vmatprep.subr.bf16.mxu0 %v7184_v0  ;;  %1927 = vmatprep.subr.bf16.mxu1 %v7424_v62  ;;  %v7438_v0 = vld [vmem:[%s9052_s3 + $0x8c] ss:$16 sps:$4 sm:$0xff]  }
 0x2a9   :  { %1887 = vmatpush1.bf16.msra.mxu0 %v7191_v1  ;;  %1928 = vmatpush1.bf16.msra.mxu1 %v7431_v63  ;;  %v7445_v1 = vld [vmem:[%s9052_s3 + $0x88] ss:$16 sps:$4 sm:$0xff]  }
 0x2aa   :  { %1888 = vmatprep.subr.bf16.mxu0 %v7198_v3  ;;  %1929 = vmatprep.subr.bf16.mxu1 %v7438_v0  ;;  %v7452_v3 = vld [vmem:[%s9052_s3 + $0xac] ss:$16 sps:$4 sm:$0xff]  }
 0x2ad   :  { %1889 = vmatpush1.bf16.msra.mxu0 %v7205_v4  ;;  %1930 = vmatpush1.bf16.msra.mxu1 %v7445_v1  ;;  %v7459_v4 = vld [vmem:[%s9052_s3 + $0xa8] ss:$16 sps:$4 sm:$0xff]  }
 0x2ae   :  { %1890 = vmatprep.subr.bf16.mxu0 %v7212_v5  ;;  %1931 = vmatprep.subr.bf16.mxu1 %v7452_v3  ;;  %v7466_v5 = vld [vmem:[%s9052_s3 + $0xcc] ss:$16 sps:$4 sm:$0xff]  }
 0x2b1   :  { %1891 = vmatpush1.bf16.msra.mxu0 %v7219_v6  ;;  %1932 = vmatpush1.bf16.msra.mxu1 %v7459_v4  ;;  %v7473_v6 = vld [vmem:[%s9052_s3 + $0xc8] ss:$16 sps:$4 sm:$0xff]  }
 0x2b2   :  { %1892 = vmatprep.subr.bf16.mxu0 %v7226_v7  ;;  %1933 = vmatprep.subr.bf16.mxu1 %v7466_v5  ;;  %v7480_v7 = vld [vmem:[%s9052_s3 + $0xec] ss:$16 sps:$4 sm:$0xff]  }
 0x2b5   :  { %1893 = vmatpush1.bf16.msra.mxu0 %v7233_v8  ;;  %1934 = vmatpush1.bf16.msra.mxu1 %v7473_v6  ;;  %v7487_v8 = vld [vmem:[%s9052_s3 + $0xe8] ss:$16 sps:$4 sm:$0xff]  }
 0x2b6   :  { %1894 = vmatprep.subr.bf16.mxu0 %v7240_v9  ;;  %1935 = vmatprep.subr.bf16.mxu1 %v7480_v7  ;;  %9194 = vst [vmem:[#allocation27_spill] sm:$0xff] %v7487_v8  ;;  %v7494_v9 = vld [vmem:[%s9052_s3 + $0xc] ss:$16 sps:$4 sm:$0xff]  }
 0x2b7   :  { %9195 = vst [vmem:[#allocation37_spill] sm:$0xff] %v7494_v9 }
 0x2b9   :  { %1895 = vmatpush1.bf16.msra.mxu0 %v7247_v10  ;;  %1936 = vmatpush1.bf16.msra.mxu1 %v7487_v8 }
 0x2ba   :  { %2314 = vmatprep.subr.bf16.mxu0 %v7254_v11  ;;  %2355 = vmatprep.subr.bf16.mxu1 %v7494_v9  ;;  %v9203_v9 = vld [vmem:[#allocation22_spill] sm:$0xff] }
 0x36f   :  { %v1480_v45 = vpop.f32.mrb[8].mxu0  ;;  %v7497_v53 = vpop.f32.mrb[40].mxu1 }
 0x370   :  { %v1532_v10 = vrot.slane %v1480_v45, 6  ;;  %v1536_v41 = vrot.slane %v1480_v45, 7  ;;  %v1540_v42 = vrot.slane %v1480_v45, 1  ;;  %v1544_v21 = vrot.slane %v1480_v45, 2  ;;  %v7499_v59 = vpop.f32.mrb[9].mxu0  ;;  %v7501_v37 = vpop.f32.mrb[41].mxu1 }
 0x371   :  { %v1548_v50 = vrot.slane %v1480_v45, 3  ;;  %v1552_v11 = vrot.slane %v1480_v45, 4  ;;  %v1556_v44 = vrot.slane %v1480_v45, 5  ;;  %v1600_v26 = vadd.f32 %v1480_v45, %v9196_v12  ;;  %v1484_v54 = vpop.f32.mrb[10].mxu0  ;;  %v1525_v34 = vpop.f32.mrb[42].mxu1 }
 0x372   :  { %v1592_v31 = vadd.f32 %v1532_v10, %v9197_v16  ;;  %v1596_v17 = vadd.f32 %v1536_v41, %v9198_v35  ;;  %v1604_v51 = vadd.f32 %v1540_v42, %v9199_v20  ;;  %v1608_v38 = vadd.f32 %v1544_v21, %v9200_v40  ;;  %v1485_v22 = vpop.f32.mrb[11].mxu0  ;;  %v1526_v43 = vpop.f32.mrb[43].mxu1 }
 0x373   :  { %v1612_v19 = vadd.f32 %v1548_v50, %v9201_v57  ;;  %v1616_v56 = vadd.f32 %v1552_v11, %v9202_v2  ;;  %v4984_v28 = vmul.f32 -1.442695, %v1600_v26  ;;  %v1620_v8 = vadd.f32 %v1556_v44, %v9203_v9  ;;  %v9204_v26 = vld [vmem:[#allocation26_spill] sm:$0xff]  ;;  %v9213_v2 = vld [vmem:[#allocation13_spill] sm:$0xff]  ;;  %v9214_v57 = vld [vmem:[#allocation36_spill] sm:$0xff] }
 0x374   :  { %v4982_v45 = vmul.f32 -1.442695, %v1592_v31  ;;  %v4983_v54 = vmul.f32 -1.442695, %v1596_v17  ;;  %v4985_v34 = vmul.f32 -1.442695, %v1604_v51 }
 0x375   :  { %5548 = vpow2.f32 %v4984_v28  ;;  %v4986_v10 = vmul.f32 -1.442695, %v1608_v38  ;;  %v4987_v41 = vmul.f32 -1.442695, %v1612_v19  ;;  %v1534_v42 = vrot.slane %v7497_v53, 6  ;;  %v9205_v17 = vld [vmem:[#allocation28_spill] sm:$0xff] }
 0x376   :  { %5550 = vpow2.f32 %v4982_v45  ;;  %v1538_v21 = vrot.slane %v7497_v53, 7  ;;  %v4988_v22 = vmul.f32 -1.442695, %v1616_v56  ;;  %v4989_v50 = vmul.f32 -1.442695, %v1620_v8  ;;  %v9206_v38 = vld [vmem:[#allocation30_spill] sm:$0xff] }
 0x377   :  { %5552 = vpow2.f32 %v4983_v54  ;;  %v1542_v11 = vrot.slane %v7497_v53, 1  ;;  %v1546_v44 = vrot.slane %v7497_v53, 2  ;;  %v1594_v31 = vadd.f32 %v1534_v42, %v9204_v26  ;;  %v9207_v19 = vld [vmem:[#allocation32_spill] sm:$0xff]  ;;  %v9208_v56 = vld [vmem:[#allocation33_spill] sm:$0xff]  ;;  %v9211_v26 = vld [vmem:[#allocation10_spill] sm:$0xff] }
 0x378   :  { %5554 = vpow2.f32 %v4985_v34  ;;  %v1598_v51 = vadd.f32 %v1538_v21, %v9205_v17  ;;  %v1602_v43 = vadd.f32 %v7497_v53, %v9206_v38  ;;  %v1550_v54 = vrot.slane %v7497_v53, 3  ;;  %v9210_v38 = vld [vmem:[#allocation35_spill] sm:$0xff] }
 0x379   :  { %5556 = vpow2.f32 %v4986_v10  ;;  %v1606_v28 = vadd.f32 %v1542_v11, %v9207_v19  ;;  %v1610_v45 = vadd.f32 %v1546_v44, %v9208_v56  ;;  %v1554_v34 = vrot.slane %v7497_v53, 4  ;;  %v9209_v19 = vld [vmem:[#allocation34_spill] sm:$0xff] }
 0x37a   :  { %5558 = vpow2.f32 %v4987_v41  ;;  %v1558_v44 = vrot.slane %v7497_v53, 5  ;;  %v1549_v53 = vrot.slane %v7499_v59, 3 }
 0x37b   :  { %5560 = vpow2.f32 %v4988_v22  ;;  %v1533_v22 = vrot.slane %v7499_v59, 6 }
 0x37c   :  { %5562 = vpow2.f32 %v4989_v50  ;;  %v1622_v40 = vadd.f32 %v1558_v44, %v9214_v57 }
 0x37d   :  { %5564 = vtanh.f32 %v1594_v31  ;;  %v1537_v31 = vrot.slane %v7499_v59, 7  ;;  %v1593_v9 = vadd.f32 %v1533_v22, %v9211_v26  ;;  %v9215_v22 = vld [vmem:[#allocation15_spill] sm:$0xff] }
 0x37e   :  { %5566 = vtanh.f32 %v1598_v51 }
 0x37f   :  { %v5549_v8 = vpop.eup %5548  ;;  %5568 = vtanh.f32 %v1602_v43  ;;  %v1614_v43 = vadd.f32 %v1550_v54, %v9209_v19  ;;  %v1553_v54 = vrot.slane %v7499_v59, 4  ;;  %v1557_v19 = vrot.slane %v7499_v59, 5 }
 0x380   :  { %v5551_v10 = vpop.eup %5550  ;;  %v1650_v41 = vadd.f32 1.0, %v5549_v8  ;;  %5570 = vtanh.f32 %v1606_v28  ;;  %v1618_v8 = vadd.f32 %v1554_v34, %v9210_v38  ;;  %v9212_v34 = vld [vmem:[#allocation11_spill] sm:$0xff]  ;;  %v4990_v35 = vmul.f32 -1.442695, %v1593_v9 }
 0x381   :  { %v5553_v42 = vpop.eup %5552  ;;  %v1648_v21 = vadd.f32 1.0, %v5551_v10  ;;  %5572 = vtanh.f32 %v1610_v45  ;;  %v1541_v45 = vrot.slane %v7499_v59, 1  ;;  %v1545_v10 = vrot.slane %v7499_v59, 2 }
 0x382   :  { %v5555_v50 = vpop.eup %5554  ;;  %v1649_v11 = vadd.f32 1.0, %v5553_v42  ;;  %5574 = vrcp.f32 %v1650_v41  ;;  %v1597_v38 = vadd.f32 %v1537_v31, %v9212_v34  ;;  %v1535_v31 = vrot.slane %v7501_v37, 6 }
 0x383   :  { %v5557_v51 = vpop.eup %5556  ;;  %v1651_v56 = vadd.f32 1.0, %v5555_v50  ;;  %5576 = vrcp.f32 %v1648_v21  ;;  %v1605_v26 = vadd.f32 %v1541_v45, %v9215_v22  ;;  %v1621_v45 = vadd.f32 %v1557_v19, %v9192_v30 }
 0x384   :  { %v5559_v28 = vpop.eup %5558  ;;  %v1652_v17 = vadd.f32 1.0, %v5557_v51  ;;  %5578 = vrcp.f32 %v1649_v11  ;;  %v4991_v34 = vmul.f32 -1.442695, %v1597_v38  ;;  %v1547_v38 = vrot.slane %v7501_v37, 2 }
 0x385   :  { %v5561_v42 = vpop.eup %5560  ;;  %v1653_v41 = vadd.f32 1.0, %v5559_v28  ;;  %5580 = vrcp.f32 %v1651_v56  ;;  %v1601_v28 = vadd.f32 %v7499_v59, %v9213_v2  ;;  %v1539_v59 = vrot.slane %v7501_v37, 7 }
 0x386   :  { %v5563_v50 = vpop.eup %5562  ;;  %v1654_v21 = vadd.f32 1.0, %v5561_v42  ;;  %5582 = vrcp.f32 %v1652_v17  ;;  %v9216_v42 = vld [vmem:[#allocation17_spill] sm:$0xff] }
 0x387   :  { %v5565_v51 = vpop.eup %5564  ;;  %v1655_v11 = vadd.f32 1.0, %v5563_v50  ;;  %5584 = vrcp.f32 %v1653_v41  ;;  %v1609_v17 = vadd.f32 %v1545_v10, %v9216_v42  ;;  %v1613_v41 = vadd.f32 %v1549_v53, %v9190_v36 }
 0x388   :  { %v5567_v56 = vpop.eup %5566  ;;  %5586 = vrcp.f32 %v1654_v21  ;;  %v9217_v21 = vld [vmem:[#allocation21_spill] sm:$0xff]  ;;  %v4992_v22 = vmul.f32 -1.442695, %v1601_v28  ;;  %v1543_v42 = vrot.slane %v7501_v37, 1  ;;  %v1595_v53 = vadd.f32 %v1535_v31, %v9193_v58 }
 0x389   :  { %v5569_v12 = vpop.eup %5568  ;;  %5588 = vrcp.f32 %v1655_v11  ;;  %v1617_v44 = vadd.f32 %v1553_v54, %v9217_v21  ;;  %v4993_v11 = vmul.f32 -1.442695, %v1605_v26  ;;  %v4994_v9 = vmul.f32 -1.442695, %v1609_v17  ;;  %v9218_v54 = vld [vmem:[#allocation29_spill] sm:$0xff] }
 0x38a   :  { %v5571_v50 = vpop.eup %5570  ;;  %5590 = vtanh.f32 %v1614_v43  ;;  %v4995_v19 = vmul.f32 -1.442695, %v1613_v41  ;;  %v1599_v28 = vadd.f32 %v1539_v59, %v9218_v54  ;;  %v4997_v31 = vmul.f32 -1.442695, %v1621_v45 }
 0x38b   :  { %v5573_v2 = vpop.eup %5572  ;;  %5592 = vtanh.f32 %v1618_v8  ;;  %v4996_v17 = vmul.f32 -1.442695, %v1617_v44  ;;  %v1611_v41 = vadd.f32 %v1547_v38, %v7053_v15 }
 0x38c   :  { %v5575_v10 = vpop.eup %5574  ;;  %5594 = vtanh.f32 %v1622_v40 }
 0x38d   :  { %v5577_v57 = vpop.eup %5576  ;;  %v7546_v43 = vmul.f32 %v5575_v10, %v5569_v12  ;;  %5596 = vpow2.f32 %v4990_v35  ;;  %v1603_v12 = vadd.f32 %v7501_v37, %v7039_v55  ;;  %v5002_v45 = vmul.f32 -1.442695, %v1611_v41 }
 0x38e   :  { %v5579_v8 = vpop.eup %5578  ;;  %v7550_v36 = vmul.f32 %v5577_v57, %v5565_v51  ;;  %5598 = vpow2.f32 %v4991_v34  ;;  %v1607_v57 = vadd.f32 %v1543_v42, %v7046_v48 }
 0x38f   :  { %v5581_v40 = vpop.eup %5580  ;;  %v7553_v26 = vmul.f32 %v5579_v8, %v5567_v56  ;;  %5600 = vpow2.f32 %v4992_v22  ;;  %v4998_v56 = vmul.f32 -1.442695, %v1595_v53  ;;  %v4999_v22 = vmul.f32 -1.442695, %v1599_v28 }
 0x390   :  { %v5583_v35 = vpop.eup %5582  ;;  %v7557_v10 = vmul.f32 %v5581_v40, %v5571_v50  ;;  %5602 = vpow2.f32 %v4993_v11  ;;  %v5000_v8 = vmul.f32 -1.442695, %v1603_v12  ;;  %v5001_v50 = vmul.f32 -1.442695, %v1607_v57 }
 0x391   :  { %v5585_v51 = vpop.eup %5584  ;;  %v7560_v34 = vmul.f32 %v5583_v35, %v5573_v2  ;;  %5604 = vpow2.f32 %v4994_v9  ;;  %v1551_v9 = vrot.slane %v7501_v37, 3  ;;  %v1559_v12 = vrot.slane %v7501_v37, 5 }
 0x392   :  { %v5587_v59 = vpop.eup %5586  ;;  %5606 = vpow2.f32 %v4995_v19  ;;  %v1555_v19 = vrot.slane %v7501_v37, 4 }
 0x393   :  { %v5589_v44 = vpop.eup %5588  ;;  %5608 = vpow2.f32 %v4996_v17 }
 0x394   :  { %v5591_v55 = vpop.eup %5590  ;;  %5610 = vpow2.f32 %v4997_v31 }
 0x395   :  { %v5593_v11 = vpop.eup %5592  ;;  %5612 = vpow2.f32 %v4998_v56  ;;  %v7563_v42 = vmul.f32 %v5591_v55, %v5585_v51  ;;  %v1615_v51 = vadd.f32 %v1551_v9, %v7060_v39 }
 0x396   :  { %v5595_v2 = vpop.eup %5594  ;;  %5614 = vpow2.f32 %v4999_v22  ;;  %v7566_v38 = vmul.f32 %v5593_v11, %v5587_v59  ;;  %v1619_v59 = vadd.f32 %v1555_v19, %v7065_v33 }
 0x397   :  { %v5597_v53 = vpop.eup %5596  ;;  %5616 = vpow2.f32 %v5000_v8  ;;  %v7569_v28 = vmul.f32 %v5595_v2, %v5589_v44  ;;  %v1623_v8 = vadd.f32 %v1559_v12, %v7098_v24  ;;  %v5003_v2 = vmul.f32 -1.442695, %v1615_v51 }
 0x398   :  { %v5599_v40 = vpop.eup %5598  ;;  %v1696_v17 = vadd.f32 1.0, %v5597_v53  ;;  %5618 = vpow2.f32 %v5001_v50  ;;  %v5004_v9 = vmul.f32 -1.442695, %v1619_v59  ;;  %v1785_v51 = vrot.slane %v7346_v47, 7 }
 0x399   :  { %v5601_v35 = vpop.eup %5600  ;;  %v1697_v55 = vadd.f32 1.0, %v5599_v40  ;;  %5620 = vpow2.f32 %v5002_v45 }
 0x39a   :  { %v5603_v31 = vpop.eup %5602  ;;  %v1698_v57 = vadd.f32 1.0, %v5601_v35  ;;  %5622 = vrcp.f32 %v1696_v17  ;;  %v5005_v35 = vmul.f32 -1.442695, %v1623_v8 }
 0x39b   :  { %v5605_v41 = vpop.eup %5604  ;;  %v1699_v56 = vadd.f32 1.0, %v5603_v31  ;;  %5624 = vrcp.f32 %v1697_v55 }
 0x39c   :  { %v5607_v22 = vpop.eup %5606  ;;  %v1700_v44 = vadd.f32 1.0, %v5605_v41  ;;  %5626 = vrcp.f32 %v1698_v57  ;;  %v1784_v41 = vrot.slane %v7342_v61, 7  ;;  %v1788_v61 = vrot.slane %v7358_v13, 7 }
 0x39d   :  { %v5609_v37 = vpop.eup %5608  ;;  %v1701_v50 = vadd.f32 1.0, %v5607_v22  ;;  %5628 = vrcp.f32 %v1699_v56 }
 0x39e   :  { %v5611_v11 = vpop.eup %5610  ;;  %v1702_v45 = vadd.f32 1.0, %v5609_v37  ;;  %5630 = vrcp.f32 %v1700_v44  ;;  %v1786_v37 = vrot.slane %v7350_v27, 7 }
 0x39f   :  { %v5613_v53 = vpop.eup %5612  ;;  %v1703_v40 = vadd.f32 1.0, %v5611_v11  ;;  %5632 = vrcp.f32 %v1701_v50 }
 0x3a0   :  { %v5615_v17 = vpop.eup %5614  ;;  %5634 = vrcp.f32 %v1702_v45  ;;  %v1752_v55 = vadd.f32 1.0, %v5613_v53  ;;  %v1787_v45 = vrot.slane %v7354_v60, 7  ;;  %v1790_v60 = vrot.slane %v7366_v49, 7 }
 0x3a1   :  { %v5617_v19 = vpop.eup %5616  ;;  %5636 = vrcp.f32 %v1703_v40  ;;  %v1753_v12 = vadd.f32 1.0, %v5615_v17  ;;  %v1789_v17 = vrot.slane %v7362_v52, 7 }
 0x3a2   :  { %v5619_v31 = vpop.eup %5618  ;;  %5638 = vpow2.f32 %v5003_v2  ;;  %v1754_v56 = vadd.f32 1.0, %v5617_v19 }
 0x3a3   :  { %v5621_v57 = vpop.eup %5620  ;;  %5640 = vpow2.f32 %v5004_v9  ;;  %v1755_v44 = vadd.f32 1.0, %v5619_v31 }
 0x3a4   :  { %v5623_v22 = vpop.eup %5622  ;;  %5642 = vpow2.f32 %v5005_v35  ;;  %v1756_v50 = vadd.f32 1.0, %v5621_v57 }
 0x3a5   :  { %v5625_v59 = vpop.eup %5624  ;;  %v1800_v8 = vmul.f32 %v5623_v22, %v1784_v41  ;;  %5644 = vrcp.f32 %v1752_v55 }
 0x3a6   :  { %v5627_v11 = vpop.eup %5626  ;;  %v1801_v2 = vmul.f32 %v5625_v59, %v1785_v51  ;;  %5646 = vrcp.f32 %v1753_v12 }
 0x3a7   :  { %v5629_v53 = vpop.eup %5628  ;;  %v1802_v40 = vmul.f32 %v5627_v11, %v1786_v37  ;;  %v7581_v9 = vadd.f32 %v7550_v36, %v1800_v8  ;;  %5648 = vrcp.f32 %v1754_v56  ;;  %v1791_v36 = vrot.slane %v7370_v25, 7 }
 0x3a8   :  { %v5631_v47 = vpop.eup %5630  ;;  %v1803_v27 = vmul.f32 %v5629_v53, %v1787_v45  ;;  %v7585_v35 = vadd.f32 %v7553_v26, %v1801_v2  ;;  %5650 = vrcp.f32 %v1755_v44 }
 0x3a9   :  { %v5633_v19 = vpop.eup %5632  ;;  %v7589_v55 = vadd.f32 %v7546_v43, %v1802_v40  ;;  %5652 = vrcp.f32 %v1756_v50  ;;  %v1804_v13 = vmul.f32 %v5631_v47, %v1788_v61 }
 0x3aa   :  { %v5635_v31 = vpop.eup %5634  ;;  %v1805_v12 = vmul.f32 %v5633_v19, %v1789_v17  ;;  %v7593_v57 = vadd.f32 %v7557_v10, %v1803_v27  ;;  %5654 = vtanh.f32 %v7581_v9 }
 0x3ab   :  { %v5637_v52 = vpop.eup %5636  ;;  %v1806_v26 = vmul.f32 %v5635_v31, %v1790_v60  ;;  %v7597_v41 = vadd.f32 %v7560_v34, %v1804_v13  ;;  %5656 = vtanh.f32 %v7585_v35 }
 0x3ac   :  { %v5639_v49 = vpop.eup %5638  ;;  %v1807_v43 = vmul.f32 %v5637_v52, %v1791_v36  ;;  %v7601_v56 = vadd.f32 %v7563_v42, %v1805_v12  ;;  %5658 = vtanh.f32 %v7589_v55 }
 0x3ad   :  { %v5641_v25 = vpop.eup %5640  ;;  %v1757_v22 = vadd.f32 1.0, %v5639_v49  ;;  %v7605_v10 = vadd.f32 %v7566_v38, %v1806_v26  ;;  %5660 = vtanh.f32 %v7593_v57 }
 0x3ae   :  { %v5643_v51 = vpop.eup %5642  ;;  %v1758_v44 = vadd.f32 1.0, %v5641_v25  ;;  %v7609_v34 = vadd.f32 %v7569_v28, %v1807_v43  ;;  %5662 = vtanh.f32 %v7597_v41 }
 0x3af   :  { %v5645_v59 = vpop.eup %5644  ;;  %5664 = vrcp.f32 %v1757_v22  ;;  %v1759_v42 = vadd.f32 1.0, %v5643_v51 }
 0x3b0   :  { %v5647_v37 = vpop.eup %5646  ;;  %5666 = vrcp.f32 %v1758_v44 }
 0x3b1   :  { %v5649_v8 = vpop.eup %5648  ;;  %5668 = vrcp.f32 %v1759_v42 }
 0x3b2   :  { %v5651_v50 = vpop.eup %5650  ;;  %5670 = vtanh.f32 %v7601_v56 }
 0x3b3   :  { %v5653_v38 = vpop.eup %5652  ;;  %5672 = vtanh.f32 %v7605_v10 }
 0x3b4   :  { %v5655_v11 = vpop.eup %5654  ;;  %5674 = vtanh.f32 %v7609_v34 }
 0x3b5   :  { %v5657_v28 = vpop.eup %5656  ;;  %v1832_v45 = vmul.f32 %v5655_v11, %v5645_v59 }
 0x3b6   :  { %v5659_v2 = vpop.eup %5658  ;;  %v1833_v53 = vmul.f32 %v5657_v28, %v5647_v37 }
 0x3b7   :  { %v5661_v61 = vpop.eup %5660  ;;  %v1834_v40 = vmul.f32 %v5659_v2, %v5649_v8  ;;  %v1840_v47 = vpack.c.bf16 %v1832_v45, %v1832_v45 }
 0x3b8   :  { %v5663_v17 = vpop.eup %5662  ;;  %v1835_v27 = vmul.f32 %v5661_v61, %v5651_v50  ;;  %v1841_v19 = vpack.c.bf16 %v1833_v53, %v1833_v53 }
 0x3b9   :  { %v5665_v60 = vpop.eup %5664  ;;  %v1836_v13 = vmul.f32 %v5663_v17, %v5653_v38  ;;  %v1842_v31 = vpack.c.bf16 %v1834_v40, %v1834_v40  ;;  %v1856_v36 = vunpack.c.l.b16 %v1840_v47 }
 0x3ba   :  { %v5667_v12 = vpop.eup %5666  ;;  %v1843_v52 = vpack.c.bf16 %v1835_v27, %v1835_v27  ;;  %v1857_v26 = vunpack.c.l.b16 %v1841_v19 }
 0x3bb   :  { %v5669_v49 = vpop.eup %5668  ;;  %v1844_v43 = vpack.c.bf16 %v1836_v13, %v1836_v13  ;;  %v1864_v25 = vrot.slane %v1856_v36, 2  ;;  %v1858_v37 = vunpack.c.l.b16 %v1842_v31 }
 0x3bc   :  { %v5671_v22 = vpop.eup %5670  ;;  %v1859_v51 = vunpack.c.l.b16 %v1843_v52  ;;  %v1865_v44 = vrot.slane %v1857_v26, 1 }
 0x3bd   :  { %v5673_v59 = vpop.eup %5672  ;;  %v1837_v42 = vmul.f32 %v5671_v22, %v5665_v60  ;;  %v1860_v8 = vunpack.c.l.b16 %v1844_v43  ;;  %v7632_v22 = vld [vmem:[%s9052_s3 + $0x24] ss:$16 sps:$4 sm:$0xff]  }
 0x3be   :  { %v5675_v11 = vpop.eup %5674  ;;  %v1838_v50 = vmul.f32 %v5673_v59, %v5667_v12  ;;  %v1866_v28 = vsel %vm990_vm0, %v1865_v44, %v1864_v25  ;;  %v1868_v38 = vrot.slane %v1859_v51, 7  ;;  %v7625_v25 = vld [vmem:[%s9052_s3] ss:$16 sps:$4 sm:$0xff]   ;;  %v9220_v44 = vld [vmem:[#allocation27_spill] sm:$0xff]  ;;  %v9222_v59 = vld [vmem:[#allocation37_spill] sm:$0xff] }
 0x3bf   :  { %v1839_v45 = vmul.f32 %v5675_v11, %v5669_v49  ;;  %v1845_v2 = vpack.c.bf16 %v1837_v42, %v1837_v42  ;;  %v1867_v53 = vsel %vm993_vm1, %v1858_v37, %v1866_v28  ;;  %v1870_v61 = vrot.slane %v1860_v8, 6  ;;  %v7641_v51 = vld [vmem:[%s9052_s3 + $0x20] ss:$16 sps:$4 sm:$0xff]  }
 0x3c0   :  { %v1846_v40 = vpack.c.bf16 %v1838_v50, %v1838_v50  ;;  %v1869_v47 = vsel %vm996_vm2, %v1868_v38, %v1867_v53 }
 0x3c1   :  { %v1847_v17 = vpack.c.bf16 %v1839_v45, %v1839_v45  ;;  %v1861_v27 = vunpack.c.l.b16 %v1845_v2  ;;  %v1871_v19 = vsel %vm999_vm3, %v1870_v61, %v1869_v47 }
 0x3c2   :  { %v1862_v60 = vunpack.c.l.b16 %v1846_v40 }
 0x3c3   :  { %v1863_v13 = vunpack.c.l.b16 %v1847_v17  ;;  %v1872_v31 = vrot.slane %v1861_v27, 5  ;;  %v9223_v27 = vld [vmem:[#allocation9_spill] sm:$0xff] }
 0x3c4   :  { %v1874_v36 = vrot.slane %v1862_v60, 4  ;;  %v9224_v60 = vld [vmem:[#allocation12_spill] sm:$0xff] }
 0x3c5   :  { %v1873_v12 = vsel %vm1002_vm4, %v1872_v31, %v1871_v19  ;;  %v1876_v52 = vrot.slane %v1863_v13, 3  ;;  %v9225_v31 = vld [vmem:[#allocation16_spill] sm:$0xff] }
 0x3c6   :  { %v1875_v26 = vsel %vm1005_vm5, %v1874_v36, %v1873_v12 }
 0x3c7   :  { %v1877_v49 = vsel %vm1008_vm6, %v1876_v52, %v1875_v26  ;;  %v9226_v26 = vld [vmem:[#allocation18_spill] sm:$0xff] }
 0x3c8   :  { %v1878_v43 = vpack.c.b16 %v1877_v49, %v1877_v49 }
 0x3ca   :  { %1913 = vmatmul.mubr.bf16.vlgmr.msra.gmra.mrb[12].mxu0 %v1878_v43  ;;  %1954 = vmatmul.mubr.bf16.vlgmr.msra.gmra.mrb[44].mxu1 %v1878_v43  ;;  %v9227_v43 = vld [vmem:[#allocation20_spill] sm:$0xff] }
 0x3cb   :  { %2315 = vmatpush1.bf16.msra.mxu0 %v7625_v25  ;;  %2356 = vmatpush1.bf16.msra.mxu1 %v7387_v23  ;;  %v7648_v23 = vld [vmem:[%s9052_s3 + $0x44] ss:$16 sps:$4 sm:$0xff]  }
 0x3cc   :  { %2316 = vmatprep.subr.bf16.mxu0 %v7632_v22  ;;  %2357 = vmatprep.subr.bf16.mxu1 %v7394_v46  ;;  %v7655_v46 = vld [vmem:[%s9052_s3 + $0x40] ss:$16 sps:$4 sm:$0xff]  }
 0x3cd   :  { %2346 = vmatprep.mubr.bf16.mxu0 %v9171_v18  ;;  %2387 = vmatprep.mubr.bf16.mxu1 %v9171_v18 }
 0x3cf   :  { %2317 = vmatpush1.bf16.msra.mxu0 %v7641_v51  ;;  %2358 = vmatpush1.bf16.msra.mxu1 %v7403_v32  ;;  %v7662_v32 = vld [vmem:[%s9052_s3 + $0x64] ss:$16 sps:$4 sm:$0xff]  }
 0x3d0   :  { %2318 = vmatprep.subr.bf16.mxu0 %v7648_v23  ;;  %2359 = vmatprep.subr.bf16.mxu1 %v7410_v29  ;;  %v7669_v29 = vld [vmem:[%s9052_s3 + $0x60] ss:$16 sps:$4 sm:$0xff]  }
 0x3d3   :  { %2319 = vmatpush1.bf16.msra.mxu0 %v7655_v46  ;;  %2360 = vmatpush1.bf16.msra.mxu1 %v7417_v14  ;;  %v7676_v14 = vld [vmem:[%s9052_s3 + $0x84] ss:$16 sps:$4 sm:$0xff]  }
 0x3d4   :  { %2320 = vmatprep.subr.bf16.mxu0 %v7662_v32  ;;  %2361 = vmatprep.subr.bf16.mxu1 %v7424_v62  ;;  %v7683_v62 = vld [vmem:[%s9052_s3 + $0x80] ss:$16 sps:$4 sm:$0xff]  }
 0x3d7   :  { %2321 = vmatpush1.bf16.msra.mxu0 %v7669_v29  ;;  %2362 = vmatpush1.bf16.msra.mxu1 %v7431_v63  ;;  %v7690_v63 = vld [vmem:[%s9052_s3 + $0xa4] ss:$16 sps:$4 sm:$0xff]  }
 0x3d8   :  { %2322 = vmatprep.subr.bf16.mxu0 %v7676_v14  ;;  %2363 = vmatprep.subr.bf16.mxu1 %v7438_v0  ;;  %v7697_v0 = vld [vmem:[%s9052_s3 + $0xa0] ss:$16 sps:$4 sm:$0xff]  }
 0x3db   :  { %2323 = vmatpush1.bf16.msra.mxu0 %v7683_v62  ;;  %2364 = vmatpush1.bf16.msra.mxu1 %v7445_v1  ;;  %v7704_v1 = vld [vmem:[%s9052_s3 + $0xc4] ss:$16 sps:$4 sm:$0xff]  }
 0x3dc   :  { %2324 = vmatprep.subr.bf16.mxu0 %v7690_v63  ;;  %2365 = vmatprep.subr.bf16.mxu1 %v7452_v3  ;;  %v7711_v3 = vld [vmem:[%s9052_s3 + $0xc0] ss:$16 sps:$4 sm:$0xff]  }
 0x3df   :  { %2325 = vmatpush1.bf16.msra.mxu0 %v7697_v0  ;;  %2366 = vmatpush1.bf16.msra.mxu1 %v7459_v4  ;;  %v7718_v4 = vld [vmem:[%s9052_s3 + $0xe4] ss:$16 sps:$4 sm:$0xff]  }
 0x3e0   :  { %2326 = vmatprep.subr.bf16.mxu0 %v7704_v1  ;;  %2367 = vmatprep.subr.bf16.mxu1 %v7466_v5  ;;  %v7725_v5 = vld [vmem:[%s9052_s3 + $0xe0] ss:$16 sps:$4 sm:$0xff]  }
 0x3e1   :  { %9219 = vst [vmem:[#allocation29_spill] sm:$0xff] %v7725_v5 }
 0x3e3   :  { %2327 = vmatpush1.bf16.msra.mxu0 %v7711_v3  ;;  %2368 = vmatpush1.bf16.msra.mxu1 %v7473_v6  ;;  %v7732_v6 = vld [vmem:[%s9052_s3 + $0x4] ss:$16 sps:$4 sm:$0xff]  }
 0x3e4   :  { %2328 = vmatprep.subr.bf16.mxu0 %v7718_v4  ;;  %2369 = vmatprep.subr.bf16.mxu1 %v7480_v7  ;;  %9221 = vst [vmem:[#allocation27_spill] sm:$0xff] %v7732_v6 }
 0x3e7   :  { %2329 = vmatpush1.bf16.msra.mxu0 %v7725_v5  ;;  %2370 = vmatpush1.bf16.msra.mxu1 %v9220_v44 }
 0x3e8   :  { %2748 = vmatprep.subr.bf16.mxu0 %v7732_v6  ;;  %2789 = vmatprep.subr.bf16.mxu1 %v9222_v59  ;;  %v9228_v6 = vld [vmem:[#allocation22_spill] sm:$0xff] }
 0x49d   :  { %v1914_v42 = vpop.f32.mrb[12].mxu0  ;;  %v7736_v7 = vpop.f32.mrb[44].mxu1 }
 0x49e   :  { %v1966_v37 = vrot.slane %v1914_v42, 5  ;;  %v1970_v8 = vrot.slane %v1914_v42, 6  ;;  %v1974_v11 = vrot.slane %v1914_v42, 7  ;;  %v1978_v50 = vrot.slane %v1914_v42, 1  ;;  %v7738_v28 = vpop.f32.mrb[13].mxu0  ;;  %v7740_v38 = vpop.f32.mrb[45].mxu1 }
 0x49f   :  { %v1982_v45 = vrot.slane %v1914_v42, 2  ;;  %v1986_v2 = vrot.slane %v1914_v42, 3  ;;  %v1990_v53 = vrot.slane %v1914_v42, 4  ;;  %v2038_v61 = vadd.f32 %v1914_v42, %v9199_v20  ;;  %v1918_v40 = vpop.f32.mrb[14].mxu0  ;;  %v1959_v47 = vpop.f32.mrb[46].mxu1 }
 0x4a0   :  { %v2026_v17 = vadd.f32 %v1966_v37, %v9197_v16  ;;  %v2030_v19 = vadd.f32 %v1970_v8, %v9223_v27  ;;  %v2034_v13 = vadd.f32 %v1974_v11, %v9224_v60  ;;  %v2042_v36 = vadd.f32 %v1978_v50, %v9225_v31  ;;  %v1919_v12 = vpop.f32.mrb[15].mxu0  ;;  %v1960_v52 = vpop.f32.mrb[47].mxu1 }
 0x4a1   :  { %v2046_v49 = vadd.f32 %v1982_v45, %v9226_v26  ;;  %v2050_v44 = vadd.f32 %v1986_v2, %v9227_v43  ;;  %v5009_v59 = vmul.f32 -1.442695, %v2038_v61  ;;  %v2054_v5 = vadd.f32 %v1990_v53, %v9228_v6  ;;  %v9229_v61 = vld [vmem:[#allocation26_spill] sm:$0xff] }
 0x4a2   :  { %v5006_v42 = vmul.f32 -1.442695, %v2026_v17  ;;  %v5007_v40 = vmul.f32 -1.442695, %v2030_v19  ;;  %v5008_v47 = vmul.f32 -1.442695, %v2034_v13 }
 0x4a3   :  { %5676 = vpow2.f32 %v5009_v59  ;;  %v5010_v37 = vmul.f32 -1.442695, %v2042_v36  ;;  %v5011_v8 = vmul.f32 -1.442695, %v2046_v49  ;;  %v1968_v11 = vrot.slane %v7736_v7, 5  ;;  %v9230_v19 = vld [vmem:[#allocation28_spill] sm:$0xff] }
 0x4a4   :  { %5678 = vpow2.f32 %v5006_v42  ;;  %v1972_v50 = vrot.slane %v7736_v7, 6  ;;  %v5012_v12 = vmul.f32 -1.442695, %v2050_v44  ;;  %v1976_v45 = vrot.slane %v7736_v7, 7  ;;  %v9231_v36 = vld [vmem:[#allocation30_spill] sm:$0xff]  ;;  %v9232_v49 = vld [vmem:[#allocation32_spill] sm:$0xff] }
 0x4a5   :  { %5680 = vpow2.f32 %v5007_v40  ;;  %v5013_v2 = vmul.f32 -1.442695, %v2054_v5  ;;  %v1980_v53 = vrot.slane %v7736_v7, 1  ;;  %v2028_v17 = vadd.f32 %v1968_v11, %v9229_v61  ;;  %v9233_v44 = vld [vmem:[#allocation33_spill] sm:$0xff]  ;;  %v9237_v6 = vld [vmem:[#allocation10_spill] sm:$0xff] }
 0x4a6   :  { %5682 = vpow2.f32 %v5008_v47  ;;  %v2032_v13 = vadd.f32 %v1972_v50, %v9230_v19  ;;  %v2036_v52 = vadd.f32 %v1976_v45, %v9231_v36  ;;  %v2040_v59 = vadd.f32 %v7736_v7, %v9232_v49 }
 0x4a7   :  { %5684 = vpow2.f32 %v5010_v37  ;;  %v2044_v42 = vadd.f32 %v1980_v53, %v9233_v44  ;;  %v1984_v40 = vrot.slane %v7736_v7, 2  ;;  %v1967_v45 = vrot.slane %v7738_v28, 5 }
 0x4a8   :  { %5686 = vpow2.f32 %v5011_v8  ;;  %v1988_v8 = vrot.slane %v7736_v7, 3  ;;  %v1975_v49 = vrot.slane %v7738_v28, 7 }
 0x4a9   :  { %5688 = vpow2.f32 %v5012_v12  ;;  %v1992_v12 = vrot.slane %v7736_v7, 4  ;;  %v2027_v43 = vadd.f32 %v1967_v45, %v9237_v6 }
 0x4aa   :  { %5690 = vpow2.f32 %v5013_v2 }
 0x4ab   :  { %5692 = vtanh.f32 %v2028_v17  ;;  %v1971_v17 = vrot.slane %v7738_v28, 6  ;;  %v5014_v6 = vmul.f32 -1.442695, %v2027_v43 }
 0x4ac   :  { %5694 = vtanh.f32 %v2032_v13 }
 0x4ad   :  { %v5677_v5 = vpop.eup %5676  ;;  %5696 = vtanh.f32 %v2036_v52  ;;  %v9234_v52 = vld [vmem:[#allocation34_spill] sm:$0xff] }
 0x4ae   :  { %v5679_v47 = vpop.eup %5678  ;;  %v2085_v37 = vadd.f32 1.0, %v5677_v5  ;;  %5698 = vtanh.f32 %v2040_v59  ;;  %v2048_v5 = vadd.f32 %v1984_v40, %v9234_v52  ;;  %v1983_v40 = vrot.slane %v7738_v28, 2  ;;  %v9238_v52 = vld [vmem:[#allocation11_spill] sm:$0xff] }
 0x4af   :  { %v5681_v11 = vpop.eup %5680  ;;  %v2082_v50 = vadd.f32 1.0, %v5679_v47  ;;  %5700 = vtanh.f32 %v2044_v42  ;;  %v9235_v47 = vld [vmem:[#allocation35_spill] sm:$0xff]  ;;  %v1979_v42 = vrot.slane %v7738_v28, 1  ;;  %v2031_v26 = vadd.f32 %v1971_v17, %v9238_v52 }
 0x4b0   :  { %v5683_v2 = vpop.eup %5682  ;;  %v2083_v53 = vadd.f32 1.0, %v5681_v11  ;;  %5702 = vrcp.f32 %v2085_v37  ;;  %v2052_v7 = vadd.f32 %v1988_v8, %v9235_v47  ;;  %v9236_v37 = vld [vmem:[#allocation36_spill] sm:$0xff]  ;;  %v1987_v8 = vrot.slane %v7738_v28, 3  ;;  %v9239_v47 = vld [vmem:[#allocation13_spill] sm:$0xff] }
 0x4b1   :  { %v5685_v13 = vpop.eup %5684  ;;  %v2084_v44 = vadd.f32 1.0, %v5683_v2  ;;  %5704 = vrcp.f32 %v2082_v50  ;;  %v2056_v11 = vadd.f32 %v1992_v12, %v9236_v37  ;;  %v2035_v20 = vadd.f32 %v1975_v49, %v9239_v47  ;;  %v9240_v12 = vld [vmem:[#allocation15_spill] sm:$0xff] }
 0x4b2   :  { %v5687_v59 = vpop.eup %5686  ;;  %v2086_v36 = vadd.f32 1.0, %v5685_v13  ;;  %5706 = vrcp.f32 %v2083_v53  ;;  %v2039_v45 = vadd.f32 %v7738_v28, %v9240_v12  ;;  %v1969_v17 = vrot.slane %v7740_v38, 5 }
 0x4b3   :  { %v5689_v19 = vpop.eup %5688  ;;  %v2087_v61 = vadd.f32 1.0, %v5687_v59  ;;  %5708 = vrcp.f32 %v2084_v44  ;;  %v1991_v44 = vrot.slane %v7738_v28, 4  ;;  %v5015_v60 = vmul.f32 -1.442695, %v2031_v26 }
 0x4b4   :  { %v5691_v2 = vpop.eup %5690  ;;  %v2088_v50 = vadd.f32 1.0, %v5689_v19  ;;  %5710 = vrcp.f32 %v2086_v36  ;;  %v9241_v19 = vld [vmem:[#allocation17_spill] sm:$0xff]  ;;  %v1973_v49 = vrot.slane %v7740_v38, 6  ;;  %v2051_v47 = vadd.f32 %v1987_v8, %v9217_v21 }
 0x4b5   :  { %v5693_v13 = vpop.eup %5692  ;;  %v2089_v53 = vadd.f32 1.0, %v5691_v2  ;;  %5712 = vrcp.f32 %v2087_v61  ;;  %v2043_v36 = vadd.f32 %v1979_v42, %v9241_v19  ;;  %v9242_v61 = vld [vmem:[#allocation19_spill] sm:$0xff]  ;;  %v5016_v27 = vmul.f32 -1.442695, %v2035_v20 }
 0x4b6   :  { %v5695_v59 = vpop.eup %5694  ;;  %5714 = vrcp.f32 %v2088_v50  ;;  %v2047_v52 = vadd.f32 %v1983_v40, %v9242_v61  ;;  %v1977_v28 = vrot.slane %v7740_v38, 7  ;;  %v2055_v43 = vadd.f32 %v1991_v44, %v9192_v30 }
 0x4b7   :  { %v5697_v37 = vpop.eup %5696  ;;  %5716 = vrcp.f32 %v2089_v53  ;;  %v5017_v53 = vmul.f32 -1.442695, %v2039_v45  ;;  %v5018_v19 = vmul.f32 -1.442695, %v2043_v36  ;;  %v1981_v26 = vrot.slane %v7740_v38, 1  ;;  %v9243_v45 = vld [vmem:[#allocation31_spill] sm:$0xff] }
 0x4b8   :  { %v5699_v2 = vpop.eup %5698  ;;  %5718 = vtanh.f32 %v2048_v5  ;;  %v2029_v40 = vadd.f32 %v1969_v17, %v9193_v58  ;;  %v5019_v20 = vmul.f32 -1.442695, %v2047_v52  ;;  %v2033_v8 = vadd.f32 %v1973_v49, %v9218_v54 }
 0x4b9   :  { %v5701_v50 = vpop.eup %5700  ;;  %5720 = vtanh.f32 %v2052_v7  ;;  %v5020_v44 = vmul.f32 -1.442695, %v2051_v47  ;;  %v2037_v36 = vadd.f32 %v1977_v28, %v9243_v45  ;;  %v2045_v52 = vadd.f32 %v1981_v26, %v7053_v15 }
 0x4ba   :  { %v5703_v42 = vpop.eup %5702  ;;  %5722 = vtanh.f32 %v2056_v11 }
 0x4bb   :  { %v5705_v12 = vpop.eup %5704  ;;  %v7785_v5 = vmul.f32 %v5703_v42, %v5699_v2  ;;  %5724 = vpow2.f32 %v5014_v6  ;;  %v5021_v42 = vmul.f32 -1.442695, %v2055_v43  ;;  %v5024_v49 = vmul.f32 -1.442695, %v2037_v36 }
 0x4bc   :  { %v5707_v7 = vpop.eup %5706  ;;  %v7789_v61 = vmul.f32 %v5705_v12, %v5693_v13  ;;  %5726 = vpow2.f32 %v5015_v60  ;;  %v2041_v13 = vadd.f32 %v7740_v38, %v7046_v48  ;;  %v1993_v36 = vrot.slane %v7740_v38, 4 }
 0x4bd   :  { %v5709_v11 = vpop.eup %5708  ;;  %v7792_v21 = vmul.f32 %v5707_v7, %v5695_v59  ;;  %5728 = vpow2.f32 %v5016_v27  ;;  %v5022_v59 = vmul.f32 -1.442695, %v2029_v40  ;;  %v5023_v27 = vmul.f32 -1.442695, %v2033_v8 }
 0x4be   :  { %v5711_v2 = vpop.eup %5710  ;;  %v7795_v6 = vmul.f32 %v5709_v11, %v5697_v37  ;;  %5730 = vpow2.f32 %v5017_v53  ;;  %v5025_v28 = vmul.f32 -1.442695, %v2041_v13  ;;  %v5026_v53 = vmul.f32 -1.442695, %v2045_v52 }
 0x4bf   :  { %v5713_v12 = vpop.eup %5712  ;;  %v7799_v60 = vmul.f32 %v5711_v2, %v5701_v50  ;;  %5732 = vpow2.f32 %v5018_v19  ;;  %v1985_v19 = vrot.slane %v7740_v38, 2 }
 0x4c0   :  { %v5715_v17 = vpop.eup %5714  ;;  %5734 = vpow2.f32 %v5019_v20  ;;  %v1989_v20 = vrot.slane %v7740_v38, 3 }
 0x4c1   :  { %v5717_v47 = vpop.eup %5716  ;;  %5736 = vpow2.f32 %v5020_v44  ;;  %v2049_v52 = vadd.f32 %v1985_v19, %v7060_v39 }
 0x4c2   :  { %v5719_v37 = vpop.eup %5718  ;;  %5738 = vpow2.f32 %v5021_v42 }
 0x4c3   :  { %v5721_v43 = vpop.eup %5720  ;;  %5740 = vpow2.f32 %v5022_v59  ;;  %v7802_v7 = vmul.f32 %v5719_v37, %v5713_v12  ;;  %v2057_v37 = vadd.f32 %v1993_v36, %v7098_v24 }
 0x4c4   :  { %v5723_v50 = vpop.eup %5722  ;;  %5742 = vpow2.f32 %v5023_v27  ;;  %v7805_v26 = vmul.f32 %v5721_v43, %v5715_v17  ;;  %v2053_v27 = vadd.f32 %v1989_v20, %v7065_v33 }
 0x4c5   :  { %v5725_v40 = vpop.eup %5724  ;;  %5744 = vpow2.f32 %v5024_v49  ;;  %v7808_v8 = vmul.f32 %v5723_v50, %v5717_v47  ;;  %v5027_v50 = vmul.f32 -1.442695, %v2049_v52  ;;  %v2219_v52 = vrot.slane %v7585_v35, 7 }
 0x4c6   :  { %v5727_v11 = vpop.eup %5726  ;;  %v2130_v44 = vadd.f32 1.0, %v5725_v40  ;;  %5746 = vpow2.f32 %v5025_v28  ;;  %v5028_v19 = vmul.f32 -1.442695, %v2053_v27 }
 0x4c7   :  { %v5729_v2 = vpop.eup %5728  ;;  %v2131_v42 = vadd.f32 1.0, %v5727_v11  ;;  %5748 = vpow2.f32 %v5026_v53 }
 0x4c8   :  { %v5731_v13 = vpop.eup %5730  ;;  %v2132_v12 = vadd.f32 1.0, %v5729_v2  ;;  %5750 = vrcp.f32 %v2130_v44  ;;  %v5029_v2 = vmul.f32 -1.442695, %v2057_v37 }
 0x4c9   :  { %v5733_v59 = vpop.eup %5732  ;;  %v2133_v17 = vadd.f32 1.0, %v5731_v13  ;;  %5752 = vrcp.f32 %v2131_v42 }
 0x4ca   :  { %v5735_v47 = vpop.eup %5734  ;;  %v2134_v49 = vadd.f32 1.0, %v5733_v59  ;;  %5754 = vrcp.f32 %v2132_v12  ;;  %v2218_v59 = vrot.slane %v7581_v9, 7  ;;  %v2222_v9 = vrot.slane %v7597_v41, 7 }
 0x4cb   :  { %v5737_v38 = vpop.eup %5736  ;;  %v2135_v28 = vadd.f32 1.0, %v5735_v47  ;;  %5756 = vrcp.f32 %v2133_v17 }
 0x4cc   :  { %v5739_v43 = vpop.eup %5738  ;;  %v2136_v53 = vadd.f32 1.0, %v5737_v38  ;;  %5758 = vrcp.f32 %v2134_v49  ;;  %v2220_v38 = vrot.slane %v7589_v55, 7 }
 0x4cd   :  { %v5741_v40 = vpop.eup %5740  ;;  %v2137_v11 = vadd.f32 1.0, %v5739_v43  ;;  %5760 = vrcp.f32 %v2135_v28 }
 0x4ce   :  { %v5743_v44 = vpop.eup %5742  ;;  %5762 = vrcp.f32 %v2136_v53  ;;  %v2186_v42 = vadd.f32 1.0, %v5741_v40  ;;  %v2221_v53 = vrot.slane %v7593_v57, 7  ;;  %v2224_v57 = vrot.slane %v7605_v10, 7 }
 0x4cf   :  { %v5745_v20 = vpop.eup %5744  ;;  %5764 = vrcp.f32 %v2137_v11  ;;  %v2187_v36 = vadd.f32 1.0, %v5743_v44  ;;  %v2223_v44 = vrot.slane %v7601_v56, 7 }
 0x4d0   :  { %v5747_v13 = vpop.eup %5746  ;;  %5766 = vpow2.f32 %v5027_v50  ;;  %v2188_v17 = vadd.f32 1.0, %v5745_v20 }
 0x4d1   :  { %v5749_v12 = vpop.eup %5748  ;;  %5768 = vpow2.f32 %v5028_v19  ;;  %v2189_v49 = vadd.f32 1.0, %v5747_v13 }
 0x4d2   :  { %v5751_v47 = vpop.eup %5750  ;;  %5770 = vpow2.f32 %v5029_v2  ;;  %v2190_v28 = vadd.f32 1.0, %v5749_v12 }
 0x4d3   :  { %v5753_v27 = vpop.eup %5752  ;;  %v2234_v37 = vmul.f32 %v5751_v47, %v2218_v59  ;;  %5772 = vrcp.f32 %v2186_v42 }
 0x4d4   :  { %v5755_v43 = vpop.eup %5754  ;;  %v2235_v50 = vmul.f32 %v5753_v27, %v2219_v52  ;;  %5774 = vrcp.f32 %v2187_v36 }
 0x4d5   :  { %v5757_v40 = vpop.eup %5756  ;;  %v2236_v11 = vmul.f32 %v5755_v43, %v2220_v38  ;;  %v7820_v19 = vadd.f32 %v7789_v61, %v2234_v37  ;;  %5776 = vrcp.f32 %v2188_v17  ;;  %v2225_v61 = vrot.slane %v7609_v34, 7 }
 0x4d6   :  { %v5759_v35 = vpop.eup %5758  ;;  %v2237_v55 = vmul.f32 %v5757_v40, %v2221_v53  ;;  %v7824_v2 = vadd.f32 %v7792_v21, %v2235_v50  ;;  %5778 = vrcp.f32 %v2189_v49 }
 0x4d7   :  { %v5761_v20 = vpop.eup %5760  ;;  %5780 = vrcp.f32 %v2190_v28  ;;  %v2238_v42 = vmul.f32 %v5759_v35, %v2222_v9  ;;  %v7828_v41 = vadd.f32 %v7795_v6, %v2236_v11 }
 0x4d8   :  { %v5763_v13 = vpop.eup %5762  ;;  %v2239_v36 = vmul.f32 %v5761_v20, %v2223_v44  ;;  %v7832_v12 = vadd.f32 %v7785_v5, %v2237_v55  ;;  %5782 = vtanh.f32 %v7820_v19 }
 0x4d9   :  { %v5765_v21 = vpop.eup %5764  ;;  %v2240_v56 = vmul.f32 %v5763_v13, %v2224_v57  ;;  %v7836_v59 = vadd.f32 %v7799_v60, %v2238_v42  ;;  %5784 = vtanh.f32 %v7824_v2 }
 0x4da   :  { %v5767_v10 = vpop.eup %5766  ;;  %v2241_v17 = vmul.f32 %v5765_v21, %v2225_v61  ;;  %v7840_v6 = vadd.f32 %v7802_v7, %v2239_v36  ;;  %5786 = vtanh.f32 %v7828_v41 }
 0x4db   :  { %v5769_v34 = vpop.eup %5768  ;;  %v2191_v47 = vadd.f32 1.0, %v5767_v10  ;;  %v7844_v5 = vadd.f32 %v7805_v26, %v2240_v56  ;;  %5788 = vtanh.f32 %v7832_v12 }
 0x4dc   :  { %v5771_v52 = vpop.eup %5770  ;;  %v2192_v49 = vadd.f32 1.0, %v5769_v34  ;;  %v7848_v60 = vadd.f32 %v7808_v8, %v2241_v17  ;;  %5790 = vtanh.f32 %v7836_v59 }
 0x4dd   :  { %v5773_v27 = vpop.eup %5772  ;;  %5792 = vrcp.f32 %v2191_v47  ;;  %v2193_v7 = vadd.f32 1.0, %v5771_v52 }
 0x4de   :  { %v5775_v38 = vpop.eup %5774  ;;  %5794 = vrcp.f32 %v2192_v49 }
 0x4df   :  { %v5777_v37 = vpop.eup %5776  ;;  %5796 = vrcp.f32 %v2193_v7 }
 0x4e0   :  { %v5779_v28 = vpop.eup %5778  ;;  %5798 = vtanh.f32 %v7840_v6 }
 0x4e1   :  { %v5781_v26 = vpop.eup %5780  ;;  %5800 = vtanh.f32 %v7844_v5 }
 0x4e2   :  { %v5783_v43 = vpop.eup %5782  ;;  %5802 = vtanh.f32 %v7848_v60 }
 0x4e3   :  { %v5785_v8 = vpop.eup %5784  ;;  %v2266_v53 = vmul.f32 %v5783_v43, %v5773_v27 }
 0x4e4   :  { %v5787_v50 = vpop.eup %5786  ;;  %v2267_v40 = vmul.f32 %v5785_v8, %v5775_v38 }
 0x4e5   :  { %v5789_v9 = vpop.eup %5788  ;;  %v2268_v11 = vmul.f32 %v5787_v50, %v5777_v37  ;;  %v2274_v35 = vpack.c.bf16 %v2266_v53, %v2266_v53 }
 0x4e6   :  { %v5791_v44 = vpop.eup %5790  ;;  %v2269_v55 = vmul.f32 %v5789_v9, %v5779_v28  ;;  %v2275_v20 = vpack.c.bf16 %v2267_v40, %v2267_v40 }
 0x4e7   :  { %v5793_v57 = vpop.eup %5792  ;;  %v2270_v42 = vmul.f32 %v5791_v44, %v5781_v26  ;;  %v2276_v13 = vpack.c.bf16 %v2268_v11, %v2268_v11  ;;  %v2290_v61 = vunpack.c.l.b16 %v2274_v35 }
 0x4e8   :  { %v5795_v36 = vpop.eup %5794  ;;  %v2277_v21 = vpack.c.bf16 %v2269_v55, %v2269_v55  ;;  %v2291_v56 = vunpack.c.l.b16 %v2275_v20 }
 0x4e9   :  { %v5797_v10 = vpop.eup %5796  ;;  %v2278_v17 = vpack.c.bf16 %v2270_v42, %v2270_v42  ;;  %v2292_v34 = vunpack.c.l.b16 %v2276_v13  ;;  %v2298_v47 = vrot.slane %v2290_v61, 3 }
 0x4ea   :  { %v5799_v52 = vpop.eup %5798  ;;  %v2299_v49 = vrot.slane %v2291_v56, 2  ;;  %v2293_v8 = vunpack.c.l.b16 %v2277_v21 }
 0x4eb   :  { %v5801_v27 = vpop.eup %5800  ;;  %v2271_v7 = vmul.f32 %v5799_v52, %v5793_v57  ;;  %v2294_v38 = vunpack.c.l.b16 %v2278_v17  ;;  %v2301_v37 = vrot.slane %v2292_v34, 1  ;;  %v7865_v34 = vld [vmem:[%s9052_s3 + $0x8] ss:$16 sps:$4 sm:$0xff]  }
 0x4ec   :  { %v5803_v43 = vpop.eup %5802  ;;  %v2272_v28 = vmul.f32 %v5801_v27, %v5795_v36  ;;  %v2300_v26 = vsel %vm990_vm0, %v2299_v49, %v2298_v47  ;;  %v7872_v47 = vld [vmem:[%s9052_s3 + $0x2c] ss:$16 sps:$4 sm:$0xff]  }
 0x4ed   :  { %v2273_v53 = vmul.f32 %v5803_v43, %v5797_v10  ;;  %v2279_v50 = vpack.c.bf16 %v2271_v7, %v2271_v7  ;;  %v2302_v40 = vsel %vm993_vm1, %v2301_v37, %v2300_v26  ;;  %v2304_v9 = vrot.slane %v2294_v38, 7  ;;  %v9244_v52 = vld [vmem:[#allocation29_spill] sm:$0xff]  ;;  %v9246_v49 = vld [vmem:[#allocation27_spill] sm:$0xff] }
 0x4ee   :  { %v2280_v11 = vpack.c.bf16 %v2272_v28, %v2272_v28  ;;  %v2303_v35 = vsel %vm996_vm2, %v2293_v8, %v2302_v40 }
 0x4ef   :  { %v2281_v44 = vpack.c.bf16 %v2273_v53, %v2273_v53  ;;  %v2295_v55 = vunpack.c.l.b16 %v2279_v50  ;;  %v2305_v20 = vsel %vm999_vm3, %v2304_v9, %v2303_v35 }
 0x4f0   :  { %v2296_v57 = vunpack.c.l.b16 %v2280_v11 }
 0x4f1   :  { %v2297_v42 = vunpack.c.l.b16 %v2281_v44  ;;  %v2306_v13 = vrot.slane %v2295_v55, 6  ;;  %v9248_v55 = vld [vmem:[#allocation9_spill] sm:$0xff] }
 0x4f2   :  { %v2308_v61 = vrot.slane %v2296_v57, 5  ;;  %v9249_v57 = vld [vmem:[#allocation12_spill] sm:$0xff] }
 0x4f3   :  { %v2307_v36 = vsel %vm1002_vm4, %v2306_v13, %v2305_v20  ;;  %v2310_v21 = vrot.slane %v2297_v42, 4  ;;  %v9250_v13 = vld [vmem:[#allocation14_spill] sm:$0xff] }
 0x4f4   :  { %v2309_v56 = vsel %vm1005_vm5, %v2308_v61, %v2307_v36 }
 0x4f5   :  { %v2311_v10 = vsel %vm1008_vm6, %v2310_v21, %v2309_v56  ;;  %v9251_v56 = vld [vmem:[#allocation18_spill] sm:$0xff] }
 0x4f6   :  { %v2312_v17 = vpack.c.b16 %v2311_v10, %v2311_v10 }
 0x4f8   :  { %2347 = vmatmul.mubr.bf16.vlgmr.msra.gmra.mrb[16].mxu0 %v2312_v17  ;;  %2388 = vmatmul.mubr.bf16.vlgmr.msra.gmra.mrb[48].mxu1 %v2312_v17  ;;  %v9252_v17 = vld [vmem:[#allocation20_spill] sm:$0xff] }
 0x4f9   :  { %2749 = vmatpush1.bf16.msra.mxu0 %v7625_v25  ;;  %2790 = vmatpush1.bf16.msra.mxu1 %v7865_v34  ;;  %v7881_v25 = vld [vmem:[%s9052_s3 + $0x28] ss:$16 sps:$4 sm:$0xff]  }
 0x4fa   :  { %2750 = vmatprep.subr.bf16.mxu0 %v7632_v22  ;;  %2791 = vmatprep.subr.bf16.mxu1 %v7872_v47  ;;  %v7888_v22 = vld [vmem:[%s9052_s3 + $0x4c] ss:$16 sps:$4 sm:$0xff]  }
 0x4fb   :  { %2780 = vmatprep.mubr.bf16.mxu0 %v9171_v18  ;;  %2821 = vmatprep.mubr.bf16.mxu1 %v9171_v18 }
 0x4fd   :  { %2751 = vmatpush1.bf16.msra.mxu0 %v7641_v51  ;;  %2792 = vmatpush1.bf16.msra.mxu1 %v7881_v25  ;;  %v7895_v51 = vld [vmem:[%s9052_s3 + $0x48] ss:$16 sps:$4 sm:$0xff]  }
 0x4fe   :  { %2752 = vmatprep.subr.bf16.mxu0 %v7648_v23  ;;  %2793 = vmatprep.subr.bf16.mxu1 %v7888_v22  ;;  %v7902_v23 = vld [vmem:[%s9052_s3 + $0x6c] ss:$16 sps:$4 sm:$0xff]  }
 0x501   :  { %2753 = vmatpush1.bf16.msra.mxu0 %v7655_v46  ;;  %2794 = vmatpush1.bf16.msra.mxu1 %v7895_v51  ;;  %v7909_v46 = vld [vmem:[%s9052_s3 + $0x68] ss:$16 sps:$4 sm:$0xff]  }
 0x502   :  { %2754 = vmatprep.subr.bf16.mxu0 %v7662_v32  ;;  %2795 = vmatprep.subr.bf16.mxu1 %v7902_v23  ;;  %v7916_v32 = vld [vmem:[%s9052_s3 + $0x8c] ss:$16 sps:$4 sm:$0xff]  }
 0x505   :  { %2755 = vmatpush1.bf16.msra.mxu0 %v7669_v29  ;;  %2796 = vmatpush1.bf16.msra.mxu1 %v7909_v46  ;;  %v7923_v29 = vld [vmem:[%s9052_s3 + $0x88] ss:$16 sps:$4 sm:$0xff]  }
 0x506   :  { %2756 = vmatprep.subr.bf16.mxu0 %v7676_v14  ;;  %2797 = vmatprep.subr.bf16.mxu1 %v7916_v32  ;;  %v7930_v14 = vld [vmem:[%s9052_s3 + $0xac] ss:$16 sps:$4 sm:$0xff]  }
 0x509   :  { %2757 = vmatpush1.bf16.msra.mxu0 %v7683_v62  ;;  %2798 = vmatpush1.bf16.msra.mxu1 %v7923_v29  ;;  %v7937_v62 = vld [vmem:[%s9052_s3 + $0xa8] ss:$16 sps:$4 sm:$0xff]  }
 0x50a   :  { %2758 = vmatprep.subr.bf16.mxu0 %v7690_v63  ;;  %2799 = vmatprep.subr.bf16.mxu1 %v7930_v14  ;;  %v7944_v63 = vld [vmem:[%s9052_s3 + $0xcc] ss:$16 sps:$4 sm:$0xff]  }
 0x50d   :  { %2759 = vmatpush1.bf16.msra.mxu0 %v7697_v0  ;;  %2800 = vmatpush1.bf16.msra.mxu1 %v7937_v62  ;;  %v7951_v0 = vld [vmem:[%s9052_s3 + $0xc8] ss:$16 sps:$4 sm:$0xff]  }
 0x50e   :  { %2760 = vmatprep.subr.bf16.mxu0 %v7704_v1  ;;  %2801 = vmatprep.subr.bf16.mxu1 %v7944_v63  ;;  %v7958_v1 = vld [vmem:[%s9052_s3 + $0xec] ss:$16 sps:$4 sm:$0xff]  }
 0x511   :  { %2761 = vmatpush1.bf16.msra.mxu0 %v7711_v3  ;;  %2802 = vmatpush1.bf16.msra.mxu1 %v7951_v0  ;;  %v7965_v3 = vld [vmem:[%s9052_s3 + $0xe8] ss:$16 sps:$4 sm:$0xff]  }
 0x512   :  { %2762 = vmatprep.subr.bf16.mxu0 %v7718_v4  ;;  %2803 = vmatprep.subr.bf16.mxu1 %v7958_v1  ;;  %9245 = vst [vmem:[#allocation37_spill] sm:$0xff] %v7965_v3  ;;  %v7972_v4 = vld [vmem:[%s9052_s3 + $0xc] ss:$16 sps:$4 sm:$0xff]  }
 0x513   :  { %9247 = vst [vmem:[#allocation31_spill] sm:$0xff] %v7972_v4 }
 0x515   :  { %2763 = vmatpush1.bf16.msra.mxu0 %v9244_v52  ;;  %2804 = vmatpush1.bf16.msra.mxu1 %v7965_v3 }
 0x516   :  { %3182 = vmatprep.subr.bf16.mxu0 %v9246_v49  ;;  %3223 = vmatprep.subr.bf16.mxu1 %v7972_v4  ;;  %v9253_v4 = vld [vmem:[#allocation22_spill] sm:$0xff] }
 0x5cb   :  { %v2348_v27 = vpop.f32.mrb[16].mxu0  ;;  %v7975_v7 = vpop.f32.mrb[48].mxu1 }
 0x5cc   :  { %v2400_v38 = vrot.slane %v2348_v27, 4  ;;  %v2404_v37 = vrot.slane %v2348_v27, 5  ;;  %v2408_v43 = vrot.slane %v2348_v27, 6  ;;  %v2412_v28 = vrot.slane %v2348_v27, 7  ;;  %v7977_v8 = vpop.f32.mrb[17].mxu0  ;;  %v7979_v26 = vpop.f32.mrb[49].mxu1 }
 0x5cd   :  { %v2416_v53 = vrot.slane %v2348_v27, 1  ;;  %v2420_v50 = vrot.slane %v2348_v27, 2  ;;  %v2424_v40 = vrot.slane %v2348_v27, 3  ;;  %v2476_v9 = vadd.f32 %v2348_v27, %v9225_v31  ;;  %v2352_v11 = vpop.f32.mrb[18].mxu0  ;;  %v2393_v35 = vpop.f32.mrb[50].mxu1 }
 0x5ce   :  { %v2460_v44 = vadd.f32 %v2400_v38, %v9197_v16  ;;  %v2464_v20 = vadd.f32 %v2404_v37, %v9248_v55  ;;  %v2468_v42 = vadd.f32 %v2408_v43, %v9249_v57  ;;  %v2472_v61 = vadd.f32 %v2412_v28, %v9250_v13  ;;  %v2353_v36 = vpop.f32.mrb[19].mxu0  ;;  %v2394_v21 = vpop.f32.mrb[51].mxu1  ;;  %v9267_v57 = vld [vmem:[#allocation19_spill] sm:$0xff] }
 0x5cf   :  { %v2480_v10 = vadd.f32 %v2416_v53, %v9251_v56  ;;  %v2484_v52 = vadd.f32 %v2420_v50, %v9252_v17  ;;  %v5034_v49 = vmul.f32 -1.442695, %v2476_v9  ;;  %v2488_v3 = vadd.f32 %v2424_v40, %v9253_v4  ;;  %v9254_v40 = vld [vmem:[#allocation26_spill] sm:$0xff]  ;;  %v9257_v21 = vld [vmem:[#allocation32_spill] sm:$0xff]  ;;  %v9262_v4 = vld [vmem:[#allocation11_spill] sm:$0xff] }
 0x5d0   :  { %v5030_v27 = vmul.f32 -1.442695, %v2460_v44  ;;  %v5031_v11 = vmul.f32 -1.442695, %v2464_v20  ;;  %v5032_v35 = vmul.f32 -1.442695, %v2468_v42 }
 0x5d1   :  { %v5033_v31 = vmul.f32 -1.442695, %v2472_v61  ;;  %5804 = vpow2.f32 %v5034_v49  ;;  %v5035_v38 = vmul.f32 -1.442695, %v2480_v10  ;;  %v2402_v37 = vrot.slane %v7975_v7, 4  ;;  %v9255_v20 = vld [vmem:[#allocation28_spill] sm:$0xff] }
 0x5d2   :  { %5806 = vpow2.f32 %v5030_v27  ;;  %v2406_v43 = vrot.slane %v7975_v7, 5  ;;  %v5036_v28 = vmul.f32 -1.442695, %v2484_v52  ;;  %v2410_v53 = vrot.slane %v7975_v7, 6  ;;  %v9256_v61 = vld [vmem:[#allocation30_spill] sm:$0xff]  ;;  %v9258_v49 = vld [vmem:[#allocation33_spill] sm:$0xff] }
 0x5d3   :  { %5808 = vpow2.f32 %v5031_v11  ;;  %v5037_v50 = vmul.f32 -1.442695, %v2488_v3  ;;  %v2414_v9 = vrot.slane %v7975_v7, 7  ;;  %v2462_v44 = vadd.f32 %v2402_v37, %v9254_v40 }
 0x5d4   :  { %5810 = vpow2.f32 %v5032_v35  ;;  %v2466_v42 = vadd.f32 %v2406_v43, %v9255_v20  ;;  %v2470_v36 = vadd.f32 %v2410_v53, %v9256_v61  ;;  %v2478_v52 = vadd.f32 %v7975_v7, %v9258_v49  ;;  %v9261_v20 = vld [vmem:[#allocation10_spill] sm:$0xff] }
 0x5d5   :  { %5812 = vpow2.f32 %v5033_v31  ;;  %v2474_v10 = vadd.f32 %v2414_v9, %v9257_v21  ;;  %v2418_v11 = vrot.slane %v7975_v7, 1  ;;  %v2422_v37 = vrot.slane %v7975_v7, 2 }
 0x5d6   :  { %5814 = vpow2.f32 %v5035_v38  ;;  %v2401_v43 = vrot.slane %v7977_v8, 4 }
 0x5d7   :  { %5816 = vpow2.f32 %v5036_v28 }
 0x5d8   :  { %5818 = vpow2.f32 %v5037_v50  ;;  %v2405_v50 = vrot.slane %v7977_v8, 5  ;;  %v2461_v40 = vadd.f32 %v2401_v43, %v9261_v20  ;;  %v2425_v43 = vrot.slane %v7977_v8, 3  ;;  %v9266_v20 = vld [vmem:[#allocation17_spill] sm:$0xff] }
 0x5d9   :  { %5820 = vtanh.f32 %v2462_v44 }
 0x5da   :  { %5822 = vtanh.f32 %v2466_v42  ;;  %v2426_v42 = vrot.slane %v7975_v7, 3  ;;  %v2417_v7 = vrot.slane %v7977_v8, 1  ;;  %v2465_v17 = vadd.f32 %v2405_v50, %v9262_v4 }
 0x5db   :  { %v5805_v3 = vpop.eup %5804  ;;  %5824 = vtanh.f32 %v2470_v36  ;;  %v2409_v36 = vrot.slane %v7977_v8, 6  ;;  %v2477_v50 = vadd.f32 %v7977_v8, %v9266_v20  ;;  %v5038_v4 = vmul.f32 -1.442695, %v2461_v40 }
 0x5dc   :  { %v5807_v27 = vpop.eup %5806  ;;  %v2520_v31 = vadd.f32 1.0, %v5805_v3  ;;  %5826 = vtanh.f32 %v2474_v10  ;;  %v2415_v20 = vrot.slane %v7979_v26, 7 }
 0x5dd   :  { %v5809_v35 = vpop.eup %5808  ;;  %v2516_v38 = vadd.f32 1.0, %v5807_v27  ;;  %5828 = vtanh.f32 %v2478_v52  ;;  %v9259_v27 = vld [vmem:[#allocation34_spill] sm:$0xff]  ;;  %v2413_v52 = vrot.slane %v7977_v8, 7 }
 0x5de   :  { %v5811_v28 = vpop.eup %5810  ;;  %v2517_v53 = vadd.f32 1.0, %v5809_v35  ;;  %5830 = vrcp.f32 %v2520_v31  ;;  %v2482_v49 = vadd.f32 %v2418_v11, %v9259_v27  ;;  %v9260_v31 = vld [vmem:[#allocation35_spill] sm:$0xff]  ;;  %v2421_v11 = vrot.slane %v7977_v8, 2  ;;  %v9263_v27 = vld [vmem:[#allocation13_spill] sm:$0xff] }
 0x5df   :  { %v5813_v9 = vpop.eup %5812  ;;  %v2518_v44 = vadd.f32 1.0, %v5811_v28  ;;  %5832 = vrcp.f32 %v2516_v38  ;;  %v2486_v35 = vadd.f32 %v2422_v37, %v9260_v31  ;;  %v2469_v13 = vadd.f32 %v2409_v36, %v9263_v27  ;;  %v9265_v31 = vld [vmem:[#allocation15_spill] sm:$0xff] }
 0x5e0   :  { %v5815_v10 = vpop.eup %5814  ;;  %v2519_v3 = vadd.f32 1.0, %v5813_v9  ;;  %5834 = vrcp.f32 %v2517_v53  ;;  %v2481_v36 = vadd.f32 %v2417_v7, %v9267_v57  ;;  %v5039_v27 = vmul.f32 -1.442695, %v2465_v17 }
 0x5e1   :  { %v5817_v21 = vpop.eup %5816  ;;  %v2521_v61 = vadd.f32 1.0, %v5815_v10  ;;  %5836 = vrcp.f32 %v2518_v44  ;;  %v9264_v44 = vld [vmem:[#allocation36_spill] sm:$0xff]  ;;  %v2489_v8 = vadd.f32 %v2425_v43, %v9192_v30  ;;  %v5042_v17 = vmul.f32 -1.442695, %v2477_v50 }
 0x5e2   :  { %v5819_v28 = vpop.eup %5818  ;;  %v2522_v38 = vadd.f32 1.0, %v5817_v21  ;;  %5838 = vrcp.f32 %v2519_v3  ;;  %v2490_v37 = vadd.f32 %v2426_v42, %v9264_v44  ;;  %v2473_v21 = vadd.f32 %v2413_v52, %v9265_v31  ;;  %v9268_v44 = vld [vmem:[#allocation21_spill] sm:$0xff] }
 0x5e3   :  { %v5821_v9 = vpop.eup %5820  ;;  %v2523_v53 = vadd.f32 1.0, %v5819_v28  ;;  %5840 = vrcp.f32 %v2521_v61  ;;  %v2403_v61 = vrot.slane %v7979_v26, 4  ;;  %v2485_v55 = vadd.f32 %v2421_v11, %v9268_v44 }
 0x5e4   :  { %v5823_v10 = vpop.eup %5822  ;;  %5842 = vrcp.f32 %v2522_v38  ;;  %v2407_v38 = vrot.slane %v7979_v26, 5  ;;  %v5040_v52 = vmul.f32 -1.442695, %v2469_v13  ;;  %v5041_v40 = vmul.f32 -1.442695, %v2473_v21 }
 0x5e5   :  { %v5825_v3 = vpop.eup %5824  ;;  %5844 = vrcp.f32 %v2523_v53  ;;  %v2411_v53 = vrot.slane %v7979_v26, 6  ;;  %v2463_v7 = vadd.f32 %v2403_v61, %v9193_v58  ;;  %v5043_v13 = vmul.f32 -1.442695, %v2481_v36 }
 0x5e6   :  { %v5827_v28 = vpop.eup %5826  ;;  %5846 = vtanh.f32 %v2482_v49  ;;  %v2467_v11 = vadd.f32 %v2407_v38, %v9218_v54  ;;  %v5044_v43 = vmul.f32 -1.442695, %v2485_v55  ;;  %v2475_v50 = vadd.f32 %v2415_v20, %v7046_v48 }
 0x5e7   :  { %v5829_v42 = vpop.eup %5828  ;;  %5848 = vtanh.f32 %v2486_v35  ;;  %v2471_v21 = vadd.f32 %v2411_v53, %v9243_v45 }
 0x5e8   :  { %v5831_v31 = vpop.eup %5830  ;;  %5850 = vtanh.f32 %v2490_v37  ;;  %v5047_v55 = vmul.f32 -1.442695, %v2467_v11  ;;  %v5049_v53 = vmul.f32 -1.442695, %v2475_v50 }
 0x5e9   :  { %v5833_v49 = vpop.eup %5832  ;;  %v8025_v16 = vmul.f32 %v5831_v31, %v5829_v42  ;;  %5852 = vpow2.f32 %v5038_v4  ;;  %v5045_v4 = vmul.f32 -1.442695, %v2489_v8 }
 0x5ea   :  { %v5835_v35 = vpop.eup %5834  ;;  %v8028_v57 = vmul.f32 %v5833_v49, %v5821_v9  ;;  %5854 = vpow2.f32 %v5039_v27  ;;  %v2479_v27 = vadd.f32 %v7979_v26, %v7053_v15  ;;  %v2419_v49 = vrot.slane %v7979_v26, 1 }
 0x5eb   :  { %v5837_v37 = vpop.eup %5836  ;;  %v8031_v44 = vmul.f32 %v5835_v35, %v5823_v10  ;;  %5856 = vpow2.f32 %v5040_v52  ;;  %v5046_v10 = vmul.f32 -1.442695, %v2463_v7  ;;  %v5048_v52 = vmul.f32 -1.442695, %v2471_v21 }
 0x5ec   :  { %v5839_v31 = vpop.eup %5838  ;;  %v8034_v42 = vmul.f32 %v5837_v37, %v5825_v3  ;;  %5858 = vpow2.f32 %v5041_v40  ;;  %v5050_v20 = vmul.f32 -1.442695, %v2479_v27  ;;  %v2423_v35 = vrot.slane %v7979_v26, 2 }
 0x5ed   :  { %v5841_v9 = vpop.eup %5840  ;;  %v8037_v61 = vmul.f32 %v5839_v31, %v5827_v28  ;;  %5860 = vpow2.f32 %v5042_v17 }
 0x5ee   :  { %v5843_v36 = vpop.eup %5842  ;;  %5862 = vpow2.f32 %v5043_v13 }
 0x5ef   :  { %v5845_v38 = vpop.eup %5844  ;;  %5864 = vpow2.f32 %v5044_v43  ;;  %v2427_v43 = vrot.slane %v7979_v26, 3 }
 0x5f0   :  { %v5847_v3 = vpop.eup %5846  ;;  %5866 = vpow2.f32 %v5045_v4 }
 0x5f1   :  { %v5849_v8 = vpop.eup %5848  ;;  %5868 = vpow2.f32 %v5046_v10  ;;  %v8041_v40 = vmul.f32 %v5847_v3, %v5841_v9  ;;  %v2483_v9 = vadd.f32 %v2419_v49, %v7060_v39 }
 0x5f2   :  { %v5851_v28 = vpop.eup %5850  ;;  %5870 = vpow2.f32 %v5047_v55  ;;  %v8044_v17 = vmul.f32 %v5849_v8, %v5843_v36  ;;  %v2487_v36 = vadd.f32 %v2423_v35, %v7065_v33 }
 0x5f3   :  { %v5853_v7 = vpop.eup %5852  ;;  %5872 = vpow2.f32 %v5048_v52  ;;  %v8047_v13 = vmul.f32 %v5851_v28, %v5845_v38  ;;  %v2491_v52 = vadd.f32 %v2427_v43, %v7098_v24 }
 0x5f4   :  { %v5855_v11 = vpop.eup %5854  ;;  %v2564_v37 = vadd.f32 1.0, %v5853_v7  ;;  %5874 = vpow2.f32 %v5049_v53  ;;  %v5052_v49 = vmul.f32 -1.442695, %v2487_v36 }
 0x5f5   :  { %v5857_v21 = vpop.eup %5856  ;;  %v2565_v31 = vadd.f32 1.0, %v5855_v11  ;;  %5876 = vpow2.f32 %v5050_v20  ;;  %v5051_v20 = vmul.f32 -1.442695, %v2483_v9  ;;  %v2653_v9 = vrot.slane %v7824_v2, 7 }
 0x5f6   :  { %v5859_v4 = vpop.eup %5858  ;;  %v2566_v50 = vadd.f32 1.0, %v5857_v21  ;;  %5878 = vrcp.f32 %v2564_v37  ;;  %v5053_v37 = vmul.f32 -1.442695, %v2491_v52 }
 0x5f7   :  { %v5861_v27 = vpop.eup %5860  ;;  %v2567_v10 = vadd.f32 1.0, %v5859_v4  ;;  %5880 = vrcp.f32 %v2565_v31 }
 0x5f8   :  { %v5863_v55 = vpop.eup %5862  ;;  %v2568_v38 = vadd.f32 1.0, %v5861_v27  ;;  %5882 = vrcp.f32 %v2566_v50  ;;  %v2652_v50 = vrot.slane %v7820_v19, 7  ;;  %v2656_v19 = vrot.slane %v7836_v59, 7 }
 0x5f9   :  { %v5865_v26 = vpop.eup %5864  ;;  %v2569_v3 = vadd.f32 1.0, %v5863_v55  ;;  %5884 = vrcp.f32 %v2567_v10 }
 0x5fa   :  { %v5867_v53 = vpop.eup %5866  ;;  %v2570_v8 = vadd.f32 1.0, %v5865_v26  ;;  %5886 = vrcp.f32 %v2568_v38  ;;  %v2654_v38 = vrot.slane %v7828_v41, 7 }
 0x5fb   :  { %v5869_v28 = vpop.eup %5868  ;;  %v2571_v7 = vadd.f32 1.0, %v5867_v53  ;;  %5888 = vrcp.f32 %v2569_v3  ;;  %v2655_v53 = vrot.slane %v7832_v12, 7  ;;  %v2658_v12 = vrot.slane %v7844_v5, 7 }
 0x5fc   :  { %v5871_v11 = vpop.eup %5870  ;;  %5890 = vrcp.f32 %v2570_v8  ;;  %v2620_v21 = vadd.f32 1.0, %v5869_v28 }
 0x5fd   :  { %v5873_v35 = vpop.eup %5872  ;;  %5892 = vrcp.f32 %v2571_v7  ;;  %v2621_v43 = vadd.f32 1.0, %v5871_v11 }
 0x5fe   :  { %v5875_v31 = vpop.eup %5874  ;;  %5894 = vpow2.f32 %v5051_v20  ;;  %v2622_v27 = vadd.f32 1.0, %v5873_v35 }
 0x5ff   :  { %v5877_v4 = vpop.eup %5876  ;;  %5896 = vpow2.f32 %v5052_v49  ;;  %v2623_v55 = vadd.f32 1.0, %v5875_v31  ;;  %v2657_v49 = vrot.slane %v7840_v6, 7 }
 0x600   :  { %v5879_v10 = vpop.eup %5878  ;;  %5898 = vpow2.f32 %v5053_v37  ;;  %v2624_v26 = vadd.f32 1.0, %v5877_v4 }
 0x601   :  { %v5881_v36 = vpop.eup %5880  ;;  %v2668_v52 = vmul.f32 %v5879_v10, %v2652_v50  ;;  %5900 = vrcp.f32 %v2620_v21 }
 0x602   :  { %v5883_v3 = vpop.eup %5882  ;;  %v2669_v8 = vmul.f32 %v5881_v36, %v2653_v9  ;;  %5902 = vrcp.f32 %v2621_v43 }
 0x603   :  { %v5885_v20 = vpop.eup %5884  ;;  %v2670_v28 = vmul.f32 %v5883_v3, %v2654_v38  ;;  %v8059_v7 = vadd.f32 %v8028_v57, %v2668_v52  ;;  %5904 = vrcp.f32 %v2622_v27  ;;  %v2659_v57 = vrot.slane %v7848_v60, 7 }
 0x604   :  { %v5887_v2 = vpop.eup %5886  ;;  %v2671_v41 = vmul.f32 %v5885_v20, %v2655_v53  ;;  %v8063_v11 = vadd.f32 %v8031_v44, %v2669_v8  ;;  %5906 = vrcp.f32 %v2623_v55 }
 0x605   :  { %v5889_v37 = vpop.eup %5888  ;;  %5908 = vrcp.f32 %v2624_v26  ;;  %v2672_v35 = vmul.f32 %v5887_v2, %v2656_v19  ;;  %v8067_v59 = vadd.f32 %v8034_v42, %v2670_v28 }
 0x606   :  { %v5891_v21 = vpop.eup %5890  ;;  %v2673_v31 = vmul.f32 %v5889_v37, %v2657_v49  ;;  %v8071_v43 = vadd.f32 %v8037_v61, %v2671_v41  ;;  %5910 = vtanh.f32 %v8059_v7 }
 0x607   :  { %v5893_v6 = vpop.eup %5892  ;;  %v2674_v44 = vmul.f32 %v5891_v21, %v2658_v12  ;;  %v8075_v4 = vadd.f32 %v8025_v16, %v2672_v35  ;;  %5912 = vtanh.f32 %v8063_v11 }
 0x608   :  { %v5895_v5 = vpop.eup %5894  ;;  %v2675_v50 = vmul.f32 %v5893_v6, %v2659_v57  ;;  %v8079_v42 = vadd.f32 %v8041_v40, %v2673_v31  ;;  %5914 = vtanh.f32 %v8067_v59 }
 0x609   :  { %v5897_v60 = vpop.eup %5896  ;;  %v2625_v27 = vadd.f32 1.0, %v5895_v5  ;;  %v8083_v61 = vadd.f32 %v8044_v17, %v2674_v44  ;;  %5916 = vtanh.f32 %v8071_v43 }
 0x60a   :  { %v5899_v10 = vpop.eup %5898  ;;  %v2626_v9 = vadd.f32 1.0, %v5897_v60  ;;  %v8087_v16 = vadd.f32 %v8047_v13, %v2675_v50  ;;  %5918 = vtanh.f32 %v8075_v4 }
 0x60b   :  { %v5901_v55 = vpop.eup %5900  ;;  %5920 = vrcp.f32 %v2625_v27  ;;  %v2627_v40 = vadd.f32 1.0, %v5899_v10 }
 0x60c   :  { %v5903_v36 = vpop.eup %5902  ;;  %5922 = vrcp.f32 %v2626_v9 }
 0x60d   :  { %v5905_v38 = vpop.eup %5904  ;;  %5924 = vrcp.f32 %v2627_v40 }
 0x60e   :  { %v5907_v52 = vpop.eup %5906  ;;  %5926 = vtanh.f32 %v8079_v42 }
 0x60f   :  { %v5909_v17 = vpop.eup %5908  ;;  %5928 = vtanh.f32 %v8083_v61 }
 0x610   :  { %v5911_v26 = vpop.eup %5910  ;;  %5930 = vtanh.f32 %v8087_v16 }
 0x611   :  { %v5913_v13 = vpop.eup %5912  ;;  %v2700_v3 = vmul.f32 %v5911_v26, %v5901_v55 }
 0x612   :  { %v5915_v53 = vpop.eup %5914  ;;  %v2701_v8 = vmul.f32 %v5913_v13, %v5903_v36 }
 0x613   :  { %v5917_v20 = vpop.eup %5916  ;;  %v2702_v19 = vmul.f32 %v5915_v53, %v5905_v38  ;;  %v2708_v28 = vpack.c.bf16 %v2700_v3, %v2700_v3 }
 0x614   :  { %v5919_v2 = vpop.eup %5918  ;;  %v2703_v49 = vmul.f32 %v5917_v20, %v5907_v52  ;;  %v2709_v41 = vpack.c.bf16 %v2701_v8, %v2701_v8 }
 0x615   :  { %v5921_v37 = vpop.eup %5920  ;;  %v2704_v12 = vmul.f32 %v5919_v2, %v5909_v17  ;;  %v2710_v35 = vpack.c.bf16 %v2702_v19, %v2702_v19  ;;  %v2724_v21 = vunpack.c.l.b16 %v2708_v28 }
 0x616   :  { %v5923_v57 = vpop.eup %5922  ;;  %v2711_v31 = vpack.c.bf16 %v2703_v49, %v2703_v49  ;;  %v2725_v6 = vunpack.c.l.b16 %v2709_v41 }
 0x617   :  { %v5925_v44 = vpop.eup %5924  ;;  %v2712_v5 = vpack.c.bf16 %v2704_v12, %v2704_v12  ;;  %v2726_v50 = vunpack.c.l.b16 %v2710_v35  ;;  %v2732_v60 = vrot.slane %v2724_v21, 4 }
 0x618   :  { %v5927_v27 = vpop.eup %5926  ;;  %v2727_v10 = vunpack.c.l.b16 %v2711_v31  ;;  %v2733_v9 = vrot.slane %v2725_v6, 3 }
 0x619   :  { %v5929_v55 = vpop.eup %5928  ;;  %v2705_v40 = vmul.f32 %v5927_v27, %v5921_v37  ;;  %v2735_v36 = vrot.slane %v2726_v50, 2  ;;  %v2728_v53 = vunpack.c.l.b16 %v2712_v5  ;;  %v8103_v5 = vld [vmem:[%s9052_s3] ss:$16 sps:$4 sm:$0xff]   ;;  %v8110_v50 = vld [vmem:[%s9052_s3 + $0x24] ss:$16 sps:$4 sm:$0xff]   ;;  %v9270_v27 = vld [vmem:[#allocation37_spill] sm:$0xff] }
 0x61a   :  { %v5931_v38 = vpop.eup %5930  ;;  %v2706_v52 = vmul.f32 %v5929_v55, %v5923_v57  ;;  %v2734_v26 = vsel %vm990_vm0, %v2733_v9, %v2732_v60  ;;  %v2737_v17 = vrot.slane %v2727_v10, 1  ;;  %v8119_v60 = vld [vmem:[%s9052_s3 + $0x20] ss:$16 sps:$4 sm:$0xff]   ;;  %v9271_v10 = vld [vmem:[#allocation31_spill] sm:$0xff] }
 0x61b   :  { %v2707_v13 = vmul.f32 %v5931_v38, %v5925_v44  ;;  %v2713_v3 = vpack.c.bf16 %v2705_v40, %v2705_v40  ;;  %v2736_v8 = vsel %vm993_vm1, %v2735_v36, %v2734_v26 }
 0x61c   :  { %v2714_v20 = vpack.c.bf16 %v2706_v52, %v2706_v52  ;;  %v2738_v19 = vsel %vm996_vm2, %v2737_v17, %v2736_v8 }
 0x61d   :  { %v2715_v28 = vpack.c.bf16 %v2707_v13, %v2707_v13  ;;  %v2729_v2 = vunpack.c.l.b16 %v2713_v3  ;;  %v2739_v49 = vsel %vm999_vm3, %v2728_v53, %v2738_v19  ;;  %v9272_v19 = vld [vmem:[#allocation8_spill] sm:$0xff] }
 0x61e   :  { %v2730_v41 = vunpack.c.l.b16 %v2714_v20 }
 0x61f   :  { %v2731_v37 = vunpack.c.l.b16 %v2715_v28  ;;  %v2740_v12 = vrot.slane %v2729_v2, 7  ;;  %v9273_v2 = vld [vmem:[#allocation9_spill] sm:$0xff] }
 0x620   :  { %v2742_v35 = vrot.slane %v2730_v41, 6  ;;  %v9274_v41 = vld [vmem:[#allocation12_spill] sm:$0xff] }
 0x621   :  { %v2741_v21 = vsel %vm1002_vm4, %v2740_v12, %v2739_v49  ;;  %v2744_v57 = vrot.slane %v2731_v37, 5  ;;  %v9275_v12 = vld [vmem:[#allocation14_spill] sm:$0xff] }
 0x622   :  { %v2743_v31 = vsel %vm1005_vm5, %v2742_v35, %v2741_v21 }
 0x623   :  { %v2745_v6 = vsel %vm1008_vm6, %v2744_v57, %v2743_v31  ;;  %v9276_v31 = vld [vmem:[#allocation16_spill] sm:$0xff] }
 0x624   :  { %v2746_v44 = vpack.c.b16 %v2745_v6, %v2745_v6 }
 0x626   :  { %2781 = vmatmul.mubr.bf16.vlgmr.msra.gmra.mrb[20].mxu0 %v2746_v44  ;;  %2822 = vmatmul.mubr.bf16.vlgmr.msra.gmra.mrb[52].mxu1 %v2746_v44  ;;  %v9277_v44 = vld [vmem:[#allocation20_spill] sm:$0xff] }
 0x627   :  { %3183 = vmatpush1.bf16.msra.mxu0 %v8103_v5  ;;  %3224 = vmatpush1.bf16.msra.mxu1 %v7865_v34  ;;  %v8126_v34 = vld [vmem:[%s9052_s3 + $0x44] ss:$16 sps:$4 sm:$0xff]  }
 0x628   :  { %3184 = vmatprep.subr.bf16.mxu0 %v8110_v50  ;;  %3225 = vmatprep.subr.bf16.mxu1 %v7872_v47  ;;  %v8133_v47 = vld [vmem:[%s9052_s3 + $0x40] ss:$16 sps:$4 sm:$0xff]  }
 0x629   :  { %3214 = vmatprep.mubr.bf16.mxu0 %v9171_v18  ;;  %3255 = vmatprep.mubr.bf16.mxu1 %v9171_v18 }
 0x62b   :  { %3185 = vmatpush1.bf16.msra.mxu0 %v8119_v60  ;;  %3226 = vmatpush1.bf16.msra.mxu1 %v7881_v25  ;;  %v8140_v25 = vld [vmem:[%s9052_s3 + $0x64] ss:$16 sps:$4 sm:$0xff]  }
 0x62c   :  { %3186 = vmatprep.subr.bf16.mxu0 %v8126_v34  ;;  %3227 = vmatprep.subr.bf16.mxu1 %v7888_v22  ;;  %v8147_v22 = vld [vmem:[%s9052_s3 + $0x60] ss:$16 sps:$4 sm:$0xff]  }
 0x62f   :  { %3187 = vmatpush1.bf16.msra.mxu0 %v8133_v47  ;;  %3228 = vmatpush1.bf16.msra.mxu1 %v7895_v51  ;;  %v8154_v51 = vld [vmem:[%s9052_s3 + $0x84] ss:$16 sps:$4 sm:$0xff]  }
 0x630   :  { %3188 = vmatprep.subr.bf16.mxu0 %v8140_v25  ;;  %3229 = vmatprep.subr.bf16.mxu1 %v7902_v23  ;;  %v8161_v23 = vld [vmem:[%s9052_s3 + $0x80] ss:$16 sps:$4 sm:$0xff]  }
 0x633   :  { %3189 = vmatpush1.bf16.msra.mxu0 %v8147_v22  ;;  %3230 = vmatpush1.bf16.msra.mxu1 %v7909_v46  ;;  %v8168_v46 = vld [vmem:[%s9052_s3 + $0xa4] ss:$16 sps:$4 sm:$0xff]  }
 0x634   :  { %3190 = vmatprep.subr.bf16.mxu0 %v8154_v51  ;;  %3231 = vmatprep.subr.bf16.mxu1 %v7916_v32  ;;  %v8175_v32 = vld [vmem:[%s9052_s3 + $0xa0] ss:$16 sps:$4 sm:$0xff]  }
 0x637   :  { %3191 = vmatpush1.bf16.msra.mxu0 %v8161_v23  ;;  %3232 = vmatpush1.bf16.msra.mxu1 %v7923_v29  ;;  %v8182_v29 = vld [vmem:[%s9052_s3 + $0xc4] ss:$16 sps:$4 sm:$0xff]  }
 0x638   :  { %3192 = vmatprep.subr.bf16.mxu0 %v8168_v46  ;;  %3233 = vmatprep.subr.bf16.mxu1 %v7930_v14  ;;  %v8189_v14 = vld [vmem:[%s9052_s3 + $0xc0] ss:$16 sps:$4 sm:$0xff]  }
 0x63b   :  { %3193 = vmatpush1.bf16.msra.mxu0 %v8175_v32  ;;  %3234 = vmatpush1.bf16.msra.mxu1 %v7937_v62  ;;  %v8196_v62 = vld [vmem:[%s9052_s3 + $0xe4] ss:$16 sps:$4 sm:$0xff]  }
 0x63c   :  { %3194 = vmatprep.subr.bf16.mxu0 %v8182_v29  ;;  %3235 = vmatprep.subr.bf16.mxu1 %v7944_v63  ;;  %v8203_v63 = vld [vmem:[%s9052_s3 + $0xe0] ss:$16 sps:$4 sm:$0xff]  }
 0x63d   :  { %9269 = vst [vmem:[#allocation29_spill] sm:$0xff] %v8203_v63 }
 0x63f   :  { %3195 = vmatpush1.bf16.msra.mxu0 %v8189_v14  ;;  %3236 = vmatpush1.bf16.msra.mxu1 %v7951_v0  ;;  %v6429_v0 = vld [vmem:[%s9052_s3 + $0x4] ss:$16 sps:$4 sm:$0xff]  }
 0x640   :  { %3196 = vmatprep.subr.bf16.mxu0 %v8196_v62  ;;  %3237 = vmatprep.subr.bf16.mxu1 %v7958_v1 }
 0x643   :  { %3197 = vmatpush1.bf16.msra.mxu0 %v8203_v63  ;;  %3238 = vmatpush1.bf16.msra.mxu1 %v9270_v27 }
 0x644   :  { %3616 = vmatprep.subr.bf16.mxu0 %v6429_v0  ;;  %3657 = vmatprep.subr.bf16.mxu1 %v9271_v10  ;;  %v9278_v10 = vld [vmem:[#allocation22_spill] sm:$0xff] }
 0x6f9   :  { %v2782_v9 = vpop.f32.mrb[20].mxu0  ;;  %v8211_v55 = vpop.f32.mrb[52].mxu1 }
 0x6fa   :  { %v2834_v1 = vrot.slane %v2782_v9, 3  ;;  %v2838_v40 = vrot.slane %v2782_v9, 4  ;;  %v2842_v36 = vrot.slane %v2782_v9, 5  ;;  %v2846_v38 = vrot.slane %v2782_v9, 6  ;;  %v8213_v52 = vpop.f32.mrb[21].mxu0  ;;  %v8215_v26 = vpop.f32.mrb[53].mxu1 }
 0x6fb   :  { %v2850_v17 = vrot.slane %v2782_v9, 7  ;;  %v2854_v13 = vrot.slane %v2782_v9, 1  ;;  %v2858_v3 = vrot.slane %v2782_v9, 2  ;;  %v2914_v53 = vadd.f32 %v2782_v9, %v9251_v56  ;;  %v2786_v8 = vpop.f32.mrb[22].mxu0  ;;  %v2827_v20 = vpop.f32.mrb[54].mxu1 }
 0x6fc   :  { %v2894_v28 = vadd.f32 %v2834_v1, %v9272_v19  ;;  %v2898_v49 = vadd.f32 %v2838_v40, %v9273_v2  ;;  %v2902_v37 = vadd.f32 %v2842_v36, %v9274_v41  ;;  %v2906_v35 = vadd.f32 %v2846_v38, %v9275_v12  ;;  %v2787_v21 = vpop.f32.mrb[23].mxu0  ;;  %v2828_v57 = vpop.f32.mrb[55].mxu1 }
 0x6fd   :  { %v2910_v6 = vadd.f32 %v2850_v17, %v9276_v31  ;;  %v2918_v27 = vadd.f32 %v2854_v13, %v9277_v44  ;;  %v5059_v0 = vmul.f32 -1.442695, %v2914_v53  ;;  %v2922_v63 = vadd.f32 %v2858_v3, %v9278_v10  ;;  %v9281_v21 = vld [vmem:[#allocation30_spill] sm:$0xff]  ;;  %v9288_v31 = vld [vmem:[#allocation13_spill] sm:$0xff] }
 0x6fe   :  { %v5054_v9 = vmul.f32 -1.442695, %v2894_v28  ;;  %v5055_v8 = vmul.f32 -1.442695, %v2898_v49  ;;  %v5056_v20 = vmul.f32 -1.442695, %v2902_v37 }
 0x6ff   :  { %v5057_v56 = vmul.f32 -1.442695, %v2906_v35  ;;  %5932 = vpow2.f32 %v5059_v0  ;;  %v5058_v1 = vmul.f32 -1.442695, %v2910_v6  ;;  %v2836_v40 = vrot.slane %v8211_v55, 3  ;;  %v9279_v28 = vld [vmem:[#allocation26_spill] sm:$0xff] }
 0x700   :  { %5934 = vpow2.f32 %v5054_v9  ;;  %v2840_v36 = vrot.slane %v8211_v55, 4  ;;  %v5060_v38 = vmul.f32 -1.442695, %v2918_v27  ;;  %v2844_v17 = vrot.slane %v8211_v55, 5  ;;  %v9280_v37 = vld [vmem:[#allocation28_spill] sm:$0xff]  ;;  %v9283_v0 = vld [vmem:[#allocation33_spill] sm:$0xff] }
 0x701   :  { %5936 = vpow2.f32 %v5055_v8  ;;  %v5061_v13 = vmul.f32 -1.442695, %v2922_v63  ;;  %v2848_v53 = vrot.slane %v8211_v55, 6  ;;  %v2852_v3 = vrot.slane %v8211_v55, 7  ;;  %v9282_v6 = vld [vmem:[#allocation32_spill] sm:$0xff] }
 0x702   :  { %5938 = vpow2.f32 %v5056_v20  ;;  %v2896_v49 = vadd.f32 %v2836_v40, %v9279_v28  ;;  %v2900_v35 = vadd.f32 %v2840_v36, %v9280_v37  ;;  %v2904_v57 = vadd.f32 %v2844_v17, %v9281_v21  ;;  %v9287_v28 = vld [vmem:[#allocation11_spill] sm:$0xff] }
 0x703   :  { %5940 = vpow2.f32 %v5057_v56  ;;  %v2908_v27 = vadd.f32 %v2848_v53, %v9282_v6  ;;  %v2912_v9 = vadd.f32 %v2852_v3, %v9283_v0  ;;  %v2856_v17 = vrot.slane %v8211_v55, 1  ;;  %v9285_v6 = vld [vmem:[#allocation10_spill] sm:$0xff] }
 0x704   :  { %5942 = vpow2.f32 %v5058_v1  ;;  %v2835_v1 = vrot.slane %v8213_v52, 3  ;;  %v2851_v0 = vrot.slane %v8213_v52, 7 }
 0x705   :  { %5944 = vpow2.f32 %v5060_v38 }
 0x706   :  { %5946 = vpow2.f32 %v5061_v13  ;;  %v2839_v13 = vrot.slane %v8213_v52, 4 }
 0x707   :  { %5948 = vtanh.f32 %v2896_v49  ;;  %v9284_v49 = vld [vmem:[#allocation34_spill] sm:$0xff] }
 0x708   :  { %5950 = vtanh.f32 %v2900_v35  ;;  %v2916_v35 = vadd.f32 %v8211_v55, %v9284_v49  ;;  %v9286_v49 = vld [vmem:[#allocation35_spill] sm:$0xff]  ;;  %v2899_v10 = vadd.f32 %v2839_v13, %v9287_v28 }
 0x709   :  { %v5933_v63 = vpop.eup %5932  ;;  %5952 = vtanh.f32 %v2904_v57  ;;  %v2843_v57 = vrot.slane %v8213_v52, 5  ;;  %v2920_v37 = vadd.f32 %v2856_v17, %v9286_v49  ;;  %v9291_v17 = vld [vmem:[#allocation17_spill] sm:$0xff]  ;;  %v9292_v28 = vld [vmem:[#allocation19_spill] sm:$0xff] }
 0x70a   :  { %v5935_v56 = vpop.eup %5934  ;;  %v2955_v8 = vadd.f32 1.0, %v5933_v63  ;;  %5954 = vtanh.f32 %v2908_v27  ;;  %v2911_v49 = vadd.f32 %v2851_v0, %v9291_v17 }
 0x70b   :  { %v5937_v20 = vpop.eup %5936  ;;  %v2950_v40 = vadd.f32 1.0, %v5935_v56  ;;  %5956 = vtanh.f32 %v2912_v9  ;;  %v2860_v9 = vrot.slane %v8211_v55, 2  ;;  %v2847_v56 = vrot.slane %v8213_v52, 6 }
 0x70c   :  { %v5939_v36 = vpop.eup %5938  ;;  %v2951_v38 = vadd.f32 1.0, %v5937_v20  ;;  %5958 = vrcp.f32 %v2955_v8  ;;  %v2855_v55 = vrot.slane %v8213_v52, 1  ;;  %v2903_v12 = vadd.f32 %v2843_v57, %v9288_v31 }
 0x70d   :  { %v5941_v53 = vpop.eup %5940  ;;  %v2952_v3 = vadd.f32 1.0, %v5939_v36  ;;  %5960 = vrcp.f32 %v2950_v40  ;;  %v2895_v36 = vadd.f32 %v2835_v1, %v9285_v6  ;;  %v2859_v1 = vrot.slane %v8213_v52, 2  ;;  %v9290_v6 = vld [vmem:[#allocation15_spill] sm:$0xff] }
 0x70e   :  { %v5943_v27 = vpop.eup %5942  ;;  %v2953_v63 = vadd.f32 1.0, %v5941_v53  ;;  %5962 = vrcp.f32 %v2951_v38  ;;  %v2915_v57 = vadd.f32 %v8213_v52, %v9292_v28  ;;  %v5063_v31 = vmul.f32 -1.442695, %v2899_v10 }
 0x70f   :  { %v5945_v8 = vpop.eup %5944  ;;  %v2954_v20 = vadd.f32 1.0, %v5943_v27  ;;  %5964 = vrcp.f32 %v2952_v3  ;;  %v9289_v3 = vld [vmem:[#allocation36_spill] sm:$0xff]  ;;  %v5062_v13 = vmul.f32 -1.442695, %v2895_v36  ;;  %v2923_v0 = vadd.f32 %v2859_v1, %v9192_v30 }
 0x710   :  { %v5947_v40 = vpop.eup %5946  ;;  %v2956_v21 = vadd.f32 1.0, %v5945_v8  ;;  %5966 = vrcp.f32 %v2953_v63  ;;  %v2924_v41 = vadd.f32 %v2860_v9, %v9289_v3  ;;  %v2907_v8 = vadd.f32 %v2847_v56, %v9290_v6  ;;  %v9293_v3 = vld [vmem:[#allocation21_spill] sm:$0xff] }
 0x711   :  { %v5949_v53 = vpop.eup %5948  ;;  %v2957_v38 = vadd.f32 1.0, %v5947_v40  ;;  %5968 = vrcp.f32 %v2954_v20  ;;  %v2837_v40 = vrot.slane %v8215_v26, 3  ;;  %v2919_v2 = vadd.f32 %v2855_v55, %v9293_v3 }
 0x712   :  { %v5951_v27 = vpop.eup %5950  ;;  %5970 = vrcp.f32 %v2956_v21  ;;  %v2841_v21 = vrot.slane %v8215_v26, 4  ;;  %v5064_v56 = vmul.f32 -1.442695, %v2903_v12  ;;  %v5065_v36 = vmul.f32 -1.442695, %v2907_v8 }
 0x713   :  { %v5953_v63 = vpop.eup %5952  ;;  %5972 = vrcp.f32 %v2957_v38  ;;  %v2845_v38 = vrot.slane %v8215_v26, 5  ;;  %v5066_v52 = vmul.f32 -1.442695, %v2911_v49  ;;  %v2853_v10 = vrot.slane %v8215_v26, 7 }
 0x714   :  { %v5955_v20 = vpop.eup %5954  ;;  %5974 = vtanh.f32 %v2916_v35  ;;  %v2849_v35 = vrot.slane %v8215_v26, 6  ;;  %v2897_v28 = vadd.f32 %v2837_v40, %v9193_v58  ;;  %v5067_v12 = vmul.f32 -1.442695, %v2915_v57 }
 0x715   :  { %v5957_v9 = vpop.eup %5956  ;;  %5976 = vtanh.f32 %v2920_v37  ;;  %v2901_v55 = vadd.f32 %v2841_v21, %v9218_v54  ;;  %v5068_v1 = vmul.f32 -1.442695, %v2919_v2  ;;  %v2905_v8 = vadd.f32 %v2845_v38, %v9243_v45 }
 0x716   :  { %v5959_v6 = vpop.eup %5958  ;;  %5978 = vtanh.f32 %v2924_v41  ;;  %v5069_v30 = vmul.f32 -1.442695, %v2923_v0  ;;  %v2909_v40 = vadd.f32 %v2849_v35, %v7046_v48  ;;  %v5070_v57 = vmul.f32 -1.442695, %v2897_v28 }
 0x717   :  { %v5961_v17 = vpop.eup %5960  ;;  %5980 = vpow2.f32 %v5062_v13  ;;  %v5071_v2 = vmul.f32 -1.442695, %v2901_v55 }
 0x718   :  { %v5963_v37 = vpop.eup %5962  ;;  %v8263_v19 = vmul.f32 %v5961_v17, %v5949_v53  ;;  %5982 = vpow2.f32 %v5063_v31  ;;  %v2913_v31 = vadd.f32 %v2853_v10, %v7053_v15  ;;  %v5073_v0 = vmul.f32 -1.442695, %v2909_v40 }
 0x719   :  { %v5965_v41 = vpop.eup %5964  ;;  %v8266_v3 = vmul.f32 %v5963_v37, %v5951_v27  ;;  %5984 = vpow2.f32 %v5064_v56 }
 0x71a   :  { %v5967_v13 = vpop.eup %5966  ;;  %v8269_v49 = vmul.f32 %v5965_v41, %v5953_v63  ;;  %5986 = vpow2.f32 %v5065_v36  ;;  %v5072_v63 = vmul.f32 -1.442695, %v2905_v8 }
 0x71b   :  { %v5969_v53 = vpop.eup %5968  ;;  %v8272_v17 = vmul.f32 %v5967_v13, %v5955_v20  ;;  %5988 = vpow2.f32 %v5066_v52  ;;  %v5074_v20 = vmul.f32 -1.442695, %v2913_v31  ;;  %v2917_v13 = vadd.f32 %v8215_v26, %v7060_v39 }
 0x71c   :  { %v5971_v27 = vpop.eup %5970  ;;  %v8275_v21 = vmul.f32 %v5969_v53, %v5957_v9  ;;  %5990 = vpow2.f32 %v5067_v12  ;;  %v2857_v9 = vrot.slane %v8215_v26, 1 }
 0x71d   :  { %v5973_v56 = vpop.eup %5972  ;;  %5992 = vpow2.f32 %v5068_v1 }
 0x71e   :  { %v5975_v38 = vpop.eup %5974  ;;  %5994 = vpow2.f32 %v5069_v30  ;;  %v2861_v30 = vrot.slane %v8215_v26, 2  ;;  %v2921_v31 = vadd.f32 %v2857_v9, %v7065_v33 }
 0x71f   :  { %v5977_v36 = vpop.eup %5976  ;;  %v8277_v35 = vmul.f32 %v5975_v38, %v5959_v6  ;;  %5996 = vpow2.f32 %v5070_v57 }
 0x720   :  { %v5979_v52 = vpop.eup %5978  ;;  %5998 = vpow2.f32 %v5071_v2  ;;  %v8279_v10 = vmul.f32 %v5977_v36, %v5971_v27  ;;  %v2925_v2 = vadd.f32 %v2861_v30, %v7098_v24  ;;  %v5075_v36 = vmul.f32 -1.442695, %v2917_v13 }
 0x721   :  { %v5981_v28 = vpop.eup %5980  ;;  %6000 = vpow2.f32 %v5072_v63  ;;  %v8282_v37 = vmul.f32 %v5979_v52, %v5973_v56  ;;  %v5076_v26 = vmul.f32 -1.442695, %v2921_v31  ;;  %v3087_v13 = vrot.slane %v8063_v11, 7 }
 0x722   :  { %v5983_v12 = vpop.eup %5982  ;;  %v2998_v55 = vadd.f32 1.0, %v5981_v28  ;;  %6002 = vpow2.f32 %v5073_v0 }
 0x723   :  { %v5985_v41 = vpop.eup %5984  ;;  %v2999_v6 = vadd.f32 1.0, %v5983_v12  ;;  %6004 = vpow2.f32 %v5074_v20  ;;  %v5077_v12 = vmul.f32 -1.442695, %v2925_v2 }
 0x724   :  { %v5987_v1 = vpop.eup %5986  ;;  %v3000_v8 = vadd.f32 1.0, %v5985_v41  ;;  %6006 = vrcp.f32 %v2998_v55 }
 0x725   :  { %v5989_v40 = vpop.eup %5988  ;;  %v3001_v53 = vadd.f32 1.0, %v5987_v1  ;;  %6008 = vrcp.f32 %v2999_v6  ;;  %v3086_v1 = vrot.slane %v8059_v7, 7  ;;  %v3090_v7 = vrot.slane %v8075_v4, 7 }
 0x726   :  { %v5991_v57 = vpop.eup %5990  ;;  %v3002_v27 = vadd.f32 1.0, %v5989_v40  ;;  %6010 = vrcp.f32 %v3000_v8 }
 0x727   :  { %v5993_v56 = vpop.eup %5992  ;;  %v3003_v63 = vadd.f32 1.0, %v5991_v57  ;;  %6012 = vrcp.f32 %v3001_v53  ;;  %v3088_v57 = vrot.slane %v8067_v59, 7 }
 0x728   :  { %v5995_v38 = vpop.eup %5994  ;;  %v3004_v0 = vadd.f32 1.0, %v5993_v56  ;;  %6014 = vrcp.f32 %v3002_v27 }
 0x729   :  { %v5997_v20 = vpop.eup %5996  ;;  %v3005_v52 = vadd.f32 1.0, %v5995_v38  ;;  %6016 = vrcp.f32 %v3003_v63  ;;  %v3089_v63 = vrot.slane %v8071_v43, 7  ;;  %v3092_v43 = vrot.slane %v8083_v61, 7 }
 0x72a   :  { %v5999_v28 = vpop.eup %5998  ;;  %6018 = vrcp.f32 %v3004_v0  ;;  %v3054_v55 = vadd.f32 1.0, %v5997_v20 }
 0x72b   :  { %v6001_v9 = vpop.eup %6000  ;;  %6020 = vrcp.f32 %v3005_v52  ;;  %v3055_v30 = vadd.f32 1.0, %v5999_v28  ;;  %v3091_v52 = vrot.slane %v8079_v42, 7 }
 0x72c   :  { %v6003_v41 = vpop.eup %6002  ;;  %6022 = vpow2.f32 %v5075_v36  ;;  %v3056_v8 = vadd.f32 1.0, %v6001_v9 }
 0x72d   :  { %v6005_v6 = vpop.eup %6004  ;;  %6024 = vpow2.f32 %v5076_v26  ;;  %v3057_v53 = vadd.f32 1.0, %v6003_v41 }
 0x72e   :  { %v6007_v40 = vpop.eup %6006  ;;  %6026 = vpow2.f32 %v5077_v12  ;;  %v3058_v2 = vadd.f32 1.0, %v6005_v6 }
 0x72f   :  { %v6009_v31 = vpop.eup %6008  ;;  %v3102_v27 = vmul.f32 %v6007_v40, %v3086_v1  ;;  %6028 = vrcp.f32 %v3054_v55 }
 0x730   :  { %v6011_v56 = vpop.eup %6010  ;;  %v3103_v38 = vmul.f32 %v6009_v31, %v3087_v13  ;;  %6030 = vrcp.f32 %v3055_v30 }
 0x731   :  { %v6013_v0 = vpop.eup %6012  ;;  %v3104_v36 = vmul.f32 %v6011_v56, %v3088_v57  ;;  %v8295_v20 = vadd.f32 %v8263_v19, %v3102_v27  ;;  %6032 = vrcp.f32 %v3056_v8  ;;  %v3093_v19 = vrot.slane %v8087_v16, 7 }
 0x732   :  { %v6015_v11 = vpop.eup %6014  ;;  %v3105_v59 = vmul.f32 %v6013_v0, %v3089_v63  ;;  %v8299_v26 = vadd.f32 %v8266_v3, %v3103_v38  ;;  %6034 = vrcp.f32 %v3057_v53 }
 0x733   :  { %v6017_v28 = vpop.eup %6016  ;;  %6036 = vrcp.f32 %v3058_v2  ;;  %v3106_v12 = vmul.f32 %v6015_v11, %v3090_v7  ;;  %v8303_v4 = vadd.f32 %v8269_v49, %v3104_v36 }
 0x734   :  { %v6019_v9 = vpop.eup %6018  ;;  %v3107_v55 = vmul.f32 %v6017_v28, %v3091_v52  ;;  %v8307_v41 = vadd.f32 %v8272_v17, %v3105_v59  ;;  %6038 = vtanh.f32 %v8295_v20 }
 0x735   :  { %v6021_v42 = vpop.eup %6020  ;;  %v3108_v3 = vmul.f32 %v6019_v9, %v3092_v43  ;;  %v8311_v30 = vadd.f32 %v8275_v21, %v3106_v12  ;;  %6040 = vtanh.f32 %v8299_v26 }
 0x736   :  { %v6023_v61 = vpop.eup %6022  ;;  %v3109_v6 = vmul.f32 %v6021_v42, %v3093_v19  ;;  %v8315_v49 = vadd.f32 %v8277_v35, %v3107_v55  ;;  %6042 = vtanh.f32 %v8303_v4 }
 0x737   :  { %v6025_v16 = vpop.eup %6024  ;;  %v3059_v1 = vadd.f32 1.0, %v6023_v61  ;;  %v8319_v17 = vadd.f32 %v8279_v10, %v3108_v3  ;;  %6044 = vtanh.f32 %v8307_v41 }
 0x738   :  { %v6027_v8 = vpop.eup %6026  ;;  %v3060_v40 = vadd.f32 1.0, %v6025_v16  ;;  %v8323_v21 = vadd.f32 %v8282_v37, %v3109_v6  ;;  %6046 = vtanh.f32 %v8311_v30 }
 0x739   :  { %v6029_v13 = vpop.eup %6028  ;;  %6048 = vrcp.f32 %v3059_v1  ;;  %v3061_v35 = vadd.f32 1.0, %v6027_v8 }
 0x73a   :  { %v6031_v53 = vpop.eup %6030  ;;  %6050 = vrcp.f32 %v3060_v40 }
 0x73b   :  { %v6033_v31 = vpop.eup %6032  ;;  %6052 = vrcp.f32 %v3061_v35 }
 0x73c   :  { %v6035_v57 = vpop.eup %6034  ;;  %6054 = vtanh.f32 %v8315_v49 }
 0x73d   :  { %v6037_v10 = vpop.eup %6036  ;;  %6056 = vtanh.f32 %v8319_v17 }
 0x73e   :  { %v6039_v27 = vpop.eup %6038  ;;  %6058 = vtanh.f32 %v8323_v21 }
 0x73f   :  { %v6041_v37 = vpop.eup %6040  ;;  %v3134_v2 = vmul.f32 %v6039_v27, %v6029_v13 }
 0x740   :  { %v6043_v56 = vpop.eup %6042  ;;  %v3135_v63 = vmul.f32 %v6041_v37, %v6031_v53 }
 0x741   :  { %v6045_v38 = vpop.eup %6044  ;;  %v3136_v0 = vmul.f32 %v6043_v56, %v6033_v31  ;;  %v3142_v7 = vpack.c.bf16 %v3134_v2, %v3134_v2 }
 0x742   :  { %v6047_v36 = vpop.eup %6046  ;;  %v3137_v11 = vmul.f32 %v6045_v38, %v6035_v57  ;;  %v3143_v52 = vpack.c.bf16 %v3135_v63, %v3135_v63 }
 0x743   :  { %v6049_v59 = vpop.eup %6048  ;;  %v3138_v28 = vmul.f32 %v6047_v36, %v6037_v10  ;;  %v3144_v43 = vpack.c.bf16 %v3136_v0, %v3136_v0  ;;  %v3158_v12 = vunpack.c.l.b16 %v3142_v7 }
 0x744   :  { %v6051_v9 = vpop.eup %6050  ;;  %v3145_v19 = vpack.c.bf16 %v3137_v11, %v3137_v11  ;;  %v3159_v55 = vunpack.c.l.b16 %v3143_v52 }
 0x745   :  { %v6053_v42 = vpop.eup %6052  ;;  %v3146_v3 = vpack.c.bf16 %v3138_v28, %v3138_v28  ;;  %v3160_v61 = vunpack.c.l.b16 %v3144_v43  ;;  %v3166_v6 = vrot.slane %v3158_v12, 5 }
 0x746   :  { %v6055_v16 = vpop.eup %6054  ;;  %v3161_v1 = vunpack.c.l.b16 %v3145_v19  ;;  %v3167_v8 = vrot.slane %v3159_v55, 4 }
 0x747   :  { %v6057_v40 = vpop.eup %6056  ;;  %v3139_v13 = vmul.f32 %v6055_v16, %v6049_v59  ;;  %v3162_v35 = vunpack.c.l.b16 %v3146_v3  ;;  %v3169_v53 = vrot.slane %v3160_v61, 3  ;;  %v6431_v3 = vld [vmem:[%s9052_s3 + $0x2c] ss:$16 sps:$4 sm:$0xff]   ;;  %v6444_v61 = vld [vmem:[%s9052_s3 + $0xe8] ss:$16 sps:$4 sm:$0xff]  }
 0x748   :  { %v6059_v31 = vpop.eup %6058  ;;  %v3140_v57 = vmul.f32 %v6057_v40, %v6051_v9  ;;  %v3168_v10 = vsel %vm990_vm0, %v3167_v8, %v3166_v6  ;;  %v3171_v27 = vrot.slane %v3161_v1, 2 }
 0x749   :  { %v3141_v37 = vmul.f32 %v6059_v31, %v6053_v42  ;;  %v3147_v2 = vpack.c.bf16 %v3139_v13, %v3139_v13  ;;  %v3170_v56 = vsel %vm993_vm1, %v3169_v53, %v3168_v10  ;;  %v3173_v63 = vrot.slane %v3162_v35, 1  ;;  %v6430_v42 = vld [vmem:[%s9052_s3 + $0x8] ss:$16 sps:$4 sm:$0xff]  }
 0x74a   :  { %v3148_v38 = vpack.c.bf16 %v3140_v57, %v3140_v57  ;;  %v3172_v0 = vsel %vm996_vm2, %v3171_v27, %v3170_v56 }
 0x74b   :  { %v3149_v7 = vpack.c.bf16 %v3141_v37, %v3141_v37  ;;  %v3163_v36 = vunpack.c.l.b16 %v3147_v2  ;;  %v3174_v11 = vsel %vm999_vm3, %v3173_v63, %v3172_v0  ;;  %v9295_v2 = vld [vmem:[#allocation8_spill] sm:$0xff]  ;;  %v9296_v63 = vld [vmem:[#allocation9_spill] sm:$0xff] }
 0x74c   :  { %v3164_v52 = vunpack.c.l.b16 %v3148_v38  ;;  %v9297_v0 = vld [vmem:[#allocation12_spill] sm:$0xff] }
 0x74d   :  { %v3165_v59 = vunpack.c.l.b16 %v3149_v7  ;;  %v3175_v28 = vsel %vm1002_vm4, %v3163_v36, %v3174_v11  ;;  %v9298_v36 = vld [vmem:[#allocation14_spill] sm:$0xff] }
 0x74e   :  { %v3176_v43 = vrot.slane %v3164_v52, 7 }
 0x74f   :  { %v3178_v12 = vrot.slane %v3165_v59, 6 }
 0x750   :  { %v3177_v9 = vsel %vm1005_vm5, %v3176_v43, %v3175_v28  ;;  %v9299_v28 = vld [vmem:[#allocation16_spill] sm:$0xff] }
 0x751   :  { %v3179_v19 = vsel %vm1008_vm6, %v3178_v12, %v3177_v9  ;;  %v9300_v12 = vld [vmem:[#allocation18_spill] sm:$0xff] }
 0x752   :  { %v3180_v55 = vpack.c.b16 %v3179_v19, %v3179_v19 }
 0x754   :  { %3215 = vmatmul.mubr.bf16.vlgmr.msra.gmra.mrb[24].mxu0 %v3180_v55  ;;  %3256 = vmatmul.mubr.bf16.vlgmr.msra.gmra.mrb[56].mxu1 %v3180_v55  ;;  %v9301_v55 = vld [vmem:[#allocation22_spill] sm:$0xff] }
 0x755   :  { %3617 = vmatpush1.bf16.msra.mxu0 %v8103_v5  ;;  %3658 = vmatpush1.bf16.msra.mxu1 %v6430_v42  ;;  %v6432_v5 = vld [vmem:[%s9052_s3 + $0x28] ss:$16 sps:$4 sm:$0xff]  }
 0x756   :  { %3618 = vmatprep.subr.bf16.mxu0 %v8110_v50  ;;  %3659 = vmatprep.subr.bf16.mxu1 %v6431_v3  ;;  %v6433_v50 = vld [vmem:[%s9052_s3 + $0x4c] ss:$16 sps:$4 sm:$0xff]  }
 0x757   :  { %3648 = vmatprep.mubr.bf16.mxu0 %v9171_v18  ;;  %3689 = vmatprep.mubr.bf16.mxu1 %v9171_v18  ;;  %v6434_v18 = vld [vmem:[%s9052_s3 + $0x48] ss:$16 sps:$4 sm:$0xff]  }
 0x759   :  { %3619 = vmatpush1.bf16.msra.mxu0 %v8119_v60  ;;  %3660 = vmatpush1.bf16.msra.mxu1 %v6432_v5  ;;  %v6435_v60 = vld [vmem:[%s9052_s3 + $0x6c] ss:$16 sps:$4 sm:$0xff]  }
 0x75a   :  { %3620 = vmatprep.subr.bf16.mxu0 %v8126_v34  ;;  %3661 = vmatprep.subr.bf16.mxu1 %v6433_v50  ;;  %v6436_v34 = vld [vmem:[%s9052_s3 + $0x68] ss:$16 sps:$4 sm:$0xff]  }
 0x75d   :  { %3621 = vmatpush1.bf16.msra.mxu0 %v8133_v47  ;;  %3662 = vmatpush1.bf16.msra.mxu1 %v6434_v18  ;;  %v6437_v47 = vld [vmem:[%s9052_s3 + $0x8c] ss:$16 sps:$4 sm:$0xff]  }
 0x75e   :  { %3622 = vmatprep.subr.bf16.mxu0 %v8140_v25  ;;  %3663 = vmatprep.subr.bf16.mxu1 %v6435_v60  ;;  %v6438_v25 = vld [vmem:[%s9052_s3 + $0x88] ss:$16 sps:$4 sm:$0xff]  }
 0x761   :  { %3623 = vmatpush1.bf16.msra.mxu0 %v8147_v22  ;;  %3664 = vmatpush1.bf16.msra.mxu1 %v6436_v34  ;;  %v6439_v22 = vld [vmem:[%s9052_s3 + $0xac] ss:$16 sps:$4 sm:$0xff]  }
 0x762   :  { %3624 = vmatprep.subr.bf16.mxu0 %v8154_v51  ;;  %3665 = vmatprep.subr.bf16.mxu1 %v6437_v47  ;;  %v6440_v51 = vld [vmem:[%s9052_s3 + $0xa8] ss:$16 sps:$4 sm:$0xff]  }
 0x765   :  { %3625 = vmatpush1.bf16.msra.mxu0 %v8161_v23  ;;  %3666 = vmatpush1.bf16.msra.mxu1 %v6438_v25  ;;  %v6441_v23 = vld [vmem:[%s9052_s3 + $0xcc] ss:$16 sps:$4 sm:$0xff]  }
 0x766   :  { %3626 = vmatprep.subr.bf16.mxu0 %v8168_v46  ;;  %3667 = vmatprep.subr.bf16.mxu1 %v6439_v22  ;;  %v6442_v46 = vld [vmem:[%s9052_s3 + $0xc8] ss:$16 sps:$4 sm:$0xff]  }
 0x769   :  { %3627 = vmatpush1.bf16.msra.mxu0 %v8175_v32  ;;  %3668 = vmatpush1.bf16.msra.mxu1 %v6440_v51  ;;  %v6443_v32 = vld [vmem:[%s9052_s3 + $0xec] ss:$16 sps:$4 sm:$0xff]  }
 0x76a   :  { %3628 = vmatprep.subr.bf16.mxu0 %v8182_v29  ;;  %3669 = vmatprep.subr.bf16.mxu1 %v6441_v23  ;;  %v9294_v29 = vld [vmem:[#allocation29_spill] sm:$0xff] }
 0x76d   :  { %3629 = vmatpush1.bf16.msra.mxu0 %v8189_v14  ;;  %3670 = vmatpush1.bf16.msra.mxu1 %v6442_v46  ;;  %v8401_v14 = vld [vmem:[%s9054_s5] sm:$0xff]  }
 0x76e   :  { %3630 = vmatprep.subr.bf16.mxu0 %v8196_v62  ;;  %3671 = vmatprep.subr.bf16.mxu1 %v6443_v32  ;;  %v9302_v32 = vld [vmem:[#allocation26_spill] sm:$0xff] }
 0x771   :  { %3631 = vmatpush1.bf16.msra.mxu0 %v9294_v29  ;;  %3672 = vmatpush1.bf16.msra.mxu1 %v6444_v61  ;;  %v9303_v61 = vld [vmem:[#allocation28_spill] sm:$0xff] }
 0x772   :  { %5152 = vmatprep.subr.bf16.mxu0 %v8401_v14 }
 0x827   :  { %v3216_v62 = vpop.f32.mrb[24].mxu0  ;;  %v8404_v6 = vpop.f32.mrb[56].mxu1 }
 0x828   :  { %v3268_v16 = vrot.slane %v3216_v62, 2  ;;  %v3272_v1 = vrot.slane %v3216_v62, 3  ;;  %v3276_v8 = vrot.slane %v3216_v62, 4  ;;  %v3280_v40 = vrot.slane %v3216_v62, 5  ;;  %v8406_v13 = vpop.f32.mrb[25].mxu0  ;;  %v8408_v35 = vpop.f32.mrb[57].mxu1 }
 0x829   :  { %v3284_v53 = vrot.slane %v3216_v62, 6  ;;  %v3288_v31 = vrot.slane %v3216_v62, 7  ;;  %v3292_v57 = vrot.slane %v3216_v62, 1  ;;  %v3352_v10 = vadd.f32 %v3216_v62, %v9277_v44  ;;  %v3220_v27 = vpop.f32.mrb[26].mxu0  ;;  %v3261_v37 = vpop.f32.mrb[58].mxu1 }
 0x82a   :  { %v3328_v56 = vadd.f32 %v3268_v16, %v9295_v2  ;;  %v3332_v38 = vadd.f32 %v3272_v1, %v9296_v63  ;;  %v3336_v7 = vadd.f32 %v3276_v8, %v9297_v0  ;;  %v3340_v11 = vadd.f32 %v3280_v40, %v9298_v36  ;;  %v3221_v52 = vpop.f32.mrb[27].mxu0  ;;  %v3262_v59 = vpop.f32.mrb[59].mxu1  ;;  %v9304_v16 = vld [vmem:[#allocation30_spill] sm:$0xff]  ;;  %v9305_v8 = vld [vmem:[#allocation32_spill] sm:$0xff] }
 0x82b   :  { %v3344_v43 = vadd.f32 %v3284_v53, %v9299_v28  ;;  %v3348_v9 = vadd.f32 %v3288_v31, %v9300_v12  ;;  %v5084_v19 = vmul.f32 -1.442695, %v3352_v10  ;;  %v3356_v42 = vadd.f32 %v3292_v57, %v9301_v55  ;;  %v9306_v53 = vld [vmem:[#allocation33_spill] sm:$0xff] }
 0x82c   :  { %v5078_v3 = vmul.f32 -1.442695, %v3328_v56  ;;  %v5079_v5 = vmul.f32 -1.442695, %v3332_v38  ;;  %v5080_v50 = vmul.f32 -1.442695, %v3336_v7 }
 0x82d   :  { %v5081_v18 = vmul.f32 -1.442695, %v3340_v11  ;;  %6060 = vpow2.f32 %v5084_v19  ;;  %v5082_v60 = vmul.f32 -1.442695, %v3344_v43  ;;  %v3270_v34 = vrot.slane %v8404_v6, 2 }
 0x82e   :  { %6062 = vpow2.f32 %v5078_v3  ;;  %v3274_v47 = vrot.slane %v8404_v6, 3  ;;  %v5083_v25 = vmul.f32 -1.442695, %v3348_v9  ;;  %v3278_v22 = vrot.slane %v8404_v6, 4 }
 0x82f   :  { %6064 = vpow2.f32 %v5079_v5  ;;  %v5085_v51 = vmul.f32 -1.442695, %v3356_v42  ;;  %v3282_v23 = vrot.slane %v8404_v6, 5  ;;  %v3286_v46 = vrot.slane %v8404_v6, 6 }
 0x830   :  { %6066 = vpow2.f32 %v5080_v50  ;;  %v3330_v29 = vadd.f32 %v3270_v34, %v9302_v32  ;;  %v3334_v62 = vadd.f32 %v3274_v47, %v9303_v61  ;;  %v3338_v1 = vadd.f32 %v3278_v22, %v9304_v16  ;;  %v9307_v50 = vld [vmem:[#allocation34_spill] sm:$0xff] }
 0x831   :  { %6068 = vpow2.f32 %v5081_v18  ;;  %v3342_v40 = vadd.f32 %v3282_v23, %v9305_v8  ;;  %v3346_v31 = vadd.f32 %v3286_v46, %v9306_v53  ;;  %v3290_v37 = vrot.slane %v8404_v6, 7  ;;  %v9308_v22 = vld [vmem:[#allocation10_spill] sm:$0xff] }
 0x832   :  { %6070 = vpow2.f32 %v5082_v60  ;;  %v3269_v7 = vrot.slane %v8406_v13, 2  ;;  %v3273_v59 = vrot.slane %v8406_v13, 3  ;;  %v3294_v19 = vrot.slane %v8404_v6, 1 }
 0x833   :  { %6072 = vpow2.f32 %v5083_v25  ;;  %v3277_v42 = vrot.slane %v8406_v13, 4  ;;  %v3350_v18 = vadd.f32 %v3290_v37, %v9307_v50  ;;  %v3281_v60 = vrot.slane %v8406_v13, 5 }
 0x834   :  { %6074 = vpow2.f32 %v5085_v51  ;;  %v3285_v25 = vrot.slane %v8406_v13, 6  ;;  %v3329_v51 = vadd.f32 %v3269_v7, %v9308_v22  ;;  %v3293_v7 = vrot.slane %v8406_v13, 1 }
 0x835   :  { %6076 = vtanh.f32 %v3330_v29  ;;  %v3289_v29 = vrot.slane %v8406_v13, 7 }
 0x836   :  { %6078 = vtanh.f32 %v3334_v62  ;;  %v9309_v62 = vld [vmem:[#allocation11_spill] sm:$0xff] }
 0x837   :  { %v6061_v57 = vpop.eup %6060  ;;  %6080 = vtanh.f32 %v3338_v1  ;;  %v3333_v1 = vadd.f32 %v3273_v59, %v9309_v62 }
 0x838   :  { %v6063_v10 = vpop.eup %6062  ;;  %v3390_v27 = vadd.f32 1.0, %v6061_v57  ;;  %6082 = vtanh.f32 %v3342_v40  ;;  %v9310_v57 = vld [vmem:[#allocation35_spill] sm:$0xff] }
 0x839   :  { %v6065_v56 = vpop.eup %6064  ;;  %v3384_v38 = vadd.f32 1.0, %v6063_v10  ;;  %6084 = vtanh.f32 %v3346_v31  ;;  %v3354_v10 = vadd.f32 %v8404_v6, %v9310_v57  ;;  %v9315_v6 = vld [vmem:[#allocation19_spill] sm:$0xff] }
 0x83a   :  { %v6067_v11 = vpop.eup %6066  ;;  %v3385_v52 = vadd.f32 1.0, %v6065_v56  ;;  %6086 = vrcp.f32 %v3390_v27  ;;  %v9311_v27 = vld [vmem:[#allocation13_spill] sm:$0xff] }
 0x83b   :  { %v6069_v43 = vpop.eup %6068  ;;  %v3386_v9 = vadd.f32 1.0, %v6067_v11  ;;  %6088 = vrcp.f32 %v3384_v38  ;;  %v3337_v37 = vadd.f32 %v3277_v42, %v9311_v27  ;;  %v9312_v38 = vld [vmem:[#allocation36_spill] sm:$0xff]  ;;  %v5087_v42 = vmul.f32 -1.442695, %v3333_v1 }
 0x83c   :  { %v6071_v3 = vpop.eup %6070  ;;  %v3387_v5 = vadd.f32 1.0, %v6069_v43  ;;  %6090 = vrcp.f32 %v3385_v52  ;;  %v3358_v11 = vadd.f32 %v3294_v19, %v9312_v38  ;;  %v9313_v52 = vld [vmem:[#allocation15_spill] sm:$0xff]  ;;  %v9316_v19 = vld [vmem:[#allocation21_spill] sm:$0xff]  ;;  %v3287_v1 = vrot.slane %v8408_v35, 6 }
 0x83d   :  { %v6073_v34 = vpop.eup %6072  ;;  %v3388_v47 = vadd.f32 1.0, %v6071_v3  ;;  %6092 = vrcp.f32 %v3386_v9  ;;  %v3341_v43 = vadd.f32 %v3281_v60, %v9313_v52  ;;  %v9314_v3 = vld [vmem:[#allocation17_spill] sm:$0xff]  ;;  %v3353_v38 = vadd.f32 %v8406_v13, %v9316_v19 }
 0x83e   :  { %v6075_v23 = vpop.eup %6074  ;;  %v3389_v46 = vadd.f32 1.0, %v6073_v34  ;;  %6094 = vrcp.f32 %v3387_v5  ;;  %v3345_v59 = vadd.f32 %v3285_v25, %v9314_v3  ;;  %v5086_v5 = vmul.f32 -1.442695, %v3329_v51  ;;  %v9317_v25 = vld [vmem:[#allocation23_spill] sm:$0xff] }
 0x83f   :  { %v6077_v40 = vpop.eup %6076  ;;  %v3391_v31 = vadd.f32 1.0, %v6075_v23  ;;  %6096 = vrcp.f32 %v3388_v47  ;;  %v3271_v34 = vrot.slane %v8408_v35, 2  ;;  %v3349_v23 = vadd.f32 %v3289_v29, %v9315_v6 }
 0x840   :  { %v6079_v56 = vpop.eup %6078  ;;  %6098 = vrcp.f32 %v3389_v46  ;;  %v3275_v46 = vrot.slane %v8408_v35, 3  ;;  %v5088_v60 = vmul.f32 -1.442695, %v3337_v37  ;;  %v3357_v51 = vadd.f32 %v3293_v7, %v9317_v25 }
 0x841   :  { %v6081_v9 = vpop.eup %6080  ;;  %6100 = vrcp.f32 %v3391_v31  ;;  %v3279_v31 = vrot.slane %v8408_v35, 4  ;;  %v5089_v3 = vmul.f32 -1.442695, %v3341_v43  ;;  %v5090_v29 = vmul.f32 -1.442695, %v3345_v59 }
 0x842   :  { %v6083_v47 = vpop.eup %6082  ;;  %6102 = vtanh.f32 %v3350_v18  ;;  %v3283_v18 = vrot.slane %v8408_v35, 5  ;;  %v5091_v13 = vmul.f32 -1.442695, %v3349_v23  ;;  %v3335_v37 = vadd.f32 %v3275_v46, %v9218_v54 }
 0x843   :  { %v6085_v27 = vpop.eup %6084  ;;  %6104 = vtanh.f32 %v3354_v10  ;;  %v3331_v10 = vadd.f32 %v3271_v34, %v9193_v58  ;;  %v5092_v7 = vmul.f32 -1.442695, %v3353_v38  ;;  %v3339_v43 = vadd.f32 %v3279_v31, %v9243_v45 }
 0x844   :  { %v6087_v52 = vpop.eup %6086  ;;  %6106 = vtanh.f32 %v3358_v11  ;;  %v5093_v25 = vmul.f32 -1.442695, %v3357_v51  ;;  %v3343_v34 = vadd.f32 %v3283_v18, %v7046_v48  ;;  %v3347_v23 = vadd.f32 %v3287_v1, %v7053_v15 }
 0x845   :  { %v6089_v62 = vpop.eup %6088  ;;  %6108 = vpow2.f32 %v5086_v5  ;;  %v5095_v38 = vmul.f32 -1.442695, %v3335_v37 }
 0x846   :  { %v6091_v6 = vpop.eup %6090  ;;  %v8456_v22 = vmul.f32 %v6089_v62, %v6077_v40  ;;  %6110 = vpow2.f32 %v5087_v42  ;;  %v5094_v42 = vmul.f32 -1.442695, %v3331_v10  ;;  %v5098_v51 = vmul.f32 -1.442695, %v3347_v23 }
 0x847   :  { %v6093_v11 = vpop.eup %6092  ;;  %v8459_v19 = vmul.f32 %v6091_v6, %v6079_v56  ;;  %6112 = vpow2.f32 %v5088_v60  ;;  %v3355_v23 = vadd.f32 %v8408_v35, %v7065_v33 }
 0x848   :  { %v6095_v5 = vpop.eup %6094  ;;  %v8462_v59 = vmul.f32 %v6093_v11, %v6081_v9  ;;  %6114 = vpow2.f32 %v5089_v3  ;;  %v5096_v9 = vmul.f32 -1.442695, %v3339_v43  ;;  %v5097_v3 = vmul.f32 -1.442695, %v3343_v34 }
 0x849   :  { %v6097_v62 = vpop.eup %6096  ;;  %v8465_v40 = vmul.f32 %v6095_v5, %v6083_v47  ;;  %6116 = vpow2.f32 %v5090_v29  ;;  %v3291_v29 = vrot.slane %v8408_v35, 7 }
 0x84a   :  { %v6099_v56 = vpop.eup %6098  ;;  %v8468_v6 = vmul.f32 %v6097_v62, %v6085_v27  ;;  %6118 = vpow2.f32 %v5091_v13 }
 0x84b   :  { %v6101_v46 = vpop.eup %6100  ;;  %6120 = vpow2.f32 %v5092_v7  ;;  %v3351_v34 = vadd.f32 %v3291_v29, %v7060_v39  ;;  %v5100_v29 = vmul.f32 -1.442695, %v3355_v23 }
 0x84c   :  { %v6103_v60 = vpop.eup %6102  ;;  %6122 = vpow2.f32 %v5093_v25  ;;  %v3295_v25 = vrot.slane %v8408_v35, 1 }
 0x84d   :  { %v6105_v31 = vpop.eup %6104  ;;  %6124 = vpow2.f32 %v5094_v42  ;;  %v8470_v47 = vmul.f32 %v6103_v60, %v6099_v56 }
 0x84e   :  { %v6107_v18 = vpop.eup %6106  ;;  %6126 = vpow2.f32 %v5095_v38  ;;  %v8473_v1 = vmul.f32 %v6105_v31, %v6087_v52  ;;  %v3359_v38 = vadd.f32 %v3295_v25, %v7098_v24  ;;  %v5099_v31 = vmul.f32 -1.442695, %v3351_v34 }
 0x84f   :  { %v6109_v27 = vpop.eup %6108  ;;  %6128 = vpow2.f32 %v5096_v9  ;;  %v8475_v10 = vmul.f32 %v6107_v18, %v6101_v46  ;;  %v3521_v34 = vrot.slane %v8299_v26, 7 }
 0x850   :  { %v6111_v13 = vpop.eup %6110  ;;  %v3432_v37 = vadd.f32 1.0, %v6109_v27  ;;  %6130 = vpow2.f32 %v5097_v3 }
 0x851   :  { %v6113_v11 = vpop.eup %6112  ;;  %v3433_v7 = vadd.f32 1.0, %v6111_v13  ;;  %6132 = vpow2.f32 %v5098_v51  ;;  %v5101_v13 = vmul.f32 -1.442695, %v3359_v38 }
 0x852   :  { %v6115_v43 = vpop.eup %6114  ;;  %v3434_v5 = vadd.f32 1.0, %v6113_v11  ;;  %6134 = vrcp.f32 %v3432_v37 }
 0x853   :  { %v6117_v62 = vpop.eup %6116  ;;  %v3435_v52 = vadd.f32 1.0, %v6115_v43  ;;  %6136 = vrcp.f32 %v3433_v7  ;;  %v3520_v43 = vrot.slane %v8295_v20, 7  ;;  %v3524_v20 = vrot.slane %v8311_v30, 7 }
 0x854   :  { %v6119_v42 = vpop.eup %6118  ;;  %v3436_v56 = vadd.f32 1.0, %v6117_v62  ;;  %6138 = vrcp.f32 %v3434_v5 }
 0x855   :  { %v6121_v46 = vpop.eup %6120  ;;  %v3437_v9 = vadd.f32 1.0, %v6119_v42  ;;  %6140 = vrcp.f32 %v3435_v52  ;;  %v3522_v42 = vrot.slane %v8303_v4, 7 }
 0x856   :  { %v6123_v60 = vpop.eup %6122  ;;  %v3438_v3 = vadd.f32 1.0, %v6121_v46  ;;  %6142 = vrcp.f32 %v3436_v56 }
 0x857   :  { %v6125_v51 = vpop.eup %6124  ;;  %v3439_v18 = vadd.f32 1.0, %v6123_v60  ;;  %6144 = vrcp.f32 %v3437_v9  ;;  %v3523_v9 = vrot.slane %v8307_v41, 7  ;;  %v3526_v41 = vrot.slane %v8319_v17, 7 }
 0x858   :  { %v6127_v27 = vpop.eup %6126  ;;  %6146 = vrcp.f32 %v3438_v3  ;;  %v3488_v37 = vadd.f32 1.0, %v6125_v51 }
 0x859   :  { %v6129_v35 = vpop.eup %6128  ;;  %6148 = vrcp.f32 %v3439_v18  ;;  %v3489_v25 = vadd.f32 1.0, %v6127_v27  ;;  %v3525_v18 = vrot.slane %v8315_v49, 7 }
 0x85a   :  { %v6131_v11 = vpop.eup %6130  ;;  %6150 = vpow2.f32 %v5099_v31  ;;  %v3490_v5 = vadd.f32 1.0, %v6129_v35 }
 0x85b   :  { %v6133_v7 = vpop.eup %6132  ;;  %6152 = vpow2.f32 %v5100_v29  ;;  %v3491_v52 = vadd.f32 1.0, %v6131_v11 }
 0x85c   :  { %v6135_v62 = vpop.eup %6134  ;;  %6154 = vpow2.f32 %v5101_v13  ;;  %v3492_v38 = vadd.f32 1.0, %v6133_v7 }
 0x85d   :  { %v6137_v23 = vpop.eup %6136  ;;  %v3536_v56 = vmul.f32 %v6135_v62, %v3520_v43  ;;  %6156 = vrcp.f32 %v3488_v37 }
 0x85e   :  { %v6139_v46 = vpop.eup %6138  ;;  %v3537_v60 = vmul.f32 %v6137_v23, %v3521_v34  ;;  %6158 = vrcp.f32 %v3489_v25 }
 0x85f   :  { %v6141_v3 = vpop.eup %6140  ;;  %v3538_v31 = vmul.f32 %v6139_v46, %v3522_v42  ;;  %v8488_v51 = vadd.f32 %v8456_v22, %v3536_v56  ;;  %6160 = vrcp.f32 %v3490_v5  ;;  %v3527_v22 = vrot.slane %v8323_v21, 7 }
 0x860   :  { %v6143_v26 = vpop.eup %6142  ;;  %v3539_v4 = vmul.f32 %v6141_v3, %v3523_v9  ;;  %v8492_v29 = vadd.f32 %v8459_v19, %v3537_v60  ;;  %6162 = vrcp.f32 %v3491_v52 }
 0x861   :  { %v6145_v27 = vpop.eup %6144  ;;  %6164 = vrcp.f32 %v3492_v38  ;;  %v3540_v13 = vmul.f32 %v6143_v26, %v3524_v20  ;;  %v8496_v30 = vadd.f32 %v8462_v59, %v3538_v31 }
 0x862   :  { %v6147_v35 = vpop.eup %6146  ;;  %v3541_v37 = vmul.f32 %v6145_v27, %v3525_v18  ;;  %v8500_v11 = vadd.f32 %v8465_v40, %v3539_v4  ;;  %6166 = vtanh.f32 %v8488_v51 }
 0x863   :  { %v6149_v49 = vpop.eup %6148  ;;  %v3542_v19 = vmul.f32 %v6147_v35, %v3526_v41  ;;  %v8504_v25 = vadd.f32 %v8468_v6, %v3540_v13  ;;  %6168 = vtanh.f32 %v8492_v29 }
 0x864   :  { %v6151_v17 = vpop.eup %6150  ;;  %v3543_v7 = vmul.f32 %v6149_v49, %v3527_v22  ;;  %v8508_v59 = vadd.f32 %v8470_v47, %v3541_v37  ;;  %6170 = vtanh.f32 %v8496_v30 }
 0x865   :  { %v6153_v21 = vpop.eup %6152  ;;  %v3493_v43 = vadd.f32 1.0, %v6151_v17  ;;  %v8512_v40 = vadd.f32 %v8473_v1, %v3542_v19  ;;  %6172 = vtanh.f32 %v8500_v11 }
 0x866   :  { %v6155_v5 = vpop.eup %6154  ;;  %v3494_v62 = vadd.f32 1.0, %v6153_v21  ;;  %v8516_v6 = vadd.f32 %v8475_v10, %v3543_v7  ;;  %6174 = vtanh.f32 %v8504_v25 }
 0x867   :  { %v6157_v34 = vpop.eup %6156  ;;  %6176 = vrcp.f32 %v3493_v43  ;;  %v3495_v47 = vadd.f32 1.0, %v6155_v5 }
 0x868   :  { %v6159_v52 = vpop.eup %6158  ;;  %6178 = vrcp.f32 %v3494_v62 }
 0x869   :  { %v6161_v23 = vpop.eup %6160  ;;  %6180 = vrcp.f32 %v3495_v47 }
 0x86a   :  { %v6163_v42 = vpop.eup %6162  ;;  %6182 = vtanh.f32 %v8508_v59 }
 0x86b   :  { %v6165_v1 = vpop.eup %6164  ;;  %6184 = vtanh.f32 %v8512_v40 }
 0x86c   :  { %v6167_v56 = vpop.eup %6166  ;;  %6186 = vtanh.f32 %v8516_v6 }
 0x86d   :  { %v6169_v10 = vpop.eup %6168  ;;  %v3568_v38 = vmul.f32 %v6167_v56, %v6157_v34 }
 0x86e   :  { %v6171_v46 = vpop.eup %6170  ;;  %v3569_v9 = vmul.f32 %v6169_v10, %v6159_v52 }
 0x86f   :  { %v6173_v60 = vpop.eup %6172  ;;  %v3570_v3 = vmul.f32 %v6171_v46, %v6161_v23  ;;  %v3576_v20 = vpack.c.bf16 %v3568_v38, %v3568_v38 }
 0x870   :  { %v6175_v31 = vpop.eup %6174  ;;  %v3571_v26 = vmul.f32 %v6173_v60, %v6163_v42  ;;  %v3577_v18 = vpack.c.bf16 %v3569_v9, %v3569_v9 }
 0x871   :  { %v6177_v4 = vpop.eup %6176  ;;  %v3572_v27 = vmul.f32 %v6175_v31, %v6165_v1  ;;  %v3578_v41 = vpack.c.bf16 %v3570_v3, %v3570_v3  ;;  %v3592_v13 = vunpack.c.l.b16 %v3576_v20 }
 0x872   :  { %v6179_v35 = vpop.eup %6178  ;;  %v3579_v22 = vpack.c.bf16 %v3571_v26, %v3571_v26  ;;  %v3593_v37 = vunpack.c.l.b16 %v3577_v18 }
 0x873   :  { %v6181_v49 = vpop.eup %6180  ;;  %v3580_v19 = vpack.c.bf16 %v3572_v27, %v3572_v27  ;;  %v3594_v17 = vunpack.c.l.b16 %v3578_v41  ;;  %v3600_v7 = vrot.slane %v3592_v13, 6  ;;  %v4025_v41 = vld [vmem:[%s9049_s0] sm:$0xff]  ;;  %v4026_v13 = vld [vmem:[%s9049_s0 + $0x8] sm:$0xff] }
 0x874   :  { %v6183_v21 = vpop.eup %6182  ;;  %v3595_v43 = vunpack.c.l.b16 %v3579_v22  ;;  %v3601_v5 = vrot.slane %v3593_v37, 5 }
 0x875   :  { %v6185_v62 = vpop.eup %6184  ;;  %v3573_v34 = vmul.f32 %v6183_v21, %v6177_v4  ;;  %v3596_v47 = vunpack.c.l.b16 %v3580_v19  ;;  %v3603_v52 = vrot.slane %v3594_v17, 4  ;;  %v4041_v19 = vpack.c.bf16 %v4026_v13, %v4025_v41  ;;  %v5286_v21 = vld [vmem:[%s9054_s5 + $0x10] sm:$0xff]   ;;  %v4040_v13 = vld [vmem:[%s9049_s0 + $0x78] sm:$0xff] }
 0x876   :  { %v6187_v23 = vpop.eup %6186  ;;  %v3574_v42 = vmul.f32 %v6185_v62, %v6179_v35  ;;  %v3602_v1 = vsel %vm990_vm0, %v3601_v5, %v3600_v7  ;;  %v3605_v56 = vrot.slane %v3595_v43, 3  ;;  %v5285_v7 = vld [vmem:[%s9054_s5 + $0x8] sm:$0xff]   ;;  %v5287_v43 = vld [vmem:[%s9054_s5 + $0x18] sm:$0xff]   ;;  %v5288_v5 = vld [vmem:[%s9054_s5 + $0x20] sm:$0xff]  }
 0x877   :  { %v3575_v10 = vmul.f32 %v6187_v23, %v6181_v49  ;;  %v3581_v38 = vpack.c.bf16 %v3573_v34, %v3573_v34  ;;  %v3604_v46 = vsel %vm993_vm1, %v3603_v52, %v3602_v1  ;;  %v3607_v9 = vrot.slane %v3596_v47, 2  ;;  %v5290_v62 = vld [vmem:[%s9054_s5 + $0x30] sm:$0xff]   ;;  %v5291_v34 = vld [vmem:[%s9054_s5 + $0x38] sm:$0xff]   ;;  %v4029_v23 = vld [vmem:[%s9049_s0 + $0x20] sm:$0xff] }
 0x878   :  { %v3582_v60 = vpack.c.bf16 %v3574_v42, %v3574_v42  ;;  %v3606_v3 = vsel %vm996_vm2, %v3605_v56, %v3604_v46  ;;  %v4027_v47 = vld [vmem:[%s9049_s0 + $0x10] sm:$0xff]  ;;  %v4028_v52 = vld [vmem:[%s9049_s0 + $0x18] sm:$0xff]  ;;  %v4030_v42 = vld [vmem:[%s9049_s0 + $0x28] sm:$0xff] }
 0x879   :  { %v3583_v20 = vpack.c.bf16 %v3575_v10, %v3575_v10  ;;  %v3597_v31 = vunpack.c.l.b16 %v3581_v38  ;;  %v3608_v26 = vsel %vm999_vm3, %v3607_v9, %v3606_v3  ;;  %v4042_v1 = vpack.c.bf16 %v4028_v52, %v4027_v47  ;;  %v4031_v10 = vld [vmem:[%s9049_s0 + $0x30] sm:$0xff]  ;;  %v4032_v38 = vld [vmem:[%s9049_s0 + $0x38] sm:$0xff]  ;;  %v4033_v46 = vld [vmem:[%s9049_s0 + $0x40] sm:$0xff] }
 0x87a   :  { %v3598_v27 = vunpack.c.l.b16 %v3582_v60  ;;  %v4043_v56 = vpack.c.bf16 %v4030_v42, %v4029_v23  ;;  %v4034_v9 = vld [vmem:[%s9049_s0 + $0x48] sm:$0xff]  ;;  %v4044_v60 = vpack.c.bf16 %v4032_v38, %v4031_v10  ;;  %v4039_v41 = vld [vmem:[%s9049_s0 + $0x70] sm:$0xff] }
 0x87b   :  { %v3599_v18 = vunpack.c.l.b16 %v3583_v20  ;;  %v3609_v4 = vrot.slane %v3597_v31, 1  ;;  %v4045_v3 = vpack.c.bf16 %v4034_v9, %v4033_v46  ;;  %v4035_v20 = vld [vmem:[%s9049_s0 + $0x50] sm:$0xff]  ;;  %v4036_v31 = vld [vmem:[%s9049_s0 + $0x58] sm:$0xff] }
 0x87d   :  { %v3610_v35 = vsel %vm1002_vm4, %v3609_v4, %v3608_v26  ;;  %v3612_v22 = vrot.slane %v3599_v18, 7  ;;  %v4037_v26 = vld [vmem:[%s9049_s0 + $0x60] sm:$0xff]  ;;  %v4038_v18 = vld [vmem:[%s9049_s0 + $0x68] sm:$0xff]  ;;  %v4046_v4 = vpack.c.bf16 %v4036_v31, %v4035_v20 }
 0x87e   :  { %v3611_v37 = vsel %vm1005_vm5, %v3598_v27, %v3610_v35  ;;  %v4047_v27 = vpack.c.bf16 %v4038_v18, %v4037_v26  ;;  %v4048_v35 = vpack.c.bf16 %v4040_v13, %v4039_v41 }
 0x87f   :  { %v3613_v49 = vsel %vm1008_vm6, %v3612_v22, %v3611_v37 }
 0x880   :  { %v3614_v17 = vpack.c.b16 %v3613_v49, %v3613_v49 }
 0x882   :  { %3649 = vmatmul.mubr.bf16.vlgmr.msra.gmra.mrb[28].mxu0 %v3614_v17  ;;  %3690 = vmatmul.mubr.bf16.vlgmr.msra.gmra.mrb[60].mxu1 %v3614_v17 }
 0x883   :  { %5153 = vmatpush3.bf16.msra.mxu0 %v8401_v14  ;;  %5168 = vmatprep.mubr.bf16.mxu0 %v4041_v19  ;;  %v5289_v14 = vld [vmem:[%s9054_s5 + $0x28] sm:$0xff]  }
 0x884   :  { %5154 = vmatprep.subr.bf16.mxu0 %v5285_v7 }
 0x887   :  { %5155 = vmatpush3.bf16.msra.mxu0 %v5285_v7 }
 0x888   :  { %5156 = vmatprep.subr.bf16.mxu0 %v5286_v21 }
 0x88b   :  { %5157 = vmatpush3.bf16.msra.mxu0 %v5286_v21 }
 0x88c   :  { %5158 = vmatprep.subr.bf16.mxu0 %v5287_v43 }
 0x88f   :  { %5159 = vmatpush3.bf16.msra.mxu0 %v5287_v43 }
 0x890   :  { %5160 = vmatprep.subr.bf16.mxu0 %v5288_v5 }
 0x893   :  { %5161 = vmatpush3.bf16.msra.mxu0 %v5288_v5 }
 0x894   :  { %5162 = vmatprep.subr.bf16.mxu0 %v5289_v14 }
 0x897   :  { %5163 = vmatpush3.bf16.msra.mxu0 %v5289_v14 }
 0x898   :  { %5164 = vmatprep.subr.bf16.mxu0 %v5290_v62 }
 0x89b   :  { %5165 = vmatpush3.bf16.msra.mxu0 %v5290_v62 }
 0x89c   :  { %5166 = vmatprep.subr.bf16.mxu0 %v5291_v34 }
 0x89f   :  { %5167 = vmatpush3.bf16.msra.mxu0 %v5291_v34 }
 0x8a2   :  { %5169 = vmatmul.mubr.bf16.vlgmr.msra.gmra.mrb[32].mxu0 %v4042_v1 }
 0x8a3   :  { %5172 = vmatprep.mubr.bf16.mxu0 %v4043_v56 }
 0x8aa   :  { %5173 = vmatmul.mubr.bf16.gmra.mrb[36].mxu0 %v4044_v60 }
 0x8ab   :  { %5176 = vmatprep.mubr.bf16.mxu0 %v4045_v3 }
 0x8b2   :  { %5177 = vmatmul.mubr.bf16.gmra.mrb[40].mxu0 %v4046_v4 }
 0x8b3   :  { %5180 = vmatprep.mubr.bf16.mxu0 %v4047_v27 }
 0x8ba   :  { %5181 = vmatmul.mubr.bf16.gmra.mrb[44].mxu0 %v4048_v35 }
 0x955   :  { %v3650_v22 = vpop.f32.mrb[28].mxu0  ;;  %v8599_v37 = vpop.f32.mrb[60].mxu1 }
 0x956   :  { %v3702_v49 = vrot.slane %v3650_v22, 1  ;;  %v3706_v19 = vrot.slane %v3650_v22, 2  ;;  %v3710_v17 = vrot.slane %v3650_v22, 3  ;;  %v3714_v7 = vrot.slane %v3650_v22, 4  ;;  %v8601_v21 = vpop.f32.mrb[29].mxu0  ;;  %v8603_v43 = vpop.f32.mrb[61].mxu1 }
 0x957   :  { %v3718_v5 = vrot.slane %v3650_v22, 5  ;;  %v3722_v14 = vrot.slane %v3650_v22, 6  ;;  %v3726_v62 = vrot.slane %v3650_v22, 7  ;;  %v3790_v34 = vadd.f32 %v3650_v22, %v9301_v55  ;;  %v3654_v47 = vpop.f32.mrb[30].mxu0  ;;  %v3695_v52 = vpop.f32.mrb[62].mxu1 }
 0x958   :  { %v3762_v23 = vadd.f32 %v3702_v49, %v9295_v2  ;;  %v3766_v42 = vadd.f32 %v3706_v19, %v9296_v63  ;;  %v3770_v1 = vadd.f32 %v3710_v17, %v9297_v0  ;;  %v3774_v56 = vadd.f32 %v3714_v7, %v9298_v36  ;;  %v3655_v10 = vpop.f32.mrb[31].mxu0  ;;  %v3696_v38 = vpop.f32.mrb[63].mxu1 }
 0x959   :  { %v3778_v46 = vadd.f32 %v3718_v5, %v9299_v28  ;;  %v3782_v9 = vadd.f32 %v3722_v14, %v9300_v12  ;;  %v5109_v60 = vmul.f32 -1.442695, %v3790_v34  ;;  %v3786_v3 = vadd.f32 %v3726_v62, %v9277_v44 }
 0x95a   :  { %v5102_v55 = vmul.f32 -1.442695, %v3762_v23  ;;  %v5103_v20 = vmul.f32 -1.442695, %v3766_v42  ;;  %v5104_v31 = vmul.f32 -1.442695, %v3770_v1 }
 0x95b   :  { %v5105_v26 = vmul.f32 -1.442695, %v3774_v56  ;;  %6188 = vpow2.f32 %v5109_v60  ;;  %v5106_v2 = vmul.f32 -1.442695, %v3778_v46  ;;  %v3704_v63 = vrot.slane %v8599_v37, 1  ;;  %v9318_v46 = vld [vmem:[#allocation10_spill] sm:$0xff] }
 0x95c   :  { %6190 = vpow2.f32 %v5102_v55  ;;  %v3708_v0 = vrot.slane %v8599_v37, 2  ;;  %v5107_v36 = vmul.f32 -1.442695, %v3782_v9  ;;  %v3712_v28 = vrot.slane %v8599_v37, 3  ;;  %v9319_v55 = vld [vmem:[#allocation11_spill] sm:$0xff] }
 0x95d   :  { %6192 = vpow2.f32 %v5103_v20  ;;  %v5108_v12 = vmul.f32 -1.442695, %v3786_v3  ;;  %v3716_v18 = vrot.slane %v8599_v37, 4  ;;  %v3720_v44 = vrot.slane %v8599_v37, 5 }
 0x95e   :  { %6194 = vpow2.f32 %v5104_v31  ;;  %v3764_v4 = vadd.f32 %v3704_v63, %v9302_v32  ;;  %v3768_v27 = vadd.f32 %v3708_v0, %v9303_v61  ;;  %v3772_v41 = vadd.f32 %v3712_v28, %v9304_v16 }
 0x95f   :  { %6196 = vpow2.f32 %v5105_v26  ;;  %v3776_v13 = vadd.f32 %v3716_v18, %v9305_v8  ;;  %v3780_v35 = vadd.f32 %v3720_v44, %v9306_v53  ;;  %v3724_v49 = vrot.slane %v8599_v37, 6 }
 0x960   :  { %6198 = vpow2.f32 %v5106_v2  ;;  %v3728_v32 = vrot.slane %v8599_v37, 7  ;;  %v3703_v16 = vrot.slane %v8601_v21, 1  ;;  %v3707_v53 = vrot.slane %v8601_v21, 2  ;;  %v9320_v2 = vld [vmem:[#allocation13_spill] sm:$0xff] }
 0x961   :  { %6200 = vpow2.f32 %v5107_v36  ;;  %v3784_v34 = vadd.f32 %v3724_v49, %v9307_v50  ;;  %v3711_v47 = vrot.slane %v8601_v21, 3  ;;  %v3715_v1 = vrot.slane %v8601_v21, 4  ;;  %v9321_v36 = vld [vmem:[#allocation36_spill] sm:$0xff] }
 0x962   :  { %6202 = vpow2.f32 %v5108_v12  ;;  %v3788_v42 = vadd.f32 %v3728_v32, %v9310_v57  ;;  %v3719_v38 = vrot.slane %v8601_v21, 5  ;;  %v3763_v9 = vadd.f32 %v3703_v16, %v9318_v46  ;;  %v9322_v12 = vld [vmem:[#allocation15_spill] sm:$0xff]  ;;  %v9325_v32 = vld [vmem:[#allocation21_spill] sm:$0xff] }
 0x963   :  { %6204 = vtanh.f32 %v3764_v4  ;;  %v3723_v50 = vrot.slane %v8601_v21, 6  ;;  %v3767_v20 = vadd.f32 %v3707_v53, %v9319_v55  ;;  %v3727_v57 = vrot.slane %v8601_v21, 7  ;;  %v9323_v4 = vld [vmem:[#allocation17_spill] sm:$0xff] }
 0x964   :  { %6206 = vtanh.f32 %v3768_v27  ;;  %v3771_v63 = vadd.f32 %v3711_v47, %v9320_v2  ;;  %v3792_v28 = vadd.f32 %v8599_v37, %v9321_v36  ;;  %v3775_v18 = vadd.f32 %v3715_v1, %v9322_v12 }
 0x965   :  { %v6189_v22 = vpop.eup %6188  ;;  %6208 = vtanh.f32 %v3772_v41  ;;  %v3779_v27 = vadd.f32 %v3719_v38, %v9323_v4  ;;  %v5110_v41 = vmul.f32 -1.442695, %v3763_v9  ;;  %v5111_v49 = vmul.f32 -1.442695, %v3767_v20 }
 0x966   :  { %v6191_v19 = vpop.eup %6190  ;;  %v3825_v17 = vadd.f32 1.0, %v6189_v22  ;;  %6210 = vtanh.f32 %v3776_v13  ;;  %v3705_v37 = vrot.slane %v8603_v43, 1  ;;  %v5113_v53 = vmul.f32 -1.442695, %v3775_v18 }
 0x967   :  { %v6193_v61 = vpop.eup %6192  ;;  %v3818_v7 = vadd.f32 1.0, %v6191_v19  ;;  %6212 = vtanh.f32 %v3780_v35  ;;  %v9324_v35 = vld [vmem:[#allocation19_spill] sm:$0xff]  ;;  %v3709_v19 = vrot.slane %v8603_v43, 2  ;;  %v3717_v47 = vrot.slane %v8603_v43, 4 }
 0x968   :  { %v6195_v5 = vpop.eup %6194  ;;  %v3819_v8 = vadd.f32 1.0, %v6193_v61  ;;  %6214 = vrcp.f32 %v3825_v17  ;;  %v3783_v22 = vadd.f32 %v3723_v50, %v9324_v35  ;;  %v3787_v61 = vadd.f32 %v3727_v57, %v9325_v32 }
 0x969   :  { %v6197_v14 = vpop.eup %6196  ;;  %v3820_v62 = vadd.f32 1.0, %v6195_v5  ;;  %6216 = vrcp.f32 %v3818_v7  ;;  %v5112_v7 = vmul.f32 -1.442695, %v3771_v63  ;;  %v9326_v5 = vld [vmem:[#allocation23_spill] sm:$0xff]  ;;  %v3769_v1 = vadd.f32 %v3709_v19, %v9218_v54 }
 0x96a   :  { %v6199_v52 = vpop.eup %6198  ;;  %v3821_v23 = vadd.f32 1.0, %v6197_v14  ;;  %6218 = vrcp.f32 %v3819_v8  ;;  %v3791_v8 = vadd.f32 %v8601_v21, %v9326_v5  ;;  %v3713_v14 = vrot.slane %v8603_v43, 3 }
 0x96b   :  { %v6201_v56 = vpop.eup %6200  ;;  %v3822_v10 = vadd.f32 1.0, %v6199_v52  ;;  %6220 = vrcp.f32 %v3820_v62  ;;  %v3793_v52 = vadd.f32 %v8603_v43, %v7098_v24  ;;  %v5116_v21 = vmul.f32 -1.442695, %v3787_v61 }
 0x96c   :  { %v6203_v60 = vpop.eup %6202  ;;  %v3823_v3 = vadd.f32 1.0, %v6201_v56  ;;  %6222 = vrcp.f32 %v3821_v23  ;;  %v3765_v9 = vadd.f32 %v3705_v37, %v9193_v58  ;;  %v3773_v24 = vadd.f32 %v3713_v14, %v9243_v45 }
 0x96d   :  { %v6205_v31 = vpop.eup %6204  ;;  %v3824_v26 = vadd.f32 1.0, %v6203_v60  ;;  %6224 = vrcp.f32 %v3822_v10  ;;  %v3777_v20 = vadd.f32 %v3717_v47, %v7046_v48  ;;  %v5119_v63 = vmul.f32 -1.442695, %v3769_v1 }
 0x96e   :  { %v6207_v0 = vpop.eup %6206  ;;  %6226 = vrcp.f32 %v3823_v3  ;;  %v5117_v3 = vmul.f32 -1.442695, %v3791_v8  ;;  %v5118_v36 = vmul.f32 -1.442695, %v3765_v9  ;;  %v5120_v12 = vmul.f32 -1.442695, %v3773_v24 }
 0x96f   :  { %v6209_v44 = vpop.eup %6208  ;;  %6228 = vrcp.f32 %v3824_v26  ;;  %v5121_v48 = vmul.f32 -1.442695, %v3777_v20 }
 0x970   :  { %v6211_v13 = vpop.eup %6210  ;;  %6230 = vtanh.f32 %v3784_v34  ;;  %v5114_v34 = vmul.f32 -1.442695, %v3779_v27  ;;  %v3725_v27 = vrot.slane %v8603_v43, 6 }
 0x971   :  { %v6213_v17 = vpop.eup %6212  ;;  %6232 = vtanh.f32 %v3788_v42  ;;  %v5115_v42 = vmul.f32 -1.442695, %v3783_v22 }
 0x972   :  { %v6215_v16 = vpop.eup %6214  ;;  %6234 = vtanh.f32 %v3792_v28  ;;  %v3785_v8 = vadd.f32 %v3725_v27, %v7060_v39 }
 0x973   :  { %v6217_v62 = vpop.eup %6216  ;;  %6236 = vpow2.f32 %v5110_v41 }
 0x974   :  { %v6219_v23 = vpop.eup %6218  ;;  %6238 = vpow2.f32 %v5111_v49  ;;  %v8652_v56 = vmul.f32 %v6217_v62, %v6205_v31  ;;  %v5125_v31 = vmul.f32 -1.442695, %v3793_v52  ;;  %v3721_v62 = vrot.slane %v8603_v43, 5 }
 0x975   :  { %v6221_v10 = vpop.eup %6220  ;;  %6240 = vpow2.f32 %v5112_v7  ;;  %v8654_v38 = vpop.f32.mrb[32].mxu0  ;;  %v8656_v46 = vmul.f32 %v6219_v23, %v6207_v0  ;;  %v3729_v52 = vrot.slane %v8603_v43, 7 }
 0x976   :  { %v6223_v60 = vpop.eup %6222  ;;  %6242 = vpow2.f32 %v5113_v53  ;;  %v8660_v50 = vpop.f32.mrb[33].mxu0  ;;  %v8662_v55 = vmul.f32 %v6221_v10, %v6209_v44 }
 0x977   :  { %v6225_v54 = vpop.eup %6224  ;;  %6244 = vpow2.f32 %v5114_v34  ;;  %v8665_v26 = vpop.f32.mrb[34].mxu0  ;;  %v8667_v57 = vmul.f32 %v6223_v60, %v6211_v13  ;;  %v3781_v60 = vadd.f32 %v3721_v62, %v7053_v15  ;;  %v3954_v15 = vrot.slane %v8488_v51, 7 }
 0x978   :  { %v6227_v2 = vpop.eup %6226  ;;  %6246 = vpow2.f32 %v5115_v42  ;;  %v8669_v58 = vpop.f32.mrb[35].mxu0  ;;  %v8671_v0 = vmul.f32 %v6225_v54, %v6213_v17  ;;  %v3789_v54 = vadd.f32 %v3729_v52, %v7065_v33  ;;  %v3955_v33 = vrot.slane %v8492_v29, 7 }
 0x979   :  { %v6229_v45 = vpop.eup %6228  ;;  %6248 = vpow2.f32 %v5116_v21  ;;  %v5123_v21 = vmul.f32 -1.442695, %v3785_v8  ;;  %v3958_v29 = vrot.slane %v8504_v25, 7  ;;  %v8719_v25 = vld [vmem:[%s9055_s6] ss:$0 sm:$0xff] }
 0x97a   :  { %v6231_v28 = vpop.eup %6230  ;;  %6250 = vpow2.f32 %v5117_v3  ;;  %v5124_v27 = vmul.f32 -1.442695, %v3789_v54  ;;  %v3961_v54 = vrot.slane %v8516_v6, 7  ;;  %v4166_v6 = vadd.f32 %v8665_v26, %v8719_v25 }
 0x97b   :  { %v6233_v18 = vpop.eup %6232  ;;  %6252 = vpow2.f32 %v5125_v31  ;;  %v8673_v44 = vmul.f32 %v6231_v28, %v6227_v2 }
 0x97c   :  { %v6235_v4 = vpop.eup %6234  ;;  %6254 = vpow2.f32 %v5119_v63  ;;  %v8676_v41 = vmul.f32 %v6233_v18, %v6229_v45  ;;  %v5122_v18 = vmul.f32 -1.442695, %v3781_v60 }
 0x97d   :  { %v6237_v13 = vpop.eup %6236  ;;  %v8678_v35 = vpop.f32.mrb[36].mxu0  ;;  %6256 = vpow2.f32 %v5118_v36  ;;  %v8680_v22 = vmul.f32 %v6235_v4, %v6215_v16 }
 0x97e   :  { %v6239_v49 = vpop.eup %6238  ;;  %v3866_v19 = vadd.f32 1.0, %v6237_v13  ;;  %v8682_v17 = vpop.f32.mrb[37].mxu0  ;;  %6258 = vpow2.f32 %v5120_v12 }
 0x97f   :  { %v6241_v32 = vpop.eup %6240  ;;  %v3867_v61 = vadd.f32 1.0, %v6239_v49  ;;  %v8684_v7 = vpop.f32.mrb[38].mxu0  ;;  %6260 = vpow2.f32 %v5121_v48  ;;  %v4171_v26 = vadd.f32 %v8719_v25, %v8682_v17 }
 0x980   :  { %v6243_v37 = vpop.eup %6242  ;;  %v3868_v5 = vadd.f32 1.0, %v6241_v32  ;;  %6262 = vrcp.f32 %v3866_v19  ;;  %v8687_v53 = vpop.f32.mrb[39].mxu0  ;;  %v3956_v19 = vrot.slane %v8496_v30, 7 }
 0x981   :  { %v6245_v14 = vpop.eup %6244  ;;  %v3869_v16 = vadd.f32 1.0, %v6243_v37  ;;  %6264 = vrcp.f32 %v3867_v61  ;;  %v3957_v37 = vrot.slane %v8500_v11, 7 }
 0x982   :  { %v6247_v34 = vpop.eup %6246  ;;  %v3870_v47 = vadd.f32 1.0, %v6245_v14  ;;  %6266 = vrcp.f32 %v3868_v5 }
 0x983   :  { %v6249_v23 = vpop.eup %6248  ;;  %v3871_v42 = vadd.f32 1.0, %v6247_v34  ;;  %6268 = vrcp.f32 %v3869_v16 }
 0x984   :  { %v6251_v1 = vpop.eup %6250  ;;  %v3872_v10 = vadd.f32 1.0, %v6249_v23  ;;  %6270 = vrcp.f32 %v3870_v47  ;;  %v3959_v23 = vrot.slane %v8508_v59, 7 }
 0x985   :  { %v6253_v39 = vpop.eup %6252  ;;  %v3873_v9 = vadd.f32 1.0, %v6251_v1  ;;  %6272 = vrcp.f32 %v3871_v42  ;;  %v8692_v3 = vpop.f32.mrb[40].mxu0 }
 0x986   :  { %v6255_v24 = vpop.eup %6254  ;;  %6274 = vrcp.f32 %v3872_v10  ;;  %v8695_v20 = vpop.f32.mrb[41].mxu0  ;;  %v3960_v10 = vrot.slane %v8512_v40, 7  ;;  %v4195_v17 = vadd.f32 %v8692_v3, %v8719_v25 }
 0x987   :  { %v6257_v43 = vpop.eup %6256  ;;  %6276 = vrcp.f32 %v3873_v9  ;;  %v8697_v31 = vpop.f32.mrb[42].mxu0  ;;  %v3923_v2 = vadd.f32 1.0, %v6255_v24  ;;  %v4187_v3 = vadd.f32 %v8719_v25, %v8695_v20 }
 0x988   :  { %v6259_v63 = vpop.eup %6258  ;;  %v8699_v45 = vpop.f32.mrb[43].mxu0  ;;  %v3922_v36 = vadd.f32 1.0, %v6257_v43  ;;  %6278 = vpow2.f32 %v5123_v21  ;;  %v3929_v21 = vadd.f32 1.0, %v6253_v39 }
 0x989   :  { %v6261_v28 = vpop.eup %6260  ;;  %6280 = vrcp.f32 %v3923_v2  ;;  %v3924_v12 = vadd.f32 1.0, %v6259_v63  ;;  %v8729_v2 = vadd.f32 %v8654_v38, %v8719_v25 }
 0x98a   :  { %v6263_v48 = vpop.eup %6262  ;;  %6282 = vrcp.f32 %v3922_v36  ;;  %v3925_v4 = vadd.f32 1.0, %v6261_v28 }
 0x98b   :  { %v6265_v13 = vpop.eup %6264  ;;  %v3970_v49 = vmul.f32 %v6263_v48, %v3954_v15  ;;  %6284 = vrcp.f32 %v3924_v12 }
 0x98c   :  { %v6267_v32 = vpop.eup %6266  ;;  %v3971_v61 = vmul.f32 %v6265_v13, %v3955_v33  ;;  %6286 = vrcp.f32 %v3925_v4 }
 0x98d   :  { %v6269_v5 = vpop.eup %6268  ;;  %v8705_v51 = vpop.f32.mrb[44].mxu0  ;;  %v3986_v8 = vadd.f32 %v8652_v56, %v3970_v49  ;;  %v3972_v14 = vmul.f32 %v6267_v32, %v3956_v19  ;;  %6288 = vpow2.f32 %v5122_v18  ;;  %v9327_v18 = vld [vmem:[#allocation5_spill] sm:$0xff]  ;;  %v4220_v32 = vmax.f32 %v4166_v6, 0.0 }
 0x98e   :  { %v6271_v16 = vpop.eup %6270  ;;  %v3987_v62 = vadd.f32 %v8656_v46, %v3971_v61  ;;  %v8710_v34 = vpop.f32.mrb[45].mxu0  ;;  %v3973_v30 = vmul.f32 %v6269_v5, %v3957_v37  ;;  %6290 = vpow2.f32 %v5124_v27  ;;  %v8742_v48 = vsub.s32 7, %v9327_v18 }
 0x98f   :  { %v6273_v47 = vpop.eup %6272  ;;  %6292 = vtanh.f32 %v3986_v8  ;;  %v8712_v52 = vpop.f32.mrb[46].mxu0  ;;  %v3988_v11 = vadd.f32 %v8662_v55, %v3972_v14  ;;  %v3974_v56 = vmul.f32 %v6271_v16, %v3958_v29  ;;  %v4182_v27 = vadd.f32 %v8684_v7, %v8719_v25  ;;  %v8757_v7 = vld [vmem:[%s9056_s7] ss:$0 sm:$0xff]  ;;  %s6470_s7 = smov [#allocation2]  }
 0x990   :  { %v6275_v42 = vpop.eup %6274  ;;  %6294 = vtanh.f32 %v3987_v62  ;;  %v8721_v46 = vpop.f32.mrb[47].mxu0  ;;  %v3989_v1 = vadd.f32 %v8667_v57, %v3973_v30  ;;  %v3975_v55 = vmul.f32 %v6273_v47, %v3959_v23  ;;  %v4221_v14 = vmax.f32 %v4171_v26, 0.0  ;;  %s4862_s26 = sshll.u32 %s6470_s7, 4  ;;  %s4863_s26 = int_to_ptr.vmem [resolvable:$true] %s4862_s26 }
 0x991   :  { %v6277_v9 = vpop.eup %6276  ;;  %6296 = vtanh.f32 %v3988_v11  ;;  %v3990_v59 = vadd.f32 %v8671_v0, %v3974_v56  ;;  %v3976_v24 = vmul.f32 %v6275_v42, %v3960_v10  ;;  %v4155_v0 = vadd.f32 %v8719_v25, %v8660_v50  ;;  %s6445_s1 = scalar_lea.vmem %s4863_s26, 128  ;;  %p6450_p1 = scmp.lt.s32.totalorder %s4863_s26, %s4863_s26 }
 0x992   :  { %v6279_v60 = vpop.eup %6278  ;;  %6298 = vtanh.f32 %v3989_v1  ;;  %v3991_v57 = vadd.f32 %v8673_v44, %v3975_v55  ;;  %v3977_v36 = vmul.f32 %v6277_v9, %v3961_v54  ;;  %v4219_v44 = vmax.f32 %v8729_v2, 0.0  ;;  %p6446_p0 = scmp.ne.s32.totalorder %s4863_s26, %s6445_s1  ;;  %p6451_p2 = scmp.lt.s32.totalorder %s6445_s1, %s6445_s1 }
 0x993   :  { %v6281_v43 = vpop.eup %6280  ;;  %v3927_v63 = vadd.f32 1.0, %v6279_v60  ;;  %v3992_v39 = vadd.f32 %v8676_v41, %v3976_v24  ;;  %6300 = vrcp.f32 %v3929_v21  ;;  %v4158_v41 = vadd.f32 %v8719_v25, %v8669_v58 }
 0x994   :  { %v6283_v40 = vpop.eup %6282  ;;  %v3993_v38 = vadd.f32 %v8680_v22, %v3977_v36  ;;  %v4179_v50 = vadd.f32 %v8678_v35, %v8719_v25  ;;  %v4174_v58 = vadd.f32 %v8719_v25, %v8687_v53  ;;  %v4217_v19 = vmax.f32 %v4155_v0, 0.0  ;;  %p6452_p3 = por %p6451_p2, %p6450_p1 }
 0x995   :  { %v6285_v28 = vpop.eup %6284  ;;  %6302 = vrcp.f32 %v3927_v63  ;;  %v4218_v37 = vmax.f32 %v4158_v41, 0.0  ;;  %v4224_v62 = vmax.f32 %v4182_v27, 0.0  ;;  %v4198_v56 = vadd.f32 %v8697_v31, %v8719_v25 }
 0x996   :  { %v6287_v15 = vpop.eup %6286  ;;  %6304 = vtanh.f32 %v3991_v57  ;;  %v4223_v8 = vmax.f32 %v4179_v50, 0.0  ;;  %v4222_v30 = vmax.f32 %v4174_v58, 0.0  ;;  %v4227_v21 = vmax.f32 %v4195_v17, 0.0  ;;  %p6453_p4 = pnand %p6452_p3, %p6446_p0 }
 0x997   :  { %v6289_v12 = vpop.eup %6288  ;;  %6306 = vtanh.f32 %v3990_v59  ;;  %v4211_v55 = vadd.f32 %v8705_v51, %v8719_v25  ;;  %v4214_v20 = vadd.f32 %v8712_v52, %v8719_v25  ;;  %v4228_v36 = vmax.f32 %v4198_v56, 0.0 }
 0x998   :  { %v6291_v33 = vpop.eup %6290  ;;  %v3926_v4 = vadd.f32 1.0, %v6289_v12  ;;  %6308 = vtanh.f32 %v3993_v38  ;;  %v4190_v51 = vadd.f32 %v8719_v25, %v8699_v45  ;;  %v4206_v50 = vadd.f32 %v8719_v25, %v8721_v46 }
 0x999   :  { %v6293_v22 = vpop.eup %6292  ;;  %v3928_v13 = vadd.f32 1.0, %v6291_v33  ;;  %6310 = vtanh.f32 %v3992_v39  ;;  %v4231_v41 = vmax.f32 %v4211_v55, 0.0  ;;  %v4203_v33 = vadd.f32 %v8719_v25, %v8710_v34 }
 0x99a   :  { %v6295_v49 = vpop.eup %6294  ;;  %v4002_v61 = vmul.f32 %v6293_v22, %v6283_v40  ;;  %6312 = vrcp.f32 %v3926_v4  ;;  %v4232_v45 = vmax.f32 %v4214_v20, 0.0  ;;  %v4225_v58 = vmax.f32 %v4187_v3, 0.0 }
 0x99b   :  { %v6297_v35 = vpop.eup %6296  ;;  %v4003_v5 = vmul.f32 %v6295_v49, %v6281_v43  ;;  %6314 = vrcp.f32 %v3928_v13  ;;  %v4226_v13 = vmax.f32 %v4190_v51, 0.0  ;;  %v4230_v25 = vmax.f32 %v4206_v50, 0.0 }
 0x99c   :  { %v6299_v53 = vpop.eup %6298  ;;  %v4017_v29 = vmul.f32 %v8757_v7, %v4002_v61  ;;  %v4004_v16 = vmul.f32 %v6297_v35, %v6285_v28  ;;  %v4229_v35 = vmax.f32 %v4203_v33, 0.0 }
 0x99d   :  { %v4018_v47 = vmul.f32 %v8757_v7, %v4003_v5  ;;  %v4005_v11 = vmul.f32 %v6299_v53, %v6287_v15  ;;  %v6301_v23 = vpop.eup %6300 }
 0x99e   :  { %v4236_v42 = vrot.slane %v4017_v29, %v8742_v48  ;;  %v4019_v1 = vmul.f32 %v8757_v7, %v4004_v16 }
 0x99f   :  { %v6303_v10 = vpop.eup %6302  ;;  %v4240_v9 = vrot.slane %v4018_v47, %v8742_v48  ;;  %v4020_v60 = vmul.f32 %v8757_v7, %v4005_v11  ;;  %v9328_v11 = vlaneseq }
 0x9a0   :  { %v6305_v59 = vpop.eup %6304  ;;  %v4265_v24 = vmul.f32 %v4236_v42, %v4217_v19  ;;  %v4266_v54 = vmul.f32 %v4236_v42, %v4218_v37  ;;  %v4244_v31 = vrot.slane %v4019_v1, %v8742_v48 }
 0x9a1   :  { %v6307_v43 = vpop.eup %6306  ;;  %v4267_v2 = vmul.f32 %v4240_v9, %v4219_v44  ;;  %v4268_v63 = vmul.f32 %v4240_v9, %v4220_v32  ;;  %v4248_v57 = vrot.slane %v4020_v60, %v8742_v48  ;;  %v4007_v40 = vmul.f32 %v6305_v59, %v6303_v10 }
 0x9a2   :  { %v6309_v39 = vpop.eup %6308  ;;  %4281 = vadd.xlane.f32.xlu0 %v4265_v24  ;;  %v4270_v28 = vmul.f32 %v4244_v31, %v4222_v30  ;;  %v4269_v15 = vmul.f32 %v4244_v31, %v4221_v14 }
 0x9a3   :  { %v6311_v0 = vpop.eup %6310  ;;  %4285 = vadd.xlane.f32.xlu1 %v4267_v2  ;;  %v4272_v52 = vmul.f32 %v4248_v57, %v4224_v62  ;;  %v4271_v6 = vmul.f32 %v4248_v57, %v4223_v8  ;;  %v4022_v38 = vmul.f32 %v8757_v7, %v4007_v40  ;;  %v4009_v12 = vmul.f32 %v6309_v39, %v6301_v23 }
 0x9a4   :  { %v6313_v44 = vpop.eup %6312  ;;  %v4330_v23 = vand.u32 127, %v9328_v11  ;;  %v4444_v11 = vsub.s32 6, %v9327_v18 }
 0x9a5   :  { %v6315_v26 = vpop.eup %6314  ;;  %v4256_v4 = vrot.slane %v4022_v38, %v8742_v48  ;;  %v4006_v22 = vmul.f32 %v6313_v44, %v6307_v43  ;;  %v4024_v27 = vmul.f32 %v8757_v7, %v4009_v12 }
 0x9a6   :  { %4283 = vadd.xlane.f32.xlu0 %v4266_v54  ;;  %v4008_v49 = vmul.f32 %v6315_v26, %v6311_v0  ;;  %v4335_v42 = vadd.s32 4294967288, %v4330_v23  ;;  %v8810_v9 = vsub.s32 %v4330_v23, %v9327_v18 }
 0x9a7   :  { %4287 = vadd.xlane.f32.xlu1 %v4268_v63  ;;  %v4276_v19 = vmul.f32 %v4256_v4, %v4228_v36  ;;  %v4021_v32 = vmul.f32 %v8757_v7, %v4006_v22  ;;  %v4275_v61 = vmul.f32 %v4256_v4, %v4227_v21  ;;  %v4264_v34 = vrot.slane %v4024_v27, %v8742_v48 }
 0x9a8   :  { %v4023_v46 = vmul.f32 %v8757_v7, %v4008_v49  ;;  %v8807_v21 = vsub.s32 %v4335_v42, %v9327_v18 }
 0x9a9   :  { %v4252_v37 = vrot.slane %v4021_v32, %v8742_v48  ;;  %v4280_v17 = vmul.f32 %v4264_v34, %v4232_v45  ;;  %v4279_v5 = vmul.f32 %v4264_v34, %v4231_v41 }
 0x9aa   :  { %4289 = vadd.xlane.f32.xlu0 %v4269_v15  ;;  %v4260_v53 = vrot.slane %v4023_v46, %v8742_v48 }
 0x9ab   :  { %4291 = vadd.xlane.f32.xlu1 %v4270_v28  ;;  %v4273_v8 = vmul.f32 %v4252_v37, %v4225_v58  ;;  %v4274_v14 = vmul.f32 %v4252_v37, %v4226_v13  ;;  %v9329_v37 = vld [vmem:[#allocation6_spill] sm:$0xff] }
 0x9ac   :  { %v4278_v29 = vmul.f32 %v4260_v53, %v4230_v25  ;;  %v4277_v16 = vmul.f32 %v4260_v53, %v4229_v35 }
 0x9ae   :  { %4293 = vadd.xlane.f32.xlu0 %v4271_v6 }
 0x9af   :  { %4295 = vadd.xlane.f32.xlu1 %v4272_v52 }
 0x9b2   :  { %4297 = vadd.xlane.f32.xlu0 %v4273_v8  ;;  %v4440_v8 = vsub.s32 5, %v9327_v18 }
 0x9b3   :  { %4303 = vadd.xlane.f32.xlu1 %v4276_v19 }
 0x9b6   :  { %4301 = vadd.xlane.f32.xlu0 %v4275_v61 }
 0x9b7   :  { %4299 = vadd.xlane.f32.xlu1 %v4274_v14 }
 0x9ba   :  { %4305 = vadd.xlane.f32.xlu0 %v4277_v16 }
 0x9bb   :  { %4307 = vadd.xlane.f32.xlu1 %v4278_v29 }
 0x9be   :  { %4309 = vadd.xlane.f32.xlu0 %v4279_v5  ;;  %v9330_v5 = vld [vmem:[#allocation7_spill] sm:$0xff] }
 0x9bf   :  { %4311 = vadd.xlane.f32.xlu1 %v4280_v17 }
 0xa2f   :  { %v8789_v7 = vpop.xlane.xlu0 %4281 }
 0xa30   :  { %v8791_v62 = vpop.xlane.xlu1 %4285  ;;  %v4334_v43 = vrot.slane %v8789_v7, %v8810_v9 }
 0xa31   :  { %v4345_v31 = vrot.slane %v8791_v62, %v8810_v9 }
 0xa33   :  { %v8793_v30 = vpop.xlane.xlu0 %4283 }
 0xa34   :  { %v8795_v47 = vpop.xlane.xlu1 %4287  ;;  %v4339_v24 = vrot.slane %v8793_v30, %v8807_v21 }
 0xa35   :  { %v4349_v59 = vrot.slane %v8795_v47, %v8807_v21 }
 0xa36   :  { %v4341_v36 = vsel %vm4340_vm7, %v4339_v24, %v4334_v43  ;;  %v9331_v24 = vld [vmem:[#allocation24_spill] sm:$0xff] }
 0xa37   :  { %v8798_v3 = vpop.xlane.xlu0 %4289  ;;  %v4350_v39 = vsel %vm4340_vm7, %v4349_v59, %v4345_v31 }
 0xa38   :  { %v8800_v56 = vpop.xlane.xlu1 %4291  ;;  %v4354_v54 = vrot.slane %v8798_v3, %v8810_v9  ;;  %v4405_v38 = vsel %vm990_vm0, %v4350_v39, %v4341_v36  ;;  %v9332_v36 = vld [vmem:[#allocation25_spill] sm:$0xff] }
 0xa39   :  { %v4358_v20 = vrot.slane %v8800_v56, %v8807_v21 }
 0xa3b   :  { %v8802_v1 = vpop.xlane.xlu0 %4293  ;;  %v4359_v28 = vsel %vm4340_vm7, %v4358_v20, %v4354_v54 }
 0xa3c   :  { %v8804_v10 = vpop.xlane.xlu1 %4295  ;;  %v4363_v63 = vrot.slane %v8802_v1, %v8810_v9  ;;  %v4406_v33 = vsel %vm993_vm1, %v4359_v28, %v4405_v38 }
 0xa3d   :  { %v4367_v2 = vrot.slane %v8804_v10, %v8807_v21 }
 0xa3f   :  { %v8812_v55 = vpop.xlane.xlu0 %4297  ;;  %v4368_v0 = vsel %vm4340_vm7, %v4367_v2, %v4363_v63 }
 0xa40   :  { %v8814_v60 = vpop.xlane.xlu1 %4303  ;;  %v4372_v15 = vrot.slane %v8812_v55, %v8810_v9  ;;  %v4407_v45 = vsel %vm996_vm2, %v4368_v0, %v4406_v33 }
 0xa41   :  { %v4385_v50 = vrot.slane %v8814_v60, %v8807_v21 }
 0xa43   :  { %v4302_v57 = vpop.xlane.xlu0 %4301 }
 0xa44   :  { %v8832_v40 = vpop.xlane.xlu1 %4299  ;;  %v4381_v52 = vrot.slane %v4302_v57, %v8810_v9 }
 0xa45   :  { %v4376_v51 = vrot.slane %v8832_v40, %v8807_v21 }
 0xa46   :  { %v4386_v4 = vsel %vm4340_vm7, %v4385_v50, %v4381_v52 }
 0xa47   :  { %v4306_v6 = vpop.xlane.xlu0 %4305  ;;  %v4377_v12 = vsel %vm4340_vm7, %v4376_v51, %v4372_v15 }
 0xa48   :  { %v8845_v44 = vpop.xlane.xlu1 %4307  ;;  %v4390_v41 = vrot.slane %v4306_v6, %v8810_v9  ;;  %v4408_v27 = vsel %vm999_vm3, %v4377_v12, %v4407_v45 }
 0xa49   :  { %v4394_v26 = vrot.slane %v8845_v44, %v8807_v21  ;;  %v4409_v32 = vsel %vm1002_vm4, %v4386_v4, %v4408_v27 }
 0xa4b   :  { %v4310_v22 = vpop.xlane.xlu0 %4309  ;;  %v4395_v49 = vsel %vm4340_vm7, %v4394_v26, %v4390_v41 }
 0xa4c   :  { %v8856_v58 = vpop.xlane.xlu1 %4311  ;;  %v4399_v13 = vrot.slane %v4310_v22, %v8810_v9  ;;  %v4410_v34 = vsel %vm1005_vm5, %v4395_v49, %v4409_v32 }
 0xa4d   :  { %v4403_v19 = vrot.slane %v8856_v58, %v8807_v21 }
 0xa4f   :  { %v4404_v61 = vsel %vm4340_vm7, %v4403_v19, %v4399_v13 }
 0xa50   :  { %v4411_v35 = vsel %vm1008_vm6, %v4404_v61, %v4410_v34 }
 0xa51   :  { %v4414_v25 = vsel %vm4413_vm8, %v4411_v35, -inf }
 0xa52   :  { %4415 = vmax.xlane.f32.xlu0 %v4414_v25 }
 0xadf   :  { %v4416_v46 = vpop.xlane.xlu0 %4415 }
 0xae0   :  { %v4421_v17 = vrot.slane %v4416_v46, %v9329_v37  ;;  %v4425_v53 = vrot.slane %v4416_v46, %v9330_v5  ;;  %v8876_v23 = vrot.slane %v4416_v46, %v4440_v8  ;;  %v4429_v20 = vrot.slane %v4416_v46, %v9331_v24 }
 0xae1   :  { %v4449_v2 = vrot.slane %v4416_v46, %v8742_v48  ;;  %v4433_v51 = vrot.slane %v4416_v46, %v9332_v36 }
 0xae2   :  { %v4458_v14 = vsub.f32 %v8789_v7, %v4421_v17  ;;  %v4459_v29 = vsub.f32 %v8793_v30, %v4421_v17  ;;  %v4460_v16 = vsub.f32 %v8791_v62, %v4425_v53  ;;  %v4461_v54 = vsub.f32 %v8795_v47, %v4425_v53 }
 0xae3   :  { %v4445_v7 = vrot.slane %v4416_v46, %v4444_v11  ;;  %v4468_v62 = vsub.f32 %v4302_v57, %v8876_v23  ;;  %v4462_v30 = vsub.f32 %v8798_v3, %v4429_v20  ;;  %v4463_v47 = vsub.f32 %v8800_v56, %v4429_v20 }
 0xae4   :  { %v4474_v42 = vmul.f32 1.442695, %v4458_v14  ;;  %v4476_v59 = vmul.f32 1.442695, %v4459_v29  ;;  %v4478_v31 = vmul.f32 1.442695, %v4460_v16  ;;  %v4472_v0 = vsub.f32 %v4310_v22, %v4449_v2 }
 0xae5   :  { %v4480_v43 = vmul.f32 1.442695, %v4461_v54  ;;  %v4470_v63 = vsub.f32 %v4306_v6, %v4445_v7  ;;  %v4494_v39 = vmul.f32 1.442695, %v4468_v62  ;;  %v4482_v28 = vmul.f32 1.442695, %v4462_v30 }
 0xae6   :  { %6316 = vpow2.f32 %v4474_v42  ;;  %v4436_v3 = vsub.s32 4, %v9327_v18  ;;  %v4464_v6 = vsub.f32 %v8802_v1, %v4433_v51  ;;  %v4484_v38 = vmul.f32 1.442695, %v4463_v47 }
 0xae7   :  { %6318 = vpow2.f32 %v4476_v59  ;;  %v4498_v52 = vmul.f32 1.442695, %v4470_v63  ;;  %v4502_v12 = vmul.f32 1.442695, %v4472_v0  ;;  %v4465_v33 = vsub.f32 %v8804_v10, %v4433_v51 }
 0xae8   :  { %6320 = vpow2.f32 %v4478_v31  ;;  %v4437_v41 = vrot.slane %v4416_v46, %v4436_v3  ;;  %v4486_v50 = vmul.f32 1.442695, %v4464_v6  ;;  %v4469_v19 = vsub.f32 %v8814_v60, %v8876_v23 }
 0xae9   :  { %6322 = vpow2.f32 %v4480_v43  ;;  %v4488_v4 = vmul.f32 1.442695, %v4465_v33  ;;  %v4473_v25 = vsub.f32 %v8856_v58, %v4449_v2 }
 0xaea   :  { %6324 = vpow2.f32 %v4494_v39  ;;  %v4466_v45 = vsub.f32 %v8812_v55, %v4437_v41  ;;  %v4467_v27 = vsub.f32 %v8832_v40, %v4437_v41  ;;  %v4471_v40 = vsub.f32 %v8845_v44, %v4445_v7 }
 0xaeb   :  { %6326 = vpow2.f32 %v4482_v28  ;;  %v4496_v34 = vmul.f32 1.442695, %v4469_v19  ;;  %v4504_v17 = vmul.f32 1.442695, %v4473_v25 }
 0xaec   :  { %6328 = vpow2.f32 %v4498_v52  ;;  %v4490_v13 = vmul.f32 1.442695, %v4466_v45  ;;  %v4492_v32 = vmul.f32 1.442695, %v4467_v27  ;;  %v4500_v60 = vmul.f32 1.442695, %v4471_v40 }
 0xaed   :  { %6330 = vpow2.f32 %v4484_v38 }
 0xaee   :  { %6332 = vpow2.f32 %v4502_v12 }
 0xaef   :  { %6334 = vpow2.f32 %v4486_v50 }
 0xaf0   :  { %v8887_v15 = vpop.eup %6316  ;;  %6336 = vpow2.f32 %v4488_v4 }
 0xaf1   :  { %v8889_v57 = vpop.eup %6318  ;;  %4523 = vperm.xlu1 %5186, %v8887_v15   ;;  %6338 = vpow2.f32 %v4490_v13 }
 0xaf2   :  { %4526 = vperm.xlu0 %5187, %v8889_v57   ;;  %v8895_v56 = vpop.eup %6320  ;;  %6340 = vpow2.f32 %v4492_v32 }
 0xaf3   :  { %v8901_v26 = vpop.eup %6322  ;;  %6342 = vpow2.f32 %v4496_v34 }
 0xaf4   :  { %v8904_v1 = vpop.eup %6324  ;;  %6344 = vpow2.f32 %v4500_v60 }
 0xaf5   :  { %4529 = vperm.xlu1 %5186, %v8895_v56   ;;  %v8908_v22 = vpop.eup %6326  ;;  %6346 = vpow2.f32 %v4504_v17 }
 0xaf6   :  { %4553 = vperm.xlu0 %5187, %v8904_v1   ;;  %v8911_v10 = vpop.eup %6328 }
 0xaf7   :  { %v8915_v49 = vpop.eup %6330 }
 0xaf8   :  { %v8918_v55 = vpop.eup %6332 }
 0xaf9   :  { %4532 = vperm.xlu1 %5186, %v8901_v26   ;;  %v8923_v61 = vpop.eup %6334 }
 0xafa   :  { %4559 = vperm.xlu0 %5187, %v8911_v10   ;;  %v8927_v35 = vpop.eup %6336 }
 0xafb   :  { %v8931_v46 = vpop.eup %6338 }
 0xafc   :  { %v8934_v53 = vpop.eup %6340 }
 0xafd   :  { %4535 = vperm.xlu1 %5186, %v8908_v22   ;;  %v8937_v44 = vpop.eup %6342 }
 0xafe   :  { %4565 = vperm.xlu0 %5187, %v8918_v55   ;;  %v8940_v14 = vpop.eup %6344 }
 0xaff   :  { %v8943_v58 = vpop.eup %6346 }
 0xb01   :  { %4538 = vperm.xlu1 %5186, %v8915_v49  }
 0xb05   :  { %4541 = vperm.xlu1 %5186, %v8923_v61  }
 0xb09   :  { %4544 = vperm.xlu1 %5186, %v8927_v35  }
 0xb0d   :  { %4547 = vperm.xlu1 %5186, %v8931_v46  }
 0xb11   :  { %4550 = vperm.xlu1 %5186, %v8934_v53  }
 0xb15   :  { %4556 = vperm.xlu1 %5186, %v8937_v44  }
 0xb19   :  { %4562 = vperm.xlu1 %5186, %v8940_v14  }
 0xb1d   :  { %4568 = vperm.xlu1 %5186, %v8943_v58  }
 0xb70   :  { %v4524_v29 = vpop.permute.xlu1 %4523 }
 0xb71   :  { %v4527_v54 = vpop.permute.xlu0 %4526  ;;  %v4573_v47 = vrot.slane %v4524_v29, %v8810_v9 }
 0xb72   :  { %v4577_v51 = vrot.slane %v4527_v54, %v8807_v21 }
 0xb74   :  { %v4530_v16 = vpop.permute.xlu1 %4529  ;;  %v4578_v4 = vsel %vm4340_vm7, %v4577_v51, %v4573_v47 }
 0xb75   :  { %v4554_v62 = vpop.permute.xlu0 %4553  ;;  %v4582_v28 = vrot.slane %v4530_v16, %v8810_v9 }
 0xb76   :  { %v4618_v27 = vrot.slane %v4554_v62, %v8810_v9 }
 0xb78   :  { %v4533_v23 = vpop.permute.xlu1 %4532 }
 0xb79   :  { %v4586_v43 = vrot.slane %v4533_v23, %v8807_v21  ;;  %v4560_v2 = vpop.permute.xlu0 %4559 }
 0xb7a   :  { %v4627_v32 = vrot.slane %v4560_v2, %v8810_v9 }
 0xb7b   :  { %v4587_v38 = vsel %vm4340_vm7, %v4586_v43, %v4582_v28 }
 0xb7c   :  { %v4536_v42 = vpop.permute.xlu1 %4535  ;;  %v4642_v40 = vsel %vm990_vm0, %v4587_v38, %v4578_v4 }
 0xb7d   :  { %v4591_v52 = vrot.slane %v4536_v42, %v8810_v9  ;;  %v4566_v34 = vpop.permute.xlu0 %4565 }
 0xb7e   :  { %v4636_v42 = vrot.slane %v4566_v34, %v8810_v9 }
 0xb80   :  { %v4539_v59 = vpop.permute.xlu1 %4538 }
 0xb81   :  { %v4595_v63 = vrot.slane %v4539_v59, %v8807_v21 }
 0xb83   :  { %v4596_v33 = vsel %vm4340_vm7, %v4595_v63, %v4591_v52 }
 0xb84   :  { %v4542_v20 = vpop.permute.xlu1 %4541  ;;  %v4643_v60 = vsel %vm993_vm1, %v4596_v33, %v4642_v40 }
 0xb85   :  { %v4600_v12 = vrot.slane %v4542_v20, %v8810_v9 }
 0xb88   :  { %v4545_v31 = vpop.permute.xlu1 %4544 }
 0xb89   :  { %v4604_v0 = vrot.slane %v4545_v31, %v8807_v21 }
 0xb8b   :  { %v4605_v13 = vsel %vm4340_vm7, %v4604_v0, %v4600_v12 }
 0xb8c   :  { %v4548_v7 = vpop.permute.xlu1 %4547  ;;  %v4644_v29 = vsel %vm996_vm2, %v4605_v13, %v4643_v60 }
 0xb8d   :  { %v4609_v50 = vrot.slane %v4548_v7, %v8810_v9 }
 0xb90   :  { %v4551_v30 = vpop.permute.xlu1 %4550 }
 0xb91   :  { %v4613_v6 = vrot.slane %v4551_v30, %v8807_v21 }
 0xb93   :  { %v4614_v25 = vsel %vm4340_vm7, %v4613_v6, %v4609_v50 }
 0xb94   :  { %v4557_v39 = vpop.permute.xlu1 %4556  ;;  %v4645_v59 = vsel %vm999_vm3, %v4614_v25, %v4644_v29 }
 0xb95   :  { %v4622_v41 = vrot.slane %v4557_v39, %v8807_v21 }
 0xb97   :  { %v4623_v17 = vsel %vm4340_vm7, %v4622_v41, %v4618_v27 }
 0xb98   :  { %v4563_v45 = vpop.permute.xlu1 %4562  ;;  %v4646_v54 = vsel %vm1002_vm4, %v4623_v17, %v4645_v59 }
 0xb99   :  { %v4631_v19 = vrot.slane %v4563_v45, %v8807_v21 }
 0xb9b   :  { %v4632_v16 = vsel %vm4340_vm7, %v4631_v19, %v4627_v32 }
 0xb9c   :  { %v4569_v23 = vpop.permute.xlu1 %4568  ;;  %v4647_v7 = vsel %vm1005_vm5, %v4632_v16, %v4646_v54 }
 0xb9d   :  { %v4640_v20 = vrot.slane %v4569_v23, %v8807_v21 }
 0xb9f   :  { %v4641_v31 = vsel %vm4340_vm7, %v4640_v20, %v4636_v42 }
 0xba0   :  { %v4648_v62 = vsel %vm1008_vm6, %v4641_v31, %v4647_v7 }
 0xba1   :  { %v4650_v30 = vsel %vm4413_vm8, %v4648_v62, 0.0 }
 0xba2   :  { %4651 = vadd.xlane.f32.xlu0 %v4650_v30 }
 0xc2f   :  { %v4652_v43 = vpop.xlane.xlu0 %4651 }
 0xc30   :  { %6348 = vrcp.f32 %v4652_v43 }
 0xc3a   :  { %v6349_v2 = vpop.eup %6348 }
 0xc3b   :  { %v4674_v63 = vrot.slane %v6349_v2, %v4436_v3  ;;  %v4658_v39 = vrot.slane %v6349_v2, %v9329_v37  ;;  %v4686_v28 = vrot.slane %v6349_v2, %v8742_v48  ;;  %v4662_v6 = vrot.slane %v6349_v2, %v9330_v5 }
 0xc3d   :  { %v4703_v51 = vmul.f32 %v8931_v46, %v4674_v63  ;;  %v4695_v47 = vmul.f32 %v8887_v15, %v4658_v39  ;;  %v4709_v0 = vmul.f32 %v8918_v55, %v4686_v28  ;;  %v4696_v52 = vmul.f32 %v8889_v57, %v4658_v39 }
 0xc3e   :  { %v4697_v3 = vmul.f32 %v8895_v56, %v4662_v6  ;;  %v4698_v37 = vmul.f32 %v8901_v26, %v4662_v6  ;;  %v4666_v46 = vrot.slane %v6349_v2, %v9331_v24  ;;  %v4670_v55 = vrot.slane %v6349_v2, %v9332_v36 }
 0xc3f   :  { %4752 = vperm.xlu0 %5187, %v4703_v51   ;;  %4728 = vperm.xlu1 %5186, %v4695_v47   ;;  %v4704_v56 = vmul.f32 %v8934_v53, %v4674_v63  ;;  %v4678_v24 = vrot.slane %v6349_v2, %v4440_v8  ;;  %v4682_v36 = vrot.slane %v6349_v2, %v4444_v11 }
 0xc40   :  { %v4699_v48 = vmul.f32 %v8908_v22, %v4666_v46  ;;  %v4700_v15 = vmul.f32 %v8915_v49, %v4666_v46  ;;  %v4701_v5 = vmul.f32 %v8923_v61, %v4670_v55  ;;  %v4702_v57 = vmul.f32 %v8927_v35, %v4670_v55 }
 0xc41   :  { %v4705_v26 = vmul.f32 %v8904_v1, %v4678_v24  ;;  %v4706_v22 = vmul.f32 %v8937_v44, %v4678_v24  ;;  %v4707_v49 = vmul.f32 %v8911_v10, %v4682_v36  ;;  %v4708_v61 = vmul.f32 %v8940_v14, %v4682_v36 }
 0xc42   :  { %v4710_v35 = vmul.f32 %v8943_v58, %v4686_v28 }
 0xc43   :  { %4770 = vperm.xlu0 %5187, %v4709_v0   ;;  %4731 = vperm.xlu1 %5186, %v4696_v52  }
 0xc47   :  { %4734 = vperm.xlu1 %5186, %v4697_v3  }
 0xc4b   :  { %4737 = vperm.xlu1 %5186, %v4698_v37  }
 0xc4f   :  { %4740 = vperm.xlu1 %5186, %v4699_v48  }
 0xc53   :  { %4743 = vperm.xlu1 %5186, %v4700_v15  }
 0xc57   :  { %4746 = vperm.xlu1 %5186, %v4701_v5  }
 0xc5b   :  { %4749 = vperm.xlu1 %5186, %v4702_v57  }
 0xc5f   :  { %4755 = vperm.xlu1 %5186, %v4704_v56  }
 0xc63   :  { %4758 = vperm.xlu1 %5186, %v4705_v26  }
 0xc67   :  { %4761 = vperm.xlu1 %5186, %v4706_v22  }
 0xc6b   :  { %4764 = vperm.xlu1 %5186, %v4707_v49  }
 0xc6f   :  { %4767 = vperm.xlu1 %5186, %v4708_v61  }
 0xc73   :  { %4773 = vperm.xlu1 %5186, %v4710_v35  }
 0xcbe   :  { %v4729_v8 = vpop.permute.xlu1 %4728  ;;  %v4753_v45 = vpop.permute.xlu0 %4752 }
 0xcbf   :  { %v4778_v40 = vrot.slane %v4729_v8, %v8810_v9  ;;  %v4814_v17 = vrot.slane %v4753_v45, %v8810_v9 }
 0xcc2   :  { %v4732_v53 = vpop.permute.xlu1 %4731  ;;  %v4771_v54 = vpop.permute.xlu0 %4770 }
 0xcc3   :  { %v4782_v58 = vrot.slane %v4732_v53, %v8807_v21  ;;  %v4841_v51 = vrot.slane %v4771_v54, %v8810_v9 }
 0xcc5   :  { %v4783_v23 = vsel %vm4340_vm7, %v4782_v58, %v4778_v40 }
 0xcc6   :  { %v4735_v38 = vpop.permute.xlu1 %4734 }
 0xcc7   :  { %v4787_v27 = vrot.slane %v4735_v38, %v8810_v9 }
 0xcca   :  { %v4738_v1 = vpop.permute.xlu1 %4737 }
 0xccb   :  { %v4791_v10 = vrot.slane %v4738_v1, %v8807_v21 }
 0xccd   :  { %v4792_v34 = vsel %vm4340_vm7, %v4791_v10, %v4787_v27 }
 0xcce   :  { %v4741_v12 = vpop.permute.xlu1 %4740  ;;  %v4847_v31 = vsel %vm990_vm0, %v4792_v34, %v4783_v23 }
 0xccf   :  { %v4796_v19 = vrot.slane %v4741_v12, %v8810_v9 }
 0xcd2   :  { %v4744_v41 = vpop.permute.xlu1 %4743 }
 0xcd3   :  { %v4800_v14 = vrot.slane %v4744_v41, %v8807_v21 }
 0xcd5   :  { %v4801_v29 = vsel %vm4340_vm7, %v4800_v14, %v4796_v19 }
 0xcd6   :  { %v4747_v44 = vpop.permute.xlu1 %4746  ;;  %v4848_v30 = vsel %vm993_vm1, %v4801_v29, %v4847_v31 }
 0xcd7   :  { %v4805_v25 = vrot.slane %v4747_v44, %v8810_v9 }
 0xcda   :  { %v4750_v33 = vpop.permute.xlu1 %4749 }
 0xcdb   :  { %v4809_v13 = vrot.slane %v4750_v33, %v8807_v21 }
 0xcdd   :  { %v4810_v42 = vsel %vm4340_vm7, %v4809_v13, %v4805_v25 }
 0xcde   :  { %v4756_v18 = vpop.permute.xlu1 %4755  ;;  %v4849_v2 = vsel %vm996_vm2, %v4810_v42, %v4848_v30 }
 0xcdf   :  { %v4818_v32 = vrot.slane %v4756_v18, %v8807_v21 }
 0xce1   :  { %v4819_v7 = vsel %vm4340_vm7, %v4818_v32, %v4814_v17 }
 0xce2   :  { %v4759_v11 = vpop.permute.xlu1 %4758  ;;  %v4850_v47 = vsel %vm999_vm3, %v4819_v7, %v4849_v2 }
 0xce3   :  { %v4823_v59 = vrot.slane %v4759_v11, %v8810_v9 }
 0xce6   :  { %v4762_v50 = vpop.permute.xlu1 %4761 }
 0xce7   :  { %v4827_v60 = vrot.slane %v4762_v50, %v8807_v21 }
 0xce9   :  { %v4828_v43 = vsel %vm4340_vm7, %v4827_v60, %v4823_v59 }
 0xcea   :  { %v4765_v4 = vpop.permute.xlu1 %4764  ;;  %v4851_v0 = vsel %vm1002_vm4, %v4828_v43, %v4850_v47 }
 0xceb   :  { %v4832_v62 = vrot.slane %v4765_v4, %v8810_v9 }
 0xcee   :  { %v4768_v16 = vpop.permute.xlu1 %4767 }
 0xcef   :  { %v4836_v20 = vrot.slane %v4768_v16, %v8807_v21 }
 0xcf1   :  { %v4837_v63 = vsel %vm4340_vm7, %v4836_v20, %v4832_v62 }
 0xcf2   :  { %v4774_v39 = vpop.permute.xlu1 %4773  ;;  %v4852_v6 = vsel %vm1005_vm5, %v4837_v63, %v4851_v0 }
 0xcf3   :  { %v4845_v28 = vrot.slane %v4774_v39, %v8807_v21 }
 0xcf5   :  { %v4846_v52 = vsel %vm4340_vm7, %v4845_v28, %v4841_v51 }
 0xcf6   :  { %v4853_v3 = vsel %vm1008_vm6, %v4846_v52, %v4852_v6 }
 0xcf7   :  { %4855 = vst.msk [vmem:[#allocation2] sm:$0xff] %vm4413_vm8, %v4853_v3 }
 0xcf8   :  { %6456 = shalt.err (!%p6453_p4)
}
 0xcf9   :  { %s6457_s29 = scalar_lea.hbm %s9057_s8, 128 }
 0xcfa   :  { %p6458_p5 = scmp.ne.s32.totalorder %s9057_s8, %s6457_s29  ;;  %p6461_p6 = scmp.lt.u32.totalorder %s6457_s29, %s9057_s8 }
 0xcfc   :  { %p6463_p7 = pnand %p6461_p6, %p6458_p5 }
 0xcfe   :  { %6466 = shalt.err (!%p6463_p7)
}
 0xcff   :  { %4865 = dma.vmem_to_hbm [thread:$0]  %s4863_s26, 128, %s9057_s8, [#allocation3]  }
 0xd00   :  { %6467 = dma.done.wait [#allocation3], 128  }
 0xd01   :  { %6468 = vsyncadd [#allocation3], 4294967168 }
 0xd02   :  { %4869 = vsyncpa [#allocation3], 1 }

</bundles_post_ra>
